<compile_context>
chip_gen: v5e
topology: v5e:2x2
jax: 0.10.0
libtpu: 0.0.40
codegen_flags: <defaults>
</compile_context>

<pallas_src>
import functools

import jax
import jax.numpy as jnp
from jax import lax
from jax.experimental import pallas as pl
from jax.experimental.pallas import tpu as pltpu

_LANE = 128   # vreg lane width (last dim)
_MXU = 256    # MXU-friendly token-tile granularity (v6e/v7x 256x256)


def _round_up(x, m):
    return ((x + m - 1) // m) * m


def _gelu(x, approximate):
    if approximate:
        # tanh form: transcendental lands on the EUP slot (VALU relief on
        # v6e/v7x). Matches nn.GELU(approximate='tanh'); opt-in only.
        c = 0.7978845608028654  # sqrt(2/pi)
        return 0.5 * x * (1.0 + jnp.tanh(c * (x + 0.044715 * x * x * x)))
    # PyTorch nn.GELU() default = exact erf formulation.
    return 0.5 * x * (1.0 + lax.erf(x * 0.7071067811865476))


def _vmem_budget_bytes():
    """Generation-aware VMEM budget: ~85% of physical per-TC VMEM."""
    cap = None
    try:
        cap = int(pltpu.get_tpu_info().vmem_capacity_bytes)
    except Exception:
        cap = None
    if not cap or cap <= 0:
        cap = 64 * 1024 * 1024  # conservative fallback = v7x per-TC VMEM
    return int(cap * 0.85)


# ----------------------------------------------------------------------------
# Kernels
# ----------------------------------------------------------------------------
def _mlp_fused_kernel(x_ref, w1_ref, b1_ref, w2_ref, b2_ref, o_ref, *, approximate):
    w1 = w1_ref[...]                                   # (Cin_p, Hd_p), native dtype
    x = x_ref[...].astype(w1.dtype)                    # feed MXU in weight dtype
    h = jnp.dot(x, w1, preferred_element_type=jnp.float32)
    h = h + b1_ref[...].astype(jnp.float32)            # (1, Hd_p) broadcast, f32 bias
    h = _gelu(h, approximate)
    # dropout(p=0.0) == identity (elided)
    w2 = w2_ref[...]                                   # (Hd_p, Cout_p)
    y = jnp.dot(h.astype(w2.dtype), w2, preferred_element_type=jnp.float32)
    y = y + b2_ref[...].astype(jnp.float32)
    o_ref[...] = y.astype(o_ref.dtype)


def _mlp_hchunk_kernel(x_ref, w1_ref, b1_ref, w2_ref, b2_ref, o_ref, acc_ref, *, approximate):
    # Hidden dimension streamed in chunks over the trailing ("arbitrary") grid
    # axis; f32 accumulator lives in VMEM scratch and persists across chunks.
    hc = pl.program_id(1)

    @pl.when(hc == 0)
    def _():
        acc_ref[...] = jnp.zeros_like(acc_ref)

    w1 = w1_ref[...]                                   # (Cin_p, tile_h)
    x = x_ref[...].astype(w1.dtype)
    h = jnp.dot(x, w1, preferred_element_type=jnp.float32)
    h = h + b1_ref[...].astype(jnp.float32)
    h = _gelu(h, approximate)
    w2 = w2_ref[...]                                   # (tile_h, Cout_p)
    acc_ref[...] += jnp.dot(h.astype(w2.dtype), w2, preferred_element_type=jnp.float32)

    @pl.when(hc == pl.num_programs(1) - 1)
    def _():
        o_ref[...] = (acc_ref[...] + b2_ref[...].astype(jnp.float32)).astype(o_ref.dtype)


# ----------------------------------------------------------------------------
# Wrapper
# ----------------------------------------------------------------------------
def mlp_pallas(x_nhwc, w1, b1, w2, b2, *, tile_m=512, param_dtype=None,
               hidden_chunk=None, gelu_approximate=False):
    """Fused MLP.  x_nhwc: (B,H,W,Cin); w1:(Cin,Hd); b1:(Hd,); w2:(Hd,Cout); b2:(Cout,).

    param_dtype: optional weight dtype (e.g. jnp.bfloat16) for native MXU rate;
    biases stay f32.  hidden_chunk: force the Hd-streamed reduction path with
    this chunk size (otherwise chosen automatically when VMEM requires it).
    """
    B, H, W, Cin = x_nhwc.shape
    Hd = w1.shape[1]
    Cout = w2.shape[1]
    M = B * H * W
    out_dtype = x_nhwc.dtype

    # Weights optionally low-precision; biases always f32 (added in f32 in-kernel).
    if param_dtype is not None:
        w1 = w1.astype(param_dtype)
        w2 = w2.astype(param_dtype)
    b1 = b1.astype(jnp.float32)
    b2 = b2.astype(jnp.float32)

    # --- lane-dense channel padding (exact; no-op for multiple-of-128 dims) ---
    Cin_p = _round_up(Cin, _LANE)
    Hd_p = _round_up(Hd, _LANE)
    Cout_p = _round_up(Cout, _LANE)

    # --- MXU-aligned token tiling; prefer >= 2 grid steps so both v7x TCs work ---
    tile_m = max(_MXU, _round_up(min(tile_m, _round_up(M, _MXU)), _MXU))
    if M > _MXU and pl.cdiv(M, tile_m) < 2:
        tile_m = _round_up(pl.cdiv(M, 2), _MXU)
    grid_m = pl.cdiv(M, tile_m)
    M_p = grid_m * tile_m

    x_isz = jnp.dtype(x_nhwc.dtype).itemsize
    w_isz = jnp.dtype(w1.dtype).itemsize
    o_isz = jnp.dtype(out_dtype).itemsize
    budget = _vmem_budget_bytes()

    def fused_bytes():
        # x/out double-buffered, weights single-buffered, f32 intermediates.
        return int(1.3 * (
            2 * tile_m * Cin_p * x_isz
            + 2 * tile_m * Cout_p * o_isz
            + (Cin_p * Hd_p + Hd_p * Cout_p) * w_isz
            + 8 * (Hd_p + Cout_p) * 4
            + tile_m * Hd_p * 4
            + tile_m * Cout_p * 4))

    def chunk_bytes(th):
        return int(1.3 * (
            2 * tile_m * Cin_p * x_isz
            + 2 * tile_m * Cout_p * o_isz
            + 2 * (Cin_p * th + th * Cout_p) * w_isz
            + 2 * 8 * th * 4 + 8 * Cout_p * 4
            + tile_m * th * 4
            + tile_m * Cout_p * 4))

    # --- path selection: fully-resident fused kernel vs Hd-streamed kernel ---
    if hidden_chunk is None and fused_bytes() <= budget:
        tile_h = None
    else:
        th = hidden_chunk if hidden_chunk is not None else Hd_p
        th = max(_LANE, _round_up(min(th, Hd_p), _LANE))
        if hidden_chunk is None:
            while th > _LANE and chunk_bytes(th) > budget:
                th = max(_LANE, _round_up(th // 2, _LANE))
        tile_h = th
        Hd_p = _round_up(Hd_p, tile_h)   # exact: padded hidden columns are zero

    # --- padding (only when needed; weight pads would be one-time in a model) ---
    x2d = x_nhwc.reshape(M, Cin)
    if (M_p, Cin_p) != (M, Cin):
        x2d = jnp.pad(x2d, ((0, M_p - M), (0, Cin_p - Cin)))
    if (Cin_p, Hd_p) != (Cin, Hd):
        w1 = jnp.pad(w1, ((0, Cin_p - Cin), (0, Hd_p - Hd)))
    if Hd_p != Hd:
        b1 = jnp.pad(b1, (0, Hd_p - Hd))
    if (Hd_p, Cout_p) != (Hd, Cout):
        w2 = jnp.pad(w2, ((0, Hd_p - Hd), (0, Cout_p - Cout)))
    if Cout_p != Cout:
        b2 = jnp.pad(b2, (0, Cout_p - Cout))
    b1_2d = b1.reshape(1, Hd_p)
    b2_2d = b2.reshape(1, Cout_p)

    # --- cost estimate & VMEM limit ---
    flops = 2 * M_p * (Cin_p * Hd_p + Hd_p * Cout_p)
    w_bytes = (Cin_p * Hd_p + Hd_p * Cout_p) * w_isz * (grid_m if tile_h is not None else 1)
    cost = pl.CostEstimate(flops=flops,
                           transcendentals=M_p * Hd_p,
                           bytes_accessed=M_p * Cin_p * x_isz + M_p * Cout_p * o_isz + w_bytes)
    vmem_est = fused_bytes() if tile_h is None else chunk_bytes(tile_h)
    vmem_limit = int(min(max(32 * 1024 * 1024, vmem_est), budget))

    kernel = functools.partial(
        _mlp_fused_kernel if tile_h is None else _mlp_hchunk_kernel,
        approximate=gelu_approximate)

    def call(single_buffer_weights):
        def const_spec(shape, index_map):
            # Grid-invariant operand: one VMEM copy is enough (no re-DMA), so
            # skip double-buffering to halve resident weight VMEM.
            if single_buffer_weights:
                return pl.BlockSpec(shape, index_map, pipeline_mode=pl.Buffered(1))
            return pl.BlockSpec(shape, index_map)

        if tile_h is None:
            grid = (grid_m,)
            in_specs = [
                pl.BlockSpec((tile_m, Cin_p), lambda i: (i, 0)),
                const_spec((Cin_p, Hd_p), lambda i: (0, 0)),
                const_spec((1, Hd_p), lambda i: (0, 0)),
                const_spec((Hd_p, Cout_p), lambda i: (0, 0)),
                const_spec((1, Cout_p), lambda i: (0, 0)),
            ]
            out_specs = pl.BlockSpec((tile_m, Cout_p), lambda i: (i, 0))
            scratch = []
            semantics = ("parallel",)
        else:
            grid = (grid_m, Hd_p // tile_h)
            in_specs = [
                pl.BlockSpec((tile_m, Cin_p), lambda i, h: (i, 0)),
                pl.BlockSpec((Cin_p, tile_h), lambda i, h: (0, h)),
                pl.BlockSpec((1, tile_h), lambda i, h: (0, h)),
                pl.BlockSpec((tile_h, Cout_p), lambda i, h: (h, 0)),
                const_spec((1, Cout_p), lambda i, h: (0, 0)),
            ]
            out_specs = pl.BlockSpec((tile_m, Cout_p), lambda i, h: (i, 0))
            scratch = [pltpu.VMEM((tile_m, Cout_p), jnp.float32)]
            semantics = ("parallel", "arbitrary")

        return pl.pallas_call(
            kernel,
            out_shape=jax.ShapeDtypeStruct((M_p, Cout_p), out_dtype),
            grid_spec=pltpu.PrefetchScalarGridSpec(
                num_scalar_prefetch=0,
                grid=grid,
                in_specs=in_specs,
                out_specs=out_specs,
                scratch_shapes=scratch),
            compiler_params=pltpu.CompilerParams(
                dimension_semantics=semantics,
                vmem_limit_bytes=vmem_limit),
            cost_estimate=cost,
        )(x2d, w1, b1_2d, w2, b2_2d)

    try:
        out2d = call(True)
    except Exception:
        # pl.Buffered(1) not supported by this build: fall back to the default
        # double-buffered pipeline (identical numerics, slightly more VMEM).
        out2d = call(False)

    if (M_p, Cout_p) != (M, Cout):
        out2d = out2d[:M, :Cout]
    return out2d.reshape(B, H, W, Cout)


# ----------------------------------------------------------------------------
# Pure-JAX reference (PyTorch semantics: Linear -> exact GELU -> Linear)
# ----------------------------------------------------------------------------
def mlp_reference(x_nhwc, w1, b1, w2, b2):
    h = jnp.einsum("bhwc,cd->bhwd",
                   x_nhwc.astype(jnp.float32), w1.astype(jnp.float32)) + b1.astype(jnp.float32)
    h = 0.5 * h * (1.0 + lax.erf(h / jnp.sqrt(2.0)))
    y = jnp.einsum("bhwd,de->bhwe", h, w2.astype(jnp.float32)) + b2.astype(jnp.float32)
    return y.astype(x_nhwc.dtype)


if __name__ == "__main__":
    # Small shapes consistent with the module: B=2, 16x16 spatial, C=16 channels.
    B, Hs, Ws = 2, 16, 16
    in_features = 16
    hidden_features = 32
    out_features = 16  # out_features defaults to in_features

    key = jax.random.PRNGKey(0)
    kx, k1, k2, k3, k4, k5, k6, k7, k8 = jax.random.split(key, 9)

    x = jax.random.normal(kx, (B, Hs, Ws, in_features), dtype=jnp.float32)

    lim1 = in_features ** -0.5
    lim2 = hidden_features ** -0.5
    w1 = jax.random.uniform(k1, (in_features, hidden_features), jnp.float32, -lim1, lim1)
    b1 = jax.random.uniform(k2, (hidden_features,), jnp.float32, -lim1, lim1)
    w2 = jax.random.uniform(k3, (hidden_features, out_features), jnp.float32, -lim2, lim2)
    b2 = jax.random.uniform(k4, (out_features,), jnp.float32, -lim2, lim2)

    ref = mlp_reference(x, w1, b1, w2, b2)

    # 1) Fused path, f32 params (default config).
    out = jax.block_until_ready(mlp_pallas(x, w1, b1, w2, b2))
    assert out.shape == (B, Hs, Ws, out_features)
    assert jnp.allclose(out, ref, atol=1e-5, rtol=1e-5), "fused path mismatch"

    # 2) Hidden-chunked (reduction-axis) path, forced small chunk to exercise it.
    hidden_big = 256
    lim2b = hidden_big ** -0.5
    w1b = jax.random.uniform(k5, (in_features, hidden_big), jnp.float32, -lim1, lim1)
    b1b = jax.random.uniform(k6, (hidden_big,), jnp.float32, -lim1, lim1)
    w2b = jax.random.uniform(k7, (hidden_big, out_features), jnp.float32, -lim2b, lim2b)
    b2b = jax.random.uniform(k8, (out_features,), jnp.float32, -lim2b, lim2b)
    refb = mlp_reference(x, w1b, b1b, w2b, b2b)
    outb = jax.block_until_ready(mlp_pallas(x, w1b, b1b, w2b, b2b, hidden_chunk=128))
    assert jnp.allclose(outb, refb, atol=1e-4, rtol=1e-4), "hidden-chunked path mismatch"

    # 3) bf16-weight path (native MXU rate on both matmuls; f32 biases/accumulation).
    out_bf16 = jax.block_until_ready(
        mlp_pallas(x, w1, b1, w2, b2, param_dtype=jnp.bfloat16))
    assert jnp.allclose(out_bf16, ref, atol=5e-2, rtol=5e-2), "bf16 path mismatch"

    print("KERNEL_OK")
</pallas_src>

<mosaic_0001>
module attributes {stable_mosaic.version = 11 : i64} {
  func.func @_mlp_fused_kernel(%arg0: i32, %arg1: memref<256x128xf32, #tpu.memory_space<vmem>>, %arg2: memref<128x128xf32, #tpu.memory_space<vmem>>, %arg3: memref<1x128xf32, #tpu.memory_space<vmem>>, %arg4: memref<128x128xf32, #tpu.memory_space<vmem>>, %arg5: memref<1x128xf32, #tpu.memory_space<vmem>>, %arg6: memref<256x128xf32, #tpu.memory_space<vmem>>) attributes {dimension_semantics = [#tpu.dimension_semantics<parallel>], iteration_bounds = array<i64: 2>, scalar_prefetch = 0 : i64, scratch_operands = 0 : i64, tpu.core_type = #tpu.core_type<tc>, window_params = [{transform_indices = @transform_0, window_bounds = array<i64: 256, 128>}, {pipeline_mode = #tpu.pipeline_mode<synchronous>, transform_indices = @transform_1, window_bounds = array<i64: 128, 128>}, {pipeline_mode = #tpu.pipeline_mode<synchronous>, transform_indices = @transform_2, window_bounds = array<i64: 1, 128>}, {pipeline_mode = #tpu.pipeline_mode<synchronous>, transform_indices = @transform_3, window_bounds = array<i64: 128, 128>}, {pipeline_mode = #tpu.pipeline_mode<synchronous>, transform_indices = @transform_4, window_bounds = array<i64: 1, 128>}, {transform_indices = @transform_5, window_bounds = array<i64: 256, 128>}]} {
    %c0 = arith.constant 0 : index
    %c0_0 = arith.constant 0 : index
    %0 = vector.load %arg2[%c0, %c0_0] : memref<128x128xf32, #tpu.memory_space<vmem>>, vector<128x128xf32>
    %c0_1 = arith.constant 0 : index
    %c0_2 = arith.constant 0 : index
    %1 = vector.load %arg1[%c0_1, %c0_2] : memref<256x128xf32, #tpu.memory_space<vmem>>, vector<256x128xf32>
    %cst = arith.constant dense<0.000000e+00> : vector<256x128xf32>
    %2 = tpu.matmul %1, %0, %cst {dimension_numbers = #tpu.dot_dimension_numbers<[1], [0], [0], [1], [0, 0, 1, 1], [], []>} : vector<256x128xf32>, vector<128x128xf32>, vector<256x128xf32> -> vector<256x128xf32>
    %c0_3 = arith.constant 0 : index
    %c0_4 = arith.constant 0 : index
    %3 = vector.load %arg3[%c0_3, %c0_4] : memref<1x128xf32, #tpu.memory_space<vmem>>, vector<1x128xf32>
    %4 = vector.broadcast %3 : vector<1x128xf32> to vector<256x128xf32>
    %5 = arith.addf %2, %4 : vector<256x128xf32>
    %cst_5 = arith.constant 5.000000e-01 : f32
    %6 = vector.broadcast %cst_5 : f32 to vector<256x128xf32>
    %7 = arith.mulf %6, %5 : vector<256x128xf32>
    %cst_6 = arith.constant 0.707106769 : f32
    %8 = vector.broadcast %cst_6 : f32 to vector<256x128xf32>
    %9 = arith.mulf %5, %8 : vector<256x128xf32>
    %10 = math.erf %9 : vector<256x128xf32>
    %cst_7 = arith.constant 1.000000e+00 : f32
    %11 = vector.broadcast %cst_7 : f32 to vector<256x128xf32>
    %12 = arith.addf %11, %10 : vector<256x128xf32>
    %13 = arith.mulf %7, %12 : vector<256x128xf32>
    %c0_8 = arith.constant 0 : index
    %c0_9 = arith.constant 0 : index
    %14 = vector.load %arg4[%c0_8, %c0_9] : memref<128x128xf32, #tpu.memory_space<vmem>>, vector<128x128xf32>
    %cst_10 = arith.constant dense<0.000000e+00> : vector<256x128xf32>
    %15 = tpu.matmul %13, %14, %cst_10 {dimension_numbers = #tpu.dot_dimension_numbers<[1], [0], [0], [1], [0, 0, 1, 1], [], []>} : vector<256x128xf32>, vector<128x128xf32>, vector<256x128xf32> -> vector<256x128xf32>
    %c0_11 = arith.constant 0 : index
    %c0_12 = arith.constant 0 : index
    %16 = vector.load %arg5[%c0_11, %c0_12] : memref<1x128xf32, #tpu.memory_space<vmem>>, vector<1x128xf32>
    %17 = vector.broadcast %16 : vector<1x128xf32> to vector<256x128xf32>
    %18 = arith.addf %15, %17 : vector<256x128xf32>
    %c0_13 = arith.constant 0 : index
    %c0_14 = arith.constant 0 : index
    %19 = vector.load %arg6[%c0_13, %c0_14] : memref<256x128xf32, #tpu.memory_space<vmem>>, vector<256x128xf32>
    tpu.vector_store %arg6[%c0_13, %c0_14], %18 {strides = array<i32>} : memref<256x128xf32, #tpu.memory_space<vmem>>, vector<256x128xf32>,
    return
  }
  func.func @transform_0(%arg0: i32) -> (i32, i32) {
    %c0_i32 = arith.constant 0 : i32
    %c0_i32_0 = arith.constant 0 : i32
    return %arg0, %c0_i32 : i32, i32
  }
  func.func @transform_1(%arg0: i32) -> (i32, i32) {
    %c0_i32 = arith.constant 0 : i32
    %c0_i32_0 = arith.constant 0 : i32
    %c0_i32_1 = arith.constant 0 : i32
    return %c0_i32, %c0_i32_0 : i32, i32
  }
  func.func @transform_2(%arg0: i32) -> (i32, i32) {
    %c0_i32 = arith.constant 0 : i32
    %c0_i32_0 = arith.constant 0 : i32
    %c0_i32_1 = arith.constant 0 : i32
    return %c0_i32, %c0_i32_0 : i32, i32
  }
  func.func @transform_3(%arg0: i32) -> (i32, i32) {
    %c0_i32 = arith.constant 0 : i32
    %c0_i32_0 = arith.constant 0 : i32
    %c0_i32_1 = arith.constant 0 : i32
    return %c0_i32, %c0_i32_0 : i32, i32
  }
  func.func @transform_4(%arg0: i32) -> (i32, i32) {
    %c0_i32 = arith.constant 0 : i32
    %c0_i32_0 = arith.constant 0 : i32
    %c0_i32_1 = arith.constant 0 : i32
    return %c0_i32, %c0_i32_0 : i32, i32
  }
  func.func @transform_5(%arg0: i32) -> (i32, i32) {
    %c0_i32 = arith.constant 0 : i32
    %c0_i32_0 = arith.constant 0 : i32
    return %arg0, %c0_i32 : i32, i32
  }
}

module attributes {stable_mosaic.version = 11 : i64} {
  func.func @_mlp_fused_kernel(%arg0: i32, %arg1: memref<256x128xf32, #tpu.memory_space<vmem>>, %arg2: memref<128x128xf32, #tpu.memory_space<vmem>>, %arg3: memref<1x128xf32, #tpu.memory_space<vmem>>, %arg4: memref<128x128xf32, #tpu.memory_space<vmem>>, %arg5: memref<1x128xf32, #tpu.memory_space<vmem>>, %arg6: memref<256x128xf32, #tpu.memory_space<vmem>>) attributes {dimension_semantics = [#tpu.dimension_semantics<parallel>], iteration_bounds = array<i64: 2>, scalar_prefetch = 0 : i64, scratch_operands = 0 : i64, tpu.core_type = #tpu.core_type<tc>, window_params = [{transform_indices = @transform_0, window_bounds = array<i64: 256, 128>}, {pipeline_mode = #tpu.pipeline_mode<synchronous>, transform_indices = @transform_1, window_bounds = array<i64: 128, 128>}, {pipeline_mode = #tpu.pipeline_mode<synchronous>, transform_indices = @transform_2, window_bounds = array<i64: 1, 128>}, {pipeline_mode = #tpu.pipeline_mode<synchronous>, transform_indices = @transform_3, window_bounds = array<i64: 128, 128>}, {pipeline_mode = #tpu.pipeline_mode<synchronous>, transform_indices = @transform_4, window_bounds = array<i64: 1, 128>}, {transform_indices = @transform_5, window_bounds = array<i64: 256, 128>}]} {
    %c0 = arith.constant 0 : index
    %c0_0 = arith.constant 0 : index
    %0 = vector.load %arg2[%c0, %c0_0] : memref<128x128xf32, #tpu.memory_space<vmem>>, vector<128x128xf32>
    %c0_1 = arith.constant 0 : index
    %c0_2 = arith.constant 0 : index
    %1 = vector.load %arg1[%c0_1, %c0_2] : memref<256x128xf32, #tpu.memory_space<vmem>>, vector<256x128xf32>
    %cst = arith.constant dense<0.000000e+00> : vector<256x128xf32>
    %2 = tpu.matmul %1, %0, %cst {dimension_numbers = #tpu.dot_dimension_numbers<[1], [0], [0], [1], [0, 0, 1, 1], [], []>} : vector<256x128xf32>, vector<128x128xf32>, vector<256x128xf32> -> vector<256x128xf32>
    %c0_3 = arith.constant 0 : index
    %c0_4 = arith.constant 0 : index
    %3 = vector.load %arg3[%c0_3, %c0_4] : memref<1x128xf32, #tpu.memory_space<vmem>>, vector<1x128xf32>
    %4 = vector.broadcast %3 : vector<1x128xf32> to vector<256x128xf32>
    %5 = arith.addf %2, %4 : vector<256x128xf32>
    %cst_5 = arith.constant 5.000000e-01 : f32
    %6 = vector.broadcast %cst_5 : f32 to vector<256x128xf32>
    %7 = arith.mulf %6, %5 : vector<256x128xf32>
    %cst_6 = arith.constant 0.707106769 : f32
    %8 = vector.broadcast %cst_6 : f32 to vector<256x128xf32>
    %9 = arith.mulf %5, %8 : vector<256x128xf32>
    %10 = math.erf %9 : vector<256x128xf32>
    %cst_7 = arith.constant 1.000000e+00 : f32
    %11 = vector.broadcast %cst_7 : f32 to vector<256x128xf32>
    %12 = arith.addf %11, %10 : vector<256x128xf32>
    %13 = arith.mulf %7, %12 : vector<256x128xf32>
    %c0_8 = arith.constant 0 : index
    %c0_9 = arith.constant 0 : index
    %14 = vector.load %arg4[%c0_8, %c0_9] : memref<128x128xf32, #tpu.memory_space<vmem>>, vector<128x128xf32>
    %cst_10 = arith.constant dense<0.000000e+00> : vector<256x128xf32>
    %15 = tpu.matmul %13, %14, %cst_10 {dimension_numbers = #tpu.dot_dimension_numbers<[1], [0], [0], [1], [0, 0, 1, 1], [], []>} : vector<256x128xf32>, vector<128x128xf32>, vector<256x128xf32> -> vector<256x128xf32>
    %c0_11 = arith.constant 0 : index
    %c0_12 = arith.constant 0 : index
    %16 = vector.load %arg5[%c0_11, %c0_12] : memref<1x128xf32, #tpu.memory_space<vmem>>, vector<1x128xf32>
    %17 = vector.broadcast %16 : vector<1x128xf32> to vector<256x128xf32>
    %18 = arith.addf %15, %17 : vector<256x128xf32>
    %c0_13 = arith.constant 0 : index
    %c0_14 = arith.constant 0 : index
    %19 = vector.load %arg6[%c0_13, %c0_14] : memref<256x128xf32, #tpu.memory_space<vmem>>, vector<256x128xf32>
    tpu.vector_store %arg6[%c0_13, %c0_14], %18 {strides = array<i32>} : memref<256x128xf32, #tpu.memory_space<vmem>>, vector<256x128xf32>,
    return
  }
  func.func @transform_0(%arg0: i32) -> (i32, i32) {
    %c0_i32 = arith.constant 0 : i32
    %c0_i32_0 = arith.constant 0 : i32
    return %arg0, %c0_i32 : i32, i32
  }
  func.func @transform_1(%arg0: i32) -> (i32, i32) {
    %c0_i32 = arith.constant 0 : i32
    %c0_i32_0 = arith.constant 0 : i32
    %c0_i32_1 = arith.constant 0 : i32
    return %c0_i32, %c0_i32_0 : i32, i32
  }
  func.func @transform_2(%arg0: i32) -> (i32, i32) {
    %c0_i32 = arith.constant 0 : i32
    %c0_i32_0 = arith.constant 0 : i32
    %c0_i32_1 = arith.constant 0 : i32
    return %c0_i32, %c0_i32_0 : i32, i32
  }
  func.func @transform_3(%arg0: i32) -> (i32, i32) {
    %c0_i32 = arith.constant 0 : i32
    %c0_i32_0 = arith.constant 0 : i32
    %c0_i32_1 = arith.constant 0 : i32
    return %c0_i32, %c0_i32_0 : i32, i32
  }
  func.func @transform_4(%arg0: i32) -> (i32, i32) {
    %c0_i32 = arith.constant 0 : i32
    %c0_i32_0 = arith.constant 0 : i32
    %c0_i32_1 = arith.constant 0 : i32
    return %c0_i32, %c0_i32_0 : i32, i32
  }
  func.func @transform_5(%arg0: i32) -> (i32, i32) {
    %c0_i32 = arith.constant 0 : i32
    %c0_i32_0 = arith.constant 0 : i32
    return %arg0, %c0_i32 : i32, i32
  }
}

</mosaic_0001>

<bundles_post_ra>
// kernel: tpu_custom_call.1
= control target key start
LH: loop header
LB: loop body
LE: loop exit
PB: predicated region body
PF: predicated region fallthrough
CT: control target
= control target key end

     0   :  { %10 = vsyncpa [#allocation3], 0  ;;  %s4084_s0 = inlined_call_operand.hbm [shape: f32[512,128], index: 0, kind: input, shape index: {}]   ;;  %s4085_s1 = inlined_call_operand.hbm [shape: f32[128,128], index: 1, kind: input, shape index: {}]   ;;  %s4086_s2 = inlined_call_operand.vmem [shape: f32[1,128], index: 2, kind: input, shape index: {}]   ;;  %s4087_s3 = inlined_call_operand.hbm [shape: f32[128,128], index: 3, kind: input, shape index: {}]   ;;  %s4088_s4 = inlined_call_operand.vmem [shape: f32[1,128], index: 4, kind: input, shape index: {}]   ;;  %s4089_s5 = inlined_call_operand.hbm [shape: f32[512,128], index: 5, kind: output, shape index: {}]  }
   0x1   :  { %12 = vsyncpa [#allocation3 + $0x1], 0 }
   0x2   :  { %13 = vsyncpa [#allocation6], 0 }
   0x3   :  { %14 = vsyncpa [#allocation4], 0 }
   0x4   :  { %16 = vsyncpa [#allocation4 + $0x1], 0  ;;  %s2546_s18 = smov 0   ;;  %s2548_s19 = smov 0  }
   0x5   :  { %s2550_s20 = smov 0   ;;  %s2552_s21 = smov 0  }
   0x6 LB: > { %s2567_s22 = sadd.s32 4294967295, %s2508_s21   ;;  %s2126_s23 = sadd.s32 4294967294, %s2508_s21   ;;  %s2508_s21 = sphi %s2552_s21, %s4186_s21   ;;  %s2504_s20 = sphi %s2550_s20, %s4185_s20   ;;  %s2500_s19 = sphi %s2548_s19, %s4184_s19   ;;  %s2496_s18 = sphi %s2546_s18, %s4183_s18  }
   0x7   : > { %p42_p0 = scmp.ne.s32.totalorder %s2500_s19, %s2496_s18  ;;  %p43_p1 = scmp.eq.s32.totalorder %s2567_s22, 0 }
   0x8   : > { %p150_p2 = scmp.eq.s32.totalorder %s2567_s22, 1  ;;  %p156_p3 = scmp.eq.s32.totalorder %s2126_s23, 1 }
   0x9   : > { %p2576_p4 = por %p43_p1, %p42_p0  ;;  %p2127_p5 = scmp.ge.s32.totalorder %s2508_s21, 1 }
   0xa   : > { %p2581_p6 = por %p156_p3, %p42_p0  ;;  %p163_p7 = scmp.lt.s32.totalorder %s2508_s21, 3 }
   0xb   : > { %s174_s28 = sshll.u32 %s4085_s1, 4  ;;  %s2510_s30 = smov [#allocation5]   ;;  %s175_s28 = int_to_ptr.hbm [resolvable:$true] %s174_s28 }
   0xc   : > { %p2589_p8 = pnand %p2127_p5, %p163_p7  ;;  %s176_s6 = sshll.u32 %s2510_s30, 4  ;;  %s177_s6 = int_to_ptr.vmem [resolvable:$true] %s176_s6 }
   0xd   : > { %s191_s9 = sshll.u32 %s4087_s3, 4  ;;  %s4090_s10 = smov 128   ;;  %s192_s9 = int_to_ptr.hbm [resolvable:$true] %s191_s9 }
   0xe   : > { %p2222_p9 = pneg %p2589_p8  ;;  %s2512_s11 = smov 8  }
   0xf   : > { %s2513_s12 = smov [#allocation7]   ;;  %s2608_s14 = sadd.s32 1, %s2508_s21  }
  0x10   : > { %p2223_p10 = pnand %p2222_p9, %p43_p1  ;;  %s193_s13 = sshll.u32 %s2513_s12, 4  ;;  %s194_s13 = int_to_ptr.vmem [resolvable:$true] %s193_s13 }
  0x11   : > { %s29_s15 = sadd.s32 1, %s2504_s20  ;;  %s26_s16 = ssub.s32 %s2508_s21, %s2608_s14 }
  0x12   : > { %2225 = dma.hbm_to_vmem [thread:$0]  (!%p2223_p10), %s175_s28, 2048, %s177_s6, [#allocation6], %s4090_s10, %s4090_s10, %s2512_s11  }
  0x13   : > { %2228 = dma.hbm_to_vmem [thread:$0]  (!%p2223_p10), %s192_s9, 2048, %s194_s13, [#allocation6], %s4090_s10, %s4090_s10, %s2512_s11  }
  0x14   : > { %p36_p12 = scmp.ne.s32.totalorder %s2504_s20, %s2500_s19  ;;  %p27_p13 = scmp.eq.s32.totalorder %s26_s16, 0 }
  0x15   : > { %p37_p0 = scmp.eq.s32.totalorder %s2508_s21, 0  ;;  %p2239_p5 = scmp.lt.s32.totalorder %s2508_s21, 2 }
  0x16   : > { %p2618_p3 = por %p150_p2, %p36_p12  ;;  %s210_s26 = sand.u32 1, %s2504_s20  }
  0x17   : > { %s2624_s23 = scalar_select %p27_p13, %s2504_s20, %s29_s15  }
  0x18   : > { %p38_p7 = por %p37_p0, %p36_p12  ;;  %s2131_s27 = sshll.u32 %s210_s26, 8 }
  0x19   : > { %s2176_s28 = sshll.u32 %s2508_s21, 8  ;;  %s214_s8 = scalar_lea.vmem [#allocation2], %s2131_s27 }
  0x1a   : > { %s219_s7 = scalar_lea.hbm %s4084_s0, %s2176_s28  ;;  %s222_s9 = sshll.u32 %s214_s8, 4  ;;  %s223_s9 = int_to_ptr.vmem [resolvable:$true] %s222_s9 }
  0x1b   : > { %s220_s12 = sshll.u32 %s219_s7, 4  ;;  %p2631_p2 = pnand %p2239_p5, %p38_p7  ;;  %s221_s12 = int_to_ptr.hbm [resolvable:$true] %s220_s12 }
  0x1c   : > { %s211_s15 = scalar_lea.sflag [#allocation3], %s210_s26  ;;  %s2408_s16 = sshra.s32 %s221_s12, 4  ;;  %s2409_s16 = int_to_ptr.hbm [resolvable:$true] %s2408_s16 }
  0x1d   : > { %s2410_s10 = scalar_lea.hbm %s2409_s16, 256  ;;  %p2412_p10 = pneg %p2631_p2 }
  0x1e   : > { %p2411_p9 = scmp.ne.s32.totalorder %s2409_s16, %s2410_s10  ;;  %s2415_s30 = scalar_lea.hbm %s4084_s0, 512 }
  0x1f   : > { %p2416_p0 = scmp.lt.s32.totalorder %s2409_s16, %s4084_s0  ;;  %p2417_p5 = scmp.lt.s32.totalorder %s2415_s30, %s2410_s10 }
  0x20   : > { %p2413_p12 = pnand %p2412_p10, %p2411_p9 }
  0x21   : > { %p2418_p7 = por %p2417_p5, %p2416_p0 }
  0x22   : > { %p2414_p13 = pneg %p2413_p12 }
  0x24   : > { %p2419_p11 = pnand %p2418_p7, %p2414_p13 }
  0x26   : > { %2422 = shalt.err (!%p2419_p11)
}
  0x27   : > { %s4105_s26 = smov 128   ;;  %234 = sbr.rel (%p2589_p8) target bundleno = 714 (0x2ca), region = 40 }
  0x28   : > { %2232 = dma.hbm_to_vmem [thread:$0]  (!%p2631_p2), %s221_s12, 4096, %s223_s9, %s211_s15, %s4105_s26, %s4105_s26, %s2512_s11  }
  0x2c   : > { %s2651_s8 = sand.u32 1, %s2500_s19  }
  0x2d   : > { %s2135_s10 = sshll.u32 %s2651_s8, 8  ;;  %s237_s16 = scalar_lea.sflag [#allocation3], %s2651_s8 }
  0x2e   : > { %s2657_s28 = scalar_lea.vmem [#allocation2], %s2135_s10 }
  0x2f   : > { %2483 = dma.done.wait (%p2576_p4), %s237_s16, 4096  }
  0x30   : > { %2485 = vsyncadd (%p2576_p4), %s237_s16, 4294963200 }
  0x31   : > { %2487 = dma.done.wait (%p43_p1), [#allocation6], 4096  }
  0x32   : > { %2489 = vsyncadd (%p43_p1), [#allocation6], 4294963200  ;;  %v295_v0 = vld [vmem:[#allocation5 + $0x78] sm:$0xff]  ;;  %v294_v1 = vld [vmem:[#allocation5 + $0x70] sm:$0xff]  ;;  %s3939_s15 = scalar_lea.vmem [#allocation8], %s2135_s10  ;;  %s2177_s27 = sshll.u32 %s2567_s22, 8 }
  0x33   : > { %332 = vmatpush.msra.mxu0 %v295_v0  ;;  %2178 = vmatpush.msra.mxu2 %v295_v0  ;;  %v293_v2 = vld [vmem:[#allocation5 + $0x68] sm:$0xff]  ;;  %v292_v3 = vld [vmem:[#allocation5 + $0x60] sm:$0xff]  ;;  %v291_v4 = vld [vmem:[#allocation5 + $0x58] sm:$0xff]  ;;  %s2030_s7 = scalar_lea.hbm %s4089_s5, %s2177_s27  ;;  %s2031_s26 = sshll.u32 %s3939_s15, 4  ;;  %s2032_s26 = int_to_ptr.vmem [resolvable:$true] %s2031_s26 }
  0x34   : > { %v290_v5 = vld [vmem:[#allocation5 + $0x50] sm:$0xff]  ;;  %v289_v6 = vld [vmem:[#allocation5 + $0x48] sm:$0xff]  ;;  %v288_v7 = vld [vmem:[#allocation5 + $0x40] sm:$0xff]  ;;  %s2033_s10 = sshll.u32 %s2030_s7, 4  ;;  %s2019_s16 = scalar_lea.sflag [#allocation4], %s2651_s8  ;;  %s2034_s10 = int_to_ptr.hbm [resolvable:$true] %s2033_s10 }
  0x35   : > { %333 = vmatpush.msra.mxu0 %v294_v1  ;;  %2179 = vmatpush.msra.mxu2 %v294_v1  ;;  %v287_v8 = vld [vmem:[#allocation5 + $0x38] sm:$0xff]  ;;  %v286_v9 = vld [vmem:[#allocation5 + $0x30] sm:$0xff]  ;;  %v285_v10 = vld [vmem:[#allocation5 + $0x28] sm:$0xff]  ;;  %s2452_s22 = sshra.s32 %s2034_s10, 4  ;;  %s2458_s11 = scalar_lea.hbm %s4089_s5, 512  ;;  %s2453_s22 = int_to_ptr.hbm [resolvable:$true] %s2452_s22 }
  0x36   : > { %v284_v11 = vld [vmem:[#allocation5 + $0x20] sm:$0xff]  ;;  %v283_v12 = vld [vmem:[#allocation5 + $0x18] sm:$0xff]  ;;  %v282_v13 = vld [vmem:[#allocation5 + $0x10] sm:$0xff]  ;;  %p2459_p11 = scmp.lt.s32.totalorder %s2453_s22, %s4089_s5 }
  0x37   : > { %334 = vmatpush.msra.mxu0 %v293_v2  ;;  %2180 = vmatpush.msra.mxu2 %v293_v2  ;;  %v281_v14 = vld [vmem:[#allocation5 + $0x8] sm:$0xff]  ;;  %v280_v15 = vld [vmem:[#allocation5] sm:$0xff]  ;;  %v298_v20 = vld [vmem:[%s2657_s28 + $0x10] sm:$0xff] }
  0x38   : > { %v296_v16 = vld [vmem:[%s2657_s28] sm:$0xff]  ;;  %v297_v18 = vld [vmem:[%s2657_s28 + $0x8] sm:$0xff]  ;;  %v314_v21 = vld [vmem:[%s2657_s28 + $0x90] sm:$0xff] }
  0x39   : > { %335 = vmatpush.msra.mxu0 %v292_v3  ;;  %2181 = vmatpush.msra.mxu2 %v292_v3  ;;  %v312_v17 = vld [vmem:[%s2657_s28 + $0x80] sm:$0xff]  ;;  %v313_v19 = vld [vmem:[%s2657_s28 + $0x88] sm:$0xff]  ;;  %v299_v22 = vld [vmem:[%s2657_s28 + $0x18] sm:$0xff] }
  0x3a   : > { %v315_v23 = vld [vmem:[%s2657_s28 + $0x98] sm:$0xff]  ;;  %v300_v24 = vld [vmem:[%s2657_s28 + $0x20] sm:$0xff]  ;;  %v301_v26 = vld [vmem:[%s2657_s28 + $0x28] sm:$0xff] }
  0x3b   : > { %336 = vmatpush.msra.mxu0 %v291_v4  ;;  %2182 = vmatpush.msra.mxu2 %v291_v4  ;;  %v316_v25 = vld [vmem:[%s2657_s28 + $0xa0] sm:$0xff]  ;;  %v317_v27 = vld [vmem:[%s2657_s28 + $0xa8] sm:$0xff]  ;;  %v302_v28 = vld [vmem:[%s2657_s28 + $0x30] sm:$0xff] }
  0x3c   : > { %v318_v29 = vld [vmem:[%s2657_s28 + $0xb0] sm:$0xff]  ;;  %v303_v30 = vld [vmem:[%s2657_s28 + $0x38] sm:$0xff]  ;;  %v304_v32 = vld [vmem:[%s2657_s28 + $0x40] sm:$0xff] }
  0x3d   : > { %337 = vmatpush.msra.mxu0 %v290_v5  ;;  %2183 = vmatpush.msra.mxu2 %v290_v5  ;;  %v319_v31 = vld [vmem:[%s2657_s28 + $0xb8] sm:$0xff]  ;;  %v320_v33 = vld [vmem:[%s2657_s28 + $0xc0] sm:$0xff]  ;;  %v305_v34 = vld [vmem:[%s2657_s28 + $0x48] sm:$0xff] }
  0x3e   : > { %v321_v35 = vld [vmem:[%s2657_s28 + $0xc8] sm:$0xff]  ;;  %v306_v36 = vld [vmem:[%s2657_s28 + $0x50] sm:$0xff]  ;;  %v307_v38 = vld [vmem:[%s2657_s28 + $0x58] sm:$0xff] }
  0x3f   : > { %338 = vmatpush.msra.mxu0 %v289_v6  ;;  %2184 = vmatpush.msra.mxu2 %v289_v6  ;;  %v322_v37 = vld [vmem:[%s2657_s28 + $0xd0] sm:$0xff]  ;;  %v323_v39 = vld [vmem:[%s2657_s28 + $0xd8] sm:$0xff]  ;;  %v308_v40 = vld [vmem:[%s2657_s28 + $0x60] sm:$0xff] }
  0x40   : > { %v324_v41 = vld [vmem:[%s2657_s28 + $0xe0] sm:$0xff]  ;;  %v309_v42 = vld [vmem:[%s2657_s28 + $0x68] sm:$0xff]  ;;  %v310_v44 = vld [vmem:[%s2657_s28 + $0x70] sm:$0xff] }
  0x41   : > { %339 = vmatpush.msra.mxu0 %v288_v7  ;;  %2185 = vmatpush.msra.mxu2 %v288_v7  ;;  %v325_v43 = vld [vmem:[%s2657_s28 + $0xe8] sm:$0xff]  ;;  %v326_v45 = vld [vmem:[%s2657_s28 + $0xf0] sm:$0xff]  ;;  %v1868_v46 = vld [vmem:[#allocation7 + $0x78] sm:$0xff] }
  0x42   : > { %v311_v47 = vld [vmem:[%s2657_s28 + $0x78] sm:$0xff]  ;;  %1873 = vmatpush.msra.mxu1 %v1868_v46  ;;  %2194 = vmatpush.msra.mxu3 %v1868_v46  ;;  %v1867_v49 = vld [vmem:[#allocation7 + $0x70] sm:$0xff]  ;;  %v1866_v50 = vld [vmem:[#allocation7 + $0x68] sm:$0xff] }
  0x43   : > { %340 = vmatpush.msra.mxu0 %v287_v8  ;;  %2186 = vmatpush.msra.mxu2 %v287_v8  ;;  %v327_v48 = vld [vmem:[%s2657_s28 + $0xf8] sm:$0xff]  ;;  %v2702_v51 = vld [vmem:[%s4086_s2] ss:$0 sm:$0xff]  ;;  %v1863_v56 = vld [vmem:[#allocation7 + $0x50] sm:$0xff]  ;;  %s2454_s28 = scalar_lea.hbm %s2453_s22, 256 }
  0x44   : > { %1874 = vmatpush.msra.mxu1 %v1867_v49  ;;  %2195 = vmatpush.msra.mxu3 %v1867_v49  ;;  %v1865_v52 = vld [vmem:[#allocation7 + $0x60] sm:$0xff]  ;;  %v1864_v54 = vld [vmem:[#allocation7 + $0x58] sm:$0xff]  ;;  %v1862_v58 = vld [vmem:[#allocation7 + $0x48] sm:$0xff]  ;;  %p2455_p1 = scmp.ne.s32.totalorder %s2453_s22, %s2454_s28  ;;  %p2460_p2 = scmp.lt.s32.totalorder %s2458_s11, %s2454_s28 }
  0x45   : > { %341 = vmatpush.msra.mxu0 %v286_v9  ;;  %2187 = vmatpush.msra.mxu2 %v286_v9  ;;  %v1861_v61 = vld [vmem:[#allocation7 + $0x40] sm:$0xff]  ;;  %v1860_v1 = vld [vmem:[#allocation7 + $0x38] sm:$0xff]  ;;  %v1859_v7 = vld [vmem:[#allocation7 + $0x30] sm:$0xff] }
  0x46   : > { %1875 = vmatpush.msra.mxu1 %v1866_v50  ;;  %2196 = vmatpush.msra.mxu3 %v1866_v50  ;;  %p2456_p4 = pnand %p2455_p1, %p2618_p3  ;;  %p2461_p9 = por %p2460_p2, %p2459_p11 }
  0x47   : > { %342 = vmatpush.msra.mxu0 %v285_v10  ;;  %2188 = vmatpush.msra.mxu2 %v285_v10 }
  0x48   : > { %1876 = vmatpush.msra.mxu1 %v1865_v52  ;;  %2197 = vmatpush.msra.mxu3 %v1865_v52  ;;  %p2457_p8 = pneg %p2456_p4 }
  0x49   : > { %343 = vmatpush.msra.mxu0 %v284_v11  ;;  %2189 = vmatpush.msra.mxu2 %v284_v11  ;;  %v1858_v11 = vld [vmem:[#allocation7 + $0x28] sm:$0xff] }
  0x4a   : > { %1877 = vmatpush.msra.mxu1 %v1864_v54  ;;  %2198 = vmatpush.msra.mxu3 %v1864_v54  ;;  %p2462_p10 = pnand %p2461_p9, %p2457_p8 }
  0x4b   : > { %344 = vmatpush.msra.mxu0 %v283_v12  ;;  %2190 = vmatpush.msra.mxu2 %v283_v12 }
  0x4c   : > { %1878 = vmatpush.msra.mxu1 %v1863_v56  ;;  %2199 = vmatpush.msra.mxu3 %v1863_v56 }
  0x4d   : > { %345 = vmatpush.msra.mxu0 %v282_v13  ;;  %2191 = vmatpush.msra.mxu2 %v282_v13 }
  0x4e   : > { %1879 = vmatpush.msra.mxu1 %v1862_v58  ;;  %2200 = vmatpush.msra.mxu3 %v1862_v58 }
  0x4f   : > { %346 = vmatpush.msra.mxu0 %v281_v14  ;;  %2192 = vmatpush.msra.mxu2 %v281_v14 }
  0x50   : > { %1880 = vmatpush.msra.mxu1 %v1861_v61  ;;  %2201 = vmatpush.msra.mxu3 %v1861_v61 }
  0x51   : > { %347 = vmatpush.msra.mxu0 %v280_v15  ;;  %2193 = vmatpush.msra.mxu2 %v280_v15 }
  0x52   : > { %348 = vmatmul.f32.vlgmr.msra.gmra.mxu0 %v296_v16  ;;  %396 = vmatmul.f32.vlgmr.msra.gmra.mxu2 %v312_v17  ;;  %v1857_v16 = vld [vmem:[#allocation7 + $0x20] sm:$0xff] }
  0x53   : > { %1881 = vmatpush.msra.mxu1 %v1860_v1  ;;  %2202 = vmatpush.msra.mxu3 %v1860_v1 }
  0x55   : > { %1882 = vmatpush.msra.mxu1 %v1859_v7  ;;  %2203 = vmatpush.msra.mxu3 %v1859_v7 }
  0x57   : > { %1883 = vmatpush.msra.mxu1 %v1858_v11  ;;  %2204 = vmatpush.msra.mxu3 %v1858_v11 }
  0x59   : > { %1884 = vmatpush.msra.mxu1 %v1857_v16  ;;  %2205 = vmatpush.msra.mxu3 %v1857_v16 }
  0x5a   : > { %351 = vmatmul.f32.gmra.mxu0 %v297_v18  ;;  %399 = vmatmul.f32.gmra.mxu2 %v313_v19 }
  0x62   : > { %354 = vmatmul.f32.gmra.mxu0 %v298_v20  ;;  %402 = vmatmul.f32.gmra.mxu2 %v314_v21  ;;  %v1856_v21 = vld [vmem:[#allocation7 + $0x18] sm:$0xff] }
  0x63   : > { %1885 = vmatpush.msra.mxu1 %v1856_v21  ;;  %2206 = vmatpush.msra.mxu3 %v1856_v21 }
  0x6a   : > { %357 = vmatmul.f32.gmra.mxu0 %v299_v22  ;;  %405 = vmatmul.f32.gmra.mxu2 %v315_v23 }
  0x72   : > { %360 = vmatmul.f32.gmra.mxu0 %v300_v24  ;;  %408 = vmatmul.f32.gmra.mxu2 %v316_v25 }
  0x7a   : > { %363 = vmatmul.f32.gmra.mxu0 %v301_v26  ;;  %411 = vmatmul.f32.gmra.mxu2 %v317_v27  ;;  %v1855_v26 = vld [vmem:[#allocation7 + $0x10] sm:$0xff] }
  0x7b   : > { %1886 = vmatpush.msra.mxu1 %v1855_v26  ;;  %2207 = vmatpush.msra.mxu3 %v1855_v26 }
  0x82   : > { %366 = vmatmul.f32.gmra.mxu0 %v302_v28  ;;  %414 = vmatmul.f32.gmra.mxu2 %v318_v29 }
  0x8a   : > { %369 = vmatmul.f32.gmra.mxu0 %v303_v30  ;;  %417 = vmatmul.f32.gmra.mxu2 %v319_v31  ;;  %v1854_v31 = vld [vmem:[#allocation7 + $0x8] sm:$0xff] }
  0x8b   : > { %1887 = vmatpush.msra.mxu1 %v1854_v31  ;;  %2208 = vmatpush.msra.mxu3 %v1854_v31 }
  0x92   : > { %372 = vmatmul.f32.gmra.mxu0 %v304_v32  ;;  %420 = vmatmul.f32.gmra.mxu2 %v320_v33 }
  0x9a   : > { %375 = vmatmul.f32.gmra.mxu0 %v305_v34  ;;  %423 = vmatmul.f32.gmra.mxu2 %v321_v35 }
  0xa2   : > { %378 = vmatmul.f32.gmra.mxu0 %v306_v36  ;;  %426 = vmatmul.f32.gmra.mxu2 %v322_v37 }
  0xaa   : > { %381 = vmatmul.f32.gmra.mxu0 %v307_v38  ;;  %429 = vmatmul.f32.gmra.mxu2 %v323_v39  ;;  %v1853_v38 = vld [vmem:[#allocation7] sm:$0xff] }
  0xab   : > { %1888 = vmatpush.msra.mxu1 %v1853_v38  ;;  %2209 = vmatpush.msra.mxu3 %v1853_v38 }
  0xb2   : > { %384 = vmatmul.f32.gmra.mxu0 %v308_v40  ;;  %432 = vmatmul.f32.gmra.mxu2 %v324_v41 }
  0xba   : > { %387 = vmatmul.f32.gmra.mxu0 %v309_v42  ;;  %435 = vmatmul.f32.gmra.mxu2 %v325_v43 }
  0xc2   : > { %390 = vmatmul.f32.gmra.mxu0 %v310_v44  ;;  %438 = vmatmul.f32.gmra.mxu2 %v326_v45 }
  0xca   : > { %393 = vmatmul.f32.gmra.mxu0 %v311_v47  ;;  %441 = vmatmul.f32.gmra.mxu2 %v327_v48 }
  0xcf   : > { %v349_v53 = vpop.f32.mrf.mxu0 }
  0xd0   : > { %v2705_v55 = vadd.f32 %v2702_v51, %v349_v53 }
  0xd2   : > { %v2708_v57 = vmul.f32 0.70710677, %v2705_v55 }
  0xd4   : > { %v509_v59 = vmul.f32 %v2708_v57, %v2708_v57 }
  0xd5   : > { %v397_v60 = vpop.f32.mrf.mxu2 }
  0xd6   : > { %v2712_v62 = vmin.f32 %v509_v59, 16.0  ;;  %v2715_v63 = vadd.f32 %v2702_v51, %v397_v60 }
  0xd7   : > { %v352_v0 = vpop.f32.mrf.mxu0 }
  0xd8   : > { %v2718_v2 = vmul.f32 0.70710677, %v2715_v63  ;;  %v2721_v3 = vadd.f32 %v2702_v51, %v352_v0  ;;  %v522_v4 = vmul.f32 3.8918573e-05, %v2712_v62  ;;  %v511_v14 = vmul.f32 2.1237322e-06, %v2712_v62 }
  0xda   : > { %v1149_v5 = vmul.f32 %v2718_v2, %v2718_v2  ;;  %v2727_v6 = vmul.f32 0.70710677, %v2721_v3  ;;  %v523_v8 = vadd.f32 0.001143296, %v522_v4  ;;  %v512_v25 = vadd.f32 0.00028619796, %v511_v14 }
  0xdc   : > { %v2729_v9 = vmin.f32 %v1149_v5, 16.0  ;;  %v549_v10 = vmul.f32 %v2727_v6, %v2727_v6  ;;  %v524_v13 = vmul.f32 %v523_v8, %v2712_v62  ;;  %v513_v36 = vmul.f32 %v512_v25, %v2712_v62 }
  0xdd   : > { %v400_v12 = vpop.f32.mrf.mxu2 }
  0xde   : > { %v2736_v15 = vadd.f32 %v2702_v51, %v400_v12  ;;  %v1151_v17 = vmul.f32 2.1237322e-06, %v2729_v9  ;;  %v2739_v18 = vmin.f32 %v549_v10, 16.0  ;;  %v525_v20 = vadd.f32 0.014752088, %v524_v13 }
  0xdf   : > { %v355_v19 = vpop.f32.mrf.mxu0  ;;  %v514_v49 = vadd.f32 0.0036580483, %v513_v36 }
  0xe0   : > { %v2742_v22 = vmul.f32 0.70710677, %v2736_v15  ;;  %v2745_v23 = vadd.f32 %v2702_v51, %v355_v19  ;;  %v526_v24 = vmul.f32 %v525_v20, %v2712_v62  ;;  %v1152_v27 = vadd.f32 0.00028619796, %v1151_v17 }
  0xe1   : > { %v551_v28 = vmul.f32 2.1237322e-06, %v2739_v18  ;;  %v515_v4 = vmul.f32 %v514_v49, %v2712_v62  ;;  %v2830_v49 = vmul.f32 0.5, %v2715_v63 }
  0xe2   : > { %v1189_v29 = vmul.f32 %v2742_v22, %v2742_v22  ;;  %v2752_v30 = vmul.f32 0.70710677, %v2745_v23  ;;  %v527_v32 = vadd.f32 0.112945676, %v526_v24  ;;  %v1153_v39 = vmul.f32 %v1152_v27, %v2729_v9 }
  0xe3   : > { %v552_v40 = vadd.f32 0.00028619796, %v551_v28  ;;  %v516_v19 = vadd.f32 0.05243302, %v515_v4 }
  0xe4   : > { %v2754_v33 = vmin.f32 %v1189_v29, 16.0  ;;  %v589_v34 = vmul.f32 %v2752_v30, %v2752_v30  ;;  %v528_v44 = vmul.f32 %v527_v32, %v2712_v62  ;;  %v1154_v50 = vadd.f32 0.0036580483, %v1153_v39 }
  0xe5   : > { %v403_v35 = vpop.f32.mrf.mxu2  ;;  %v553_v52 = vmul.f32 %v552_v40, %v2739_v18  ;;  %v517_v36 = vmul.f32 %v516_v19, %v2712_v62 }
  0xe6   : > { %v2760_v37 = vadd.f32 %v2702_v51, %v403_v35  ;;  %v1191_v41 = vmul.f32 2.1237322e-06, %v2754_v33  ;;  %v2764_v42 = vmin.f32 %v589_v34, 16.0  ;;  %v529_v58 = vadd.f32 0.4994258, %v528_v44 }
  0xe7   : > { %v358_v43 = vpop.f32.mrf.mxu0  ;;  %v1155_v5 = vmul.f32 %v1154_v50, %v2729_v9  ;;  %v554_v7 = vadd.f32 0.0036580483, %v553_v52 }
  0xe8   : > { %v1192_v45 = vadd.f32 0.00028619796, %v1191_v41  ;;  %v591_v46 = vmul.f32 2.1237322e-06, %v2764_v42  ;;  %v2769_v47 = vmul.f32 0.70710677, %v2760_v37  ;;  %v2772_v48 = vadd.f32 %v2702_v51, %v358_v43 }
  0xe9   : > { %v530_v11 = vmul.f32 %v529_v58, %v2712_v62  ;;  %v1156_v20 = vadd.f32 0.05243302, %v1155_v5  ;;  %v555_v21 = vmul.f32 %v554_v7, %v2739_v18 }
  0xea   : > { %v1229_v53 = vmul.f32 %v2769_v47, %v2769_v47  ;;  %v1193_v54 = vmul.f32 %v1192_v45, %v2754_v33  ;;  %v2779_v56 = vmul.f32 0.70710677, %v2772_v48  ;;  %v592_v59 = vadd.f32 0.00028619796, %v591_v46 }
  0xeb   : > { %v2808_v27 = vadd.f32 1.0, %v530_v11  ;;  %v1157_v38 = vmul.f32 %v1156_v20, %v2729_v9  ;;  %v556_v39 = vadd.f32 0.05243302, %v555_v21  ;;  %v2827_v46 = vmul.f32 0.5, %v2705_v55 }
  0xec   : > { %v2781_v61 = vmin.f32 %v1229_v53, 16.0  ;;  %v629_v0 = vmul.f32 %v2779_v56, %v2779_v56  ;;  %v1194_v10 = vadd.f32 0.0036580483, %v1193_v54  ;;  %v593_v12 = vmul.f32 %v592_v59, %v2764_v42 }
  0xed   : > { %v406_v60 = vpop.f32.mrf.mxu2  ;;  %2283 = vrcp.f32 %v2808_v27  ;;  %v518_v59 = vadd.f32 0.18741608, %v517_v36  ;;  %v557_v55 = vmul.f32 %v556_v39, %v2739_v18  ;;  %v2869_v36 = vmul.f32 3.8918573e-05, %v2729_v9 }
  0xee   : > { %v2786_v1 = vadd.f32 %v2702_v51, %v406_v60  ;;  %v1231_v14 = vmul.f32 2.1237322e-06, %v2781_v61  ;;  %v2796_v16 = vmin.f32 %v629_v0, 16.0  ;;  %v1195_v25 = vmul.f32 %v1194_v10, %v2754_v33 }
  0xef   : > { %v361_v8 = vpop.f32.mrf.mxu0  ;;  %v594_v28 = vadd.f32 0.0036580483, %v593_v12  ;;  %v2840_v60 = vmul.f32 0.5, %v2721_v3  ;;  %v1158_v0 = vadd.f32 0.18741608, %v1157_v38  ;;  %v2852_v10 = vmul.f32 0.5, %v2745_v23 }
  0xf0   : > { %v2793_v13 = vmul.f32 0.70710677, %v2786_v1  ;;  %v2799_v17 = vadd.f32 %v2702_v51, %v361_v8  ;;  %v1232_v31 = vadd.f32 0.00028619796, %v1231_v14  ;;  %v631_v32 = vmul.f32 2.1237322e-06, %v2796_v16 }
  0xf1   : > { %v1196_v43 = vadd.f32 0.05243302, %v1195_v25  ;;  %v595_v50 = vmul.f32 %v594_v28, %v2764_v42  ;;  %v2849_v8 = vmul.f32 0.5, %v2736_v15  ;;  %v519_v15 = vmul.f32 %v518_v59, %v2712_v62 }
  0xf2   : > { %v1269_v24 = vmul.f32 %v2793_v13, %v2793_v13  ;;  %v2806_v26 = vmul.f32 0.70710677, %v2799_v17  ;;  %v1233_v52 = vmul.f32 %v1232_v31, %v2781_v61  ;;  %v632_v53 = vadd.f32 0.00028619796, %v631_v32 }
  0xf3   : > { %v1197_v4 = vmul.f32 %v1196_v43, %v2754_v33  ;;  %v596_v11 = vadd.f32 0.05243302, %v595_v50  ;;  %v2857_v14 = vpop.eup %2283  ;;  %v558_v25 = vadd.f32 0.18741608, %v557_v55  ;;  %v1159_v31 = vmul.f32 %v1158_v0, %v2729_v9 }
  0xf4   : > { %v669_v34 = vmul.f32 %v2806_v26, %v2806_v26  ;;  %v2818_v40 = vmin.f32 %v1269_v24, 16.0  ;;  %v1234_v19 = vadd.f32 0.0036580483, %v1233_v52  ;;  %v633_v20 = vmul.f32 %v632_v53, %v2796_v16 }
  0xf5   : > { %v409_v29 = vpop.f32.mrf.mxu2  ;;  %v1198_v32 = vadd.f32 0.18741608, %v1197_v4  ;;  %v597_v38 = vmul.f32 %v596_v11, %v2764_v42  ;;  %v2873_v39 = vmul.f32 0.5, %v2760_v37  ;;  %v559_v59 = vmul.f32 %v558_v25, %v2739_v18 }
  0xf6   : > { %v2814_v35 = vadd.f32 %v2702_v51, %v409_v29  ;;  %v2820_v44 = vmin.f32 %v669_v34, 16.0  ;;  %v1271_v63 = vmul.f32 2.1237322e-06, %v2818_v40  ;;  %v1235_v43 = vmul.f32 %v1234_v19, %v2781_v61 }
  0xf7   : > { %v364_v41 = vpop.f32.mrf.mxu0  ;;  %v634_v50 = vadd.f32 0.0036580483, %v633_v20  ;;  %v1199_v0 = vmul.f32 %v1198_v32, %v2754_v33  ;;  %v598_v11 = vadd.f32 0.18741608, %v597_v38  ;;  %vm538_vm0 = vweird.f32 %v2857_v14 }
  0xf8   : > { %v2823_v45 = vmul.f32 0.70710677, %v2814_v35  ;;  %v2837_v58 = vadd.f32 %v2702_v51, %v364_v41  ;;  %v671_v5 = vmul.f32 2.1237322e-06, %v2820_v44  ;;  %v1272_v23 = vadd.f32 0.00028619796, %v1271_v63 }
  0xf9   : > { %v533_v41 = vmul.f32 %v2857_v14, %v2808_v27  ;;  %v1160_v63 = vadd.f32 1.1283791, %v1159_v31  ;;  %vm537_vm1 = vweird.f32 %v2808_v27 }
  0xfa   : > { %v1309_v54 = vmul.f32 %v2823_v45, %v2823_v45  ;;  %v2855_v3 = vmul.f32 0.70710677, %v2837_v58  ;;  %v672_v34 = vadd.f32 0.00028619796, %v671_v5  ;;  %v1273_v55 = vmul.f32 %v1272_v23, %v2818_v40  ;;  %vm2948_vm2 = vmor %vm537_vm1, %vm538_vm0 }
  0xfb   : > { %v534_v20 = vsub.f32 1.0, %v533_v41  ;;  %v2908_v41 = vmul.f32 %v1160_v63, %v2718_v2  ;;  %v2921_v63 = vmul.f32 0.5, %v2799_v17 }
  0xfc   : > { %v2846_v7 = vmin.f32 %v1309_v54, 16.0  ;;  %v709_v28 = vmul.f32 %v2855_v3, %v2855_v3  ;;  %v520_v54 = vadd.f32 1.1283791, %v519_v15  ;;  %v673_v4 = vmul.f32 %v672_v34, %v2820_v44 }
  0xfd   : > { %v412_v12 = vpop.f32.mrf.mxu2  ;;  %v635_v15 = vmul.f32 %v634_v50, %v2796_v16  ;;  %v1200_v34 = vadd.f32 1.1283791, %v1199_v0  ;;  %4108 = vst [vmem:[#allocation14_spill] sm:$0xff] %v2921_v63 }
  0xfe   : > { %v1311_v21 = vmul.f32 2.1237322e-06, %v2846_v7  ;;  %v2862_v24 = vadd.f32 %v2702_v51, %v412_v12  ;;  %v2886_v37 = vmin.f32 %v709_v28, 16.0  ;;  %v2893_v12 = vmul.f32 0.5, %v2772_v48 }
  0xff   : > { %v367_v29 = vpop.f32.mrf.mxu0  ;;  %v560_v28 = vadd.f32 1.1283791, %v559_v59  ;;  %v521_v32 = vmul.f32 %v520_v54, %v2708_v57  ;;  %v2905_v48 = vmul.f32 0.5, %v2786_v1  ;;  %v674_v38 = vadd.f32 0.0036580483, %v673_v4 }
 0x100   : > { %v2876_v62 = vadd.f32 %v2702_v51, %v367_v29  ;;  %v1312_v52 = vadd.f32 0.00028619796, %v1311_v21  ;;  %v2882_v53 = vmul.f32 0.70710677, %v2862_v24  ;;  %4106 = vst [vmem:[#allocation12_spill] sm:$0xff] %v2893_v12  ;;  %v535_v59 = vmul.f32 %v2857_v14, %v534_v20 }
 0x101   : > { %v1236_v21 = vadd.f32 0.05243302, %v1235_v43  ;;  %v1274_v29 = vadd.f32 0.0036580483, %v1273_v55  ;;  %v711_v31 = vmul.f32 2.1237322e-06, %v2886_v37  ;;  %v599_v55 = vmul.f32 %v598_v11, %v2764_v42 }
 0x102   : > { %v1349_v5 = vmul.f32 %v2882_v53, %v2882_v53  ;;  %v2896_v19 = vmul.f32 0.70710677, %v2876_v62  ;;  %v1313_v25 = vmul.f32 %v1312_v52, %v2846_v7  ;;  %4107 = vst [vmem:[#allocation13_spill] sm:$0xff] %v2905_v48  ;;  %v636_v54 = vadd.f32 0.05243302, %v635_v15 }
 0x103   : > { %v1237_v57 = vmul.f32 %v1236_v21, %v2781_v61  ;;  %v2917_v1 = vmul.f32 %v560_v28, %v2727_v6  ;;  %v1275_v2 = vmul.f32 %v1274_v29, %v2818_v40  ;;  %v712_v4 = vadd.f32 0.00028619796, %v711_v31 }
 0x104   : > { %v2900_v23 = vmin.f32 %v1349_v5, 16.0  ;;  %v749_v50 = vmul.f32 %v2896_v19, %v2896_v19  ;;  %v1314_v0 = vadd.f32 0.0036580483, %v1313_v25  ;;  %v2924_v5 = vmul.f32 %v1200_v34, %v2742_v22 }
 0x105   : > { %v415_v52 = vpop.f32.mrf.mxu2  ;;  %v675_v20 = vmul.f32 %v674_v38, %v2820_v44  ;;  %v2928_v11 = vmul.f32 0.5, %v2814_v35  ;;  %v536_v25 = vadd.f32 %v2857_v14, %v535_v59  ;;  %v600_v17 = vadd.f32 1.1283791, %v599_v55 }
 0x106   : > { %v1351_v43 = vmul.f32 2.1237322e-06, %v2900_v23  ;;  %v2931_v21 = vadd.f32 %v2702_v51, %v415_v52  ;;  %v2933_v6 = vmin.f32 %v749_v50, 16.0  ;;  %v1238_v28 = vadd.f32 0.18741608, %v1237_v57 }
 0x107   : > { %4109 = vst [vmem:[#allocation15_spill] sm:$0xff] %v2928_v11  ;;  %v637_v22 = vmul.f32 %v636_v54, %v2796_v16  ;;  %v1315_v29 = vmul.f32 %v1314_v0, %v2846_v7  ;;  %v1276_v31 = vadd.f32 0.05243302, %v1275_v2  ;;  %v713_v35 = vmul.f32 %v712_v4, %v2886_v37  ;;  %v370_v38 = vpop.f32.mrf.mxu0 }
 0x108   : > { %v1352_v15 = vadd.f32 0.00028619796, %v1351_v43  ;;  %v541_v34 = vand.u32 2147483647, %v2808_v27  ;;  %v676_v43 = vadd.f32 0.05243302, %v675_v20  ;;  %v540_v0 = vsel %vm2948_vm2, %v2857_v14, %v536_v25 }
 0x109   : > { %v2943_v50 = vmul.f32 0.5, %v2837_v58  ;;  %v2946_v52 = vmul.f32 0.70710677, %v2931_v21  ;;  %v543_v55 = vand.u32 2147483648, %v2808_v27  ;;  %v751_v54 = vmul.f32 2.1237322e-06, %v2933_v6 }
 0x10a   : > { %v1353_v57 = vmul.f32 %v1352_v15, %v2900_v23  ;;  %v1163_v58 = vadd.f32 0.001143296, %v2869_v36  ;;  %v638_v2 = vadd.f32 0.18741608, %v637_v22  ;;  %v1316_v4 = vadd.f32 0.05243302, %v1315_v29 }
 0x10b   : > { %4110 = vst [vmem:[#allocation16_spill] sm:$0xff] %v2943_v50  ;;  %v544_v20 = vor.u32 1.1754944e-38, %v543_v55  ;;  %v2960_v50 = vadd.f32 %v2702_v51, %v370_v38  ;;  %v1239_v11 = vmul.f32 %v1238_v28, %v2781_v61  ;;  %v1277_v27 = vmul.f32 %v1276_v31, %v2818_v40 }
 0x10c   : > { %v714_v63 = vadd.f32 0.0036580483, %v713_v35  ;;  %vm542_vm3 = vcmp.eq.f32.partialorder %v541_v34, 8.507059e+37  ;;  %v677_v15 = vmul.f32 %v676_v43, %v2820_v44  ;;  %v1389_v59 = vmul.f32 %v2946_v52, %v2946_v52 }
 0x10d   : > { %v545_v14 = vsel %vm542_vm3, %v544_v20, %v540_v0  ;;  %v1164_v36 = vmul.f32 %v1163_v58, %v2729_v9  ;;  %v2969_v25 = vmul.f32 %v600_v17, %v2752_v30  ;;  %v1354_v22 = vadd.f32 0.0036580483, %v1353_v57 }
 0x10e   : > { %v752_v29 = vadd.f32 0.00028619796, %v751_v54  ;;  %v546_v38 = vmul.f32 %v545_v14, %v521_v32  ;;  %v639_v28 = vmul.f32 %v638_v2, %v2796_v16  ;;  %v1317_v31 = vmul.f32 %v1316_v4, %v2846_v7 }
 0x10f   : > { %v2974_v35 = vmul.f32 0.70710677, %v2960_v50  ;;  %v1165_v34 = vadd.f32 0.014752088, %v1164_v36  ;;  %v1240_v43 = vadd.f32 1.1283791, %v1239_v11  ;;  %v715_v0 = vmul.f32 %v714_v63, %v2886_v37 }
 0x110   : > { %v1278_v55 = vadd.f32 0.18741608, %v1277_v27  ;;  %v2139_v20 = vclamps-f32 %v546_v38, 1.0  ;;  %v678_v58 = vadd.f32 0.18741608, %v677_v15  ;;  %v2977_v48 = vmin.f32 %v1389_v59, 16.0 }
 0x111   : > { %v1166_v30 = vmul.f32 %v1165_v34, %v2729_v9  ;;  %v562_v32 = vmul.f32 3.8918573e-05, %v2739_v18  ;;  %v2982_v17 = vmul.f32 0.5, %v2862_v24  ;;  %v1355_v57 = vmul.f32 %v1354_v22, %v2900_v23  ;;  %v418_v34 = vpop.f32.mrf.mxu2 }
 0x112   : > { %v753_v54 = vmul.f32 %v752_v29, %v2933_v6  ;;  %v1789_v2 = vadd.f32 1.0, %v2139_v20  ;;  %v640_v11 = vadd.f32 1.1283791, %v639_v28  ;;  %v1318_v4 = vadd.f32 0.18741608, %v1317_v31 }
 0x113   : > { %4113 = vst [vmem:[#allocation17_spill] sm:$0xff] %v2982_v17  ;;  %v789_v63 = vmul.f32 %v2974_v35, %v2974_v35  ;;  %v1167_v27 = vadd.f32 0.112945676, %v1166_v30  ;;  %v1279_v15 = vmul.f32 %v1278_v55, %v2818_v40  ;;  %v716_v59 = vadd.f32 0.05243302, %v715_v0 }
 0x114   : > { %v1821_v14 = vmul.f32 %v1789_v2, %v2827_v46  ;;  %v563_v36 = vadd.f32 0.001143296, %v562_v32  ;;  %v679_v24 = vmul.f32 %v678_v58, %v2820_v44  ;;  %v1391_v38 = vmul.f32 2.1237322e-06, %v2977_v48 }
 0x115   : > { %v1168_v22 = vmul.f32 %v1167_v27, %v2729_v9  ;;  %v1202_v29 = vmul.f32 3.8918573e-05, %v2754_v33  ;;  %v1356_v28 = vadd.f32 0.05243302, %v1355_v57  ;;  %v754_v31 = vadd.f32 0.0036580483, %v753_v54 }
 0x116   : > { %1889 = vmatmul.f32.vlgmr.msra.gmra.mxu1 %v1821_v14  ;;  %v564_v20 = vmul.f32 %v563_v36, %v2739_v18  ;;  %v602_v55 = vmul.f32 3.8918573e-05, %v2764_v42  ;;  %v1319_v0 = vmul.f32 %v1318_v4, %v2846_v7  ;;  %v2997_v46 = vmin.f32 %v789_v63, 16.0 }
 0x117   : > { %v1169_v30 = vadd.f32 0.4994258, %v1168_v22  ;;  %v1203_v58 = vadd.f32 0.001143296, %v1202_v29  ;;  %v1280_v32 = vadd.f32 1.1283791, %v1279_v15  ;;  %v717_v2 = vmul.f32 %v716_v59, %v2886_v37 }
 0x118   : > { %v565_v27 = vadd.f32 0.014752088, %v564_v20  ;;  %v603_v17 = vadd.f32 0.001143296, %v602_v55  ;;  %v680_v12 = vadd.f32 1.1283791, %v679_v24  ;;  %v3002_v14 = vadd.f32 %v2702_v51, %v418_v34 }
 0x119   : > { %v1392_v57 = vadd.f32 0.00028619796, %v1391_v38  ;;  %v1170_v54 = vmul.f32 %v1169_v30, %v2729_v9  ;;  %v1357_v36 = vmul.f32 %v1356_v28, %v2900_v23  ;;  %v755_v4 = vmul.f32 %v754_v31, %v2933_v6 }
 0x11a   : > { %v566_v63 = vmul.f32 %v565_v27, %v2739_v18  ;;  %v1204_v22 = vmul.f32 %v1203_v58, %v2754_v33  ;;  %v3009_v15 = vmul.f32 %v1240_v43, %v2769_v47  ;;  %v1320_v59 = vadd.f32 1.1283791, %v1319_v0 }
 0x11b   : > { %v791_v24 = vmul.f32 2.1237322e-06, %v2997_v46  ;;  %v3012_v38 = vadd.f32 1.0, %v1170_v54  ;;  %v718_v9 = vadd.f32 0.18741608, %v717_v2  ;;  %v604_v20 = vmul.f32 %v603_v17, %v2764_v42 }
 0x11c   : > { %v567_v29 = vadd.f32 0.112945676, %v566_v63  ;;  %v1205_v34 = vadd.f32 0.014752088, %v1204_v22  ;;  %v3016_v28 = vmul.f32 %v640_v11, %v2779_v56  ;;  %v3019_v31 = vmul.f32 0.5, %v2876_v62 }
 0x11d   : > { %2285 = vrcp.f32 %v3012_v38  ;;  %v3023_v47 = vmul.f32 0.70710677, %v3002_v14  ;;  %v1358_v43 = vadd.f32 0.18741608, %v1357_v36  ;;  %v756_v55 = vadd.f32 0.05243302, %v755_v4 }
 0x11e   : > { %4114 = vst [vmem:[#allocation18_spill] sm:$0xff] %v3019_v31  ;;  %v1393_v0 = vmul.f32 %v1392_v57, %v2977_v48  ;;  %v568_v30 = vmul.f32 %v567_v29, %v2739_v18  ;;  %v3028_v58 = vmul.f32 %v1280_v32, %v2793_v13  ;;  %v3031_v56 = vmul.f32 0.5, %v2931_v21  ;;  %v373_v57 = vpop.f32.mrf.mxu0 }
 0x11f   : > { %v792_v17 = vadd.f32 0.00028619796, %v791_v24  ;;  %v1206_v62 = vmul.f32 %v1205_v34, %v2754_v33  ;;  %v3035_v11 = vmul.f32 %v680_v12, %v2806_v26  ;;  %v3038_v2 = vmul.f32 %v1320_v59, %v2823_v45 }
 0x120   : > { %4115 = vst [vmem:[#allocation19_spill] sm:$0xff] %v3031_v56  ;;  %v719_v27 = vmul.f32 %v718_v9, %v2886_v37  ;;  %v605_v54 = vadd.f32 0.014752088, %v604_v20  ;;  %v1429_v13 = vmul.f32 %v3023_v47, %v3023_v47  ;;  %v569_v32 = vadd.f32 0.4994258, %v568_v30 }
 0x121   : > { %v3044_v21 = vadd.f32 %v2702_v51, %v373_v57  ;;  %v1207_v36 = vadd.f32 0.112945676, %v1206_v62  ;;  %v1359_v4 = vmul.f32 %v1358_v43, %v2900_v23  ;;  %v757_v26 = vmul.f32 %v756_v55, %v2933_v6 }
 0x122   : > { %v1394_v12 = vadd.f32 0.0036580483, %v1393_v0  ;;  %v3049_v45 = vmul.f32 0.5, %v2960_v50  ;;  %v793_v22 = vmul.f32 %v792_v17, %v2997_v46  ;;  %v570_v59 = vmul.f32 %v569_v32, %v2739_v18 }
 0x123   : > { %v2286_v63 = vpop.eup %2285  ;;  %v3054_v24 = vmul.f32 0.70710677, %v3044_v21  ;;  %v1208_v9 = vmul.f32 %v1207_v36, %v2754_v33  ;;  %v720_v29 = vadd.f32 1.1283791, %v719_v27  ;;  %v606_v20 = vmul.f32 %v605_v54, %v2764_v42 }
 0x124   : > { %4116 = vst [vmem:[#allocation20_spill] sm:$0xff] %v3049_v45  ;;  %v1173_v34 = vmul.f32 %v2286_v63, %v3012_v38  ;;  %v1242_v43 = vmul.f32 3.8918573e-05, %v2781_v61  ;;  %v3060_v55 = vmin.f32 %v1429_v13, 16.0  ;;  %v3062_v50 = vadd.f32 1.0, %v570_v59  ;;  %v421_v59 = vpop.f32.mrf.mxu2 }
 0x125   : > { %v829_v0 = vmul.f32 %v3054_v24, %v3054_v24  ;;  %v1209_v18 = vadd.f32 0.4994258, %v1208_v9  ;;  %v1360_v30 = vadd.f32 1.1283791, %v1359_v4  ;;  %v758_v17 = vadd.f32 0.18741608, %v757_v26 }
 0x126   : > { %v1395_v62 = vmul.f32 %v1394_v12, %v2977_v48  ;;  %v1174_v57 = vsub.f32 1.0, %v1173_v34  ;;  %v794_v27 = vadd.f32 0.0036580483, %v793_v22  ;;  %v1181_v32 = vand.u32 2147483647, %v3012_v38 }
 0x127   : > { %v1183_v54 = vand.u32 2147483648, %v3012_v38  ;;  %2287 = vrcp.f32 %v3062_v50  ;;  %vm1178_vm4 = vweird.f32 %v2286_v63  ;;  %v1210_v36 = vmul.f32 %v1209_v18, %v2754_v33 }
 0x128   : > { %v1175_v13 = vmul.f32 %v2286_v63, %v1174_v57  ;;  %v607_v45 = vadd.f32 0.112945676, %v606_v20  ;;  %v3072_v9 = vmul.f32 %v720_v29, %v2855_v3  ;;  %v1431_v4 = vmul.f32 2.1237322e-06, %v3060_v55 }
 0x129   : > { %v3075_v26 = vmin.f32 %v829_v0, 16.0  ;;  %v1243_v12 = vadd.f32 0.001143296, %v1242_v43  ;;  %v759_v22 = vmul.f32 %v758_v17, %v2933_v6  ;;  %vm1177_vm5 = vweird.f32 %v3012_v38 }
 0x12a   : > { %v1176_v34 = vadd.f32 %v2286_v63, %v1175_v13  ;;  %v3079_v56 = vadd.f32 1.0, %v1210_v36  ;;  %v1396_v57 = vadd.f32 0.05243302, %v1395_v62  ;;  %v795_v33 = vmul.f32 %v794_v27, %v2997_v46  ;;  %vm1179_vm6 = vmor %vm1177_vm5, %vm1178_vm4 }
 0x12b   : > { %v1184_v20 = vor.u32 1.1754944e-38, %v1183_v54  ;;  %v3083_v3 = vadd.f32 %v2702_v51, %v421_v59  ;;  %vm1182_vm7 = vcmp.eq.f32.partialorder %v1181_v32, 8.507059e+37  ;;  %v608_v43 = vmul.f32 %v607_v45, %v2764_v42 }
 0x12c   : > { %v1180_v29 = vsel %vm1179_vm6, %v2286_v63, %v1176_v34  ;;  %2289 = vrcp.f32 %v3079_v56  ;;  %v1432_v17 = vadd.f32 0.00028619796, %v1431_v4  ;;  %v831_v38 = vmul.f32 2.1237322e-06, %v3075_v26 }
 0x12d   : > { %v2288_v0 = vpop.eup %2287  ;;  %v1185_v18 = vsel %vm1182_vm7, %v1184_v20, %v1180_v29  ;;  %v1244_v62 = vmul.f32 %v1243_v12, %v2781_v61  ;;  %v3090_v27 = vmul.f32 %v1360_v30, %v2882_v53  ;;  %v760_v54 = vadd.f32 1.1283791, %v759_v22 }
 0x12e   : > { %v1186_v13 = vmul.f32 %v1185_v18, %v2908_v41  ;;  %v573_v63 = vmul.f32 %v2288_v0, %v3062_v50  ;;  %v1397_v32 = vmul.f32 %v1396_v57, %v2977_v48  ;;  %v796_v36 = vadd.f32 0.05243302, %v795_v33 }
 0x12f   : > { %4117 = vst [vmem:[#allocation21_spill] sm:$0xff] %v3090_v27  ;;  %v581_v45 = vand.u32 2147483647, %v3062_v50  ;;  %v3097_v59 = vmul.f32 0.70710677, %v3083_v3  ;;  %v583_v12 = vand.u32 2147483648, %v3062_v50  ;;  %v1433_v53 = vmul.f32 %v1432_v17, %v3060_v55 }
 0x130   : > { %v2155_v4 = vclamps-f32 %v1186_v13, 1.0  ;;  %v574_v34 = vsub.f32 1.0, %v573_v63  ;;  %v609_v20 = vadd.f32 0.4994258, %v608_v43  ;;  %v832_v30 = vadd.f32 0.00028619796, %v831_v38 }
 0x131   : > { %v1245_v22 = vadd.f32 0.014752088, %v1244_v62  ;;  %v642_v41 = vmul.f32 3.8918573e-05, %v2796_v16  ;;  %vm578_vm8 = vweird.f32 %v2288_v0  ;;  %vm577_vm9 = vweird.f32 %v3062_v50 }
 0x132   : > { %v2290_v29 = vpop.eup %2289  ;;  %v1805_v18 = vadd.f32 1.0, %v2155_v4  ;;  %v575_v57 = vmul.f32 %v2288_v0, %v574_v34  ;;  %v610_v33 = vmul.f32 %v609_v20, %v2764_v42  ;;  %vm3104_vm10 = vcmp.eq.f32.partialorder %v581_v45, 8.507059e+37  ;;  %vm579_vm11 = vmor %vm577_vm9, %vm578_vm8 }
 0x133   : > { %v1213_v43 = vmul.f32 %v2290_v29, %v3079_v56  ;;  %v1469_v17 = vmul.f32 %v3097_v59, %v3097_v59  ;;  %v584_v63 = vor.u32 1.1754944e-38, %v583_v12  ;;  %v1221_v42 = vand.u32 2147483647, %v3079_v56 }
 0x134   : > { %v1837_v38 = vmul.f32 %v1805_v18, %v2830_v49  ;;  %v576_v62 = vadd.f32 %v2288_v0, %v575_v57  ;;  %v3112_v4 = vadd.f32 1.0, %v610_v33  ;;  %v1246_v50 = vmul.f32 %v1245_v22, %v2781_v61  ;;  %v376_v57 = vpop.f32.mrf.mxu0 }
 0x135   : > { %v1214_v34 = vsub.f32 1.0, %v1213_v43  ;;  %v643_v45 = vadd.f32 0.001143296, %v642_v41  ;;  %v833_v31 = vmul.f32 %v832_v30, %v3075_v26  ;;  %v1223_v27 = vand.u32 2147483648, %v3079_v56 }
 0x136   : > { %1937 = vmatmul.f32.vlgmr.msra.gmra.mxu3 %v1837_v38  ;;  %v580_v20 = vsel %vm579_vm11, %v2288_v0, %v576_v62  ;;  %2291 = vrcp.f32 %v3112_v4  ;;  %vm1218_vm12 = vweird.f32 %v2290_v29  ;;  %v3121_v18 = vmin.f32 %v1469_v17, 16.0 }
 0x137   : > { %v585_v49 = vsel %vm3104_vm10, %v584_v63, %v580_v20  ;;  %v1215_v12 = vmul.f32 %v2290_v29, %v1214_v34  ;;  %v1398_v33 = vadd.f32 0.18741608, %v1397_v32  ;;  %v797_v22 = vmul.f32 %v796_v36, %v2997_v46 }
 0x138   : > { %v1434_v41 = vadd.f32 0.0036580483, %v1433_v53  ;;  %v586_v0 = vmul.f32 %v585_v49, %v2917_v1  ;;  %vm1217_vm13 = vweird.f32 %v3079_v56  ;;  %vm1222_vm14 = vcmp.eq.f32.partialorder %v1221_v42, 8.507059e+37 }
 0x139   : > { %v1216_v43 = vadd.f32 %v2290_v29, %v1215_v12  ;;  %v1247_v30 = vadd.f32 0.112945676, %v1246_v50  ;;  %vm1219_vm15 = vmor %vm1217_vm13, %vm1218_vm12  ;;  %v1224_v13 = vor.u32 1.1754944e-38, %v1223_v27  ;;  %v3127_v62 = vadd.f32 %v2702_v51, %v376_v57 }
 0x13a   : > { %v2140_v38 = vclamps-f32 %v586_v0, 1.0  ;;  %v644_v17 = vmul.f32 %v643_v45, %v2796_v16  ;;  %v834_v63 = vadd.f32 0.0036580483, %v833_v31  ;;  %v1471_v36 = vmul.f32 2.1237322e-06, %v3121_v18  ;;  %v424_v31 = vpop.f32.mrf.mxu2 }
 0x13b   : > { %v1220_v32 = vsel %vm1219_vm15, %v2290_v29, %v1216_v43  ;;  %v1248_v53 = vmul.f32 %v1247_v30, %v2781_v61  ;;  %v3133_v34 = vmul.f32 %v760_v54, %v2896_v19  ;;  %v1399_v27 = vmul.f32 %v1398_v33, %v2977_v48 }
 0x13c   : > { %v2292_v1 = vpop.eup %2291  ;;  %v1790_v56 = vadd.f32 1.0, %v2140_v38  ;;  %v1225_v42 = vsel %vm1222_vm14, %v1224_v13, %v1220_v32  ;;  %v645_v50 = vadd.f32 0.014752088, %v644_v17  ;;  %v798_v20 = vadd.f32 0.18741608, %v797_v22 }
 0x13d   : > { %v1226_v49 = vmul.f32 %v1225_v42, %v2924_v5  ;;  %v613_v45 = vmul.f32 %v2292_v1, %v3112_v4  ;;  %v1435_v29 = vmul.f32 %v1434_v41, %v3060_v55  ;;  %v3141_v57 = vmul.f32 0.70710677, %v3127_v62 }
 0x13e   : > { %v1822_v12 = vmul.f32 %v1790_v56, %v2840_v60  ;;  %v1249_v19 = vadd.f32 0.4994258, %v1248_v53  ;;  %v835_v54 = vmul.f32 %v834_v63, %v3075_v26  ;;  %v1472_v43 = vadd.f32 0.00028619796, %v1471_v36 }
 0x13f   : > { %v2156_v0 = vclamps-f32 %v1226_v49, 1.0  ;;  %v614_v30 = vsub.f32 1.0, %v613_v45  ;;  %v623_v33 = vand.u32 2147483648, %v3112_v4  ;;  %v3147_v22 = vadd.f32 %v2702_v51, %v424_v31 }
 0x140   : > { %1892 = vmatmul.f32.gmra.mxu1 %v1822_v12  ;;  %v1250_v5 = vmul.f32 %v1249_v19, %v2781_v61  ;;  %v646_v41 = vmul.f32 %v645_v50, %v2796_v16  ;;  %vm618_vm0 = vweird.f32 %v2292_v1  ;;  %v621_v13 = vand.u32 2147483647, %v3112_v4 }
 0x141   : > { %v1806_v60 = vadd.f32 1.0, %v2156_v0  ;;  %v615_v38 = vmul.f32 %v2292_v1, %v614_v30  ;;  %vm617_vm1 = vweird.f32 %v3112_v4  ;;  %v869_v17 = vmul.f32 %v3141_v57, %v3141_v57 }
 0x142   : > { %v3154_v63 = vadd.f32 1.0, %v1250_v5  ;;  %v3157_v32 = vmul.f32 0.70710677, %v3147_v22  ;;  %v647_v53 = vadd.f32 0.112945676, %v646_v41  ;;  %v3162_v50 = vmul.f32 0.5, %v3002_v14  ;;  %vm619_vm2 = vmor %vm617_vm1, %vm618_vm0 }
 0x143   : > { %v1838_v61 = vmul.f32 %v1806_v60, %v2849_v8  ;;  %v616_v36 = vadd.f32 %v2292_v1, %v615_v38  ;;  %v1282_v56 = vmul.f32 3.8918573e-05, %v2818_v40  ;;  %v1400_v42 = vadd.f32 1.1283791, %v1399_v27 }
 0x144   : > { %v624_v4 = vor.u32 1.1754944e-38, %v623_v33  ;;  %2293 = vrcp.f32 %v3154_v63  ;;  %v799_v49 = vmul.f32 %v798_v20, %v2997_v46  ;;  %vm622_vm3 = vcmp.eq.f32.partialorder %v621_v13, 8.507059e+37  ;;  %v379_v33 = vpop.f32.mrf.mxu0 }
 0x145   : > { %1940 = vmatmul.f32.gmra.mxu3 %v1838_v61  ;;  %v620_v45 = vsel %vm619_vm2, %v2292_v1, %v616_v36  ;;  %v1509_v8 = vmul.f32 %v3157_v32, %v3157_v32  ;;  %v1436_v31 = vadd.f32 0.05243302, %v1435_v29  ;;  %v836_v12 = vadd.f32 0.05243302, %v835_v54 }
 0x146   : > { %v625_v19 = vsel %vm622_vm3, %v624_v4, %v620_v45  ;;  %v648_v27 = vmul.f32 %v647_v53, %v2796_v16  ;;  %v1473_v14 = vmul.f32 %v1472_v43, %v3121_v18  ;;  %v3171_v30 = vmin.f32 %v869_v17, 16.0 }
 0x147   : > { %v626_v0 = vmul.f32 %v625_v19, %v2969_v25  ;;  %v1283_v5 = vadd.f32 0.001143296, %v1282_v56  ;;  %v3174_v20 = vmul.f32 %v1400_v42, %v2946_v52  ;;  %v3177_v1 = vmul.f32 0.5, %v3044_v21 }
 0x148   : > { %v649_v41 = vadd.f32 0.4994258, %v648_v27  ;;  %v3180_v29 = vadd.f32 %v2702_v51, %v379_v33  ;;  %v3182_v60 = vmin.f32 %v1509_v8, 16.0  ;;  %v682_v25 = vmul.f32 3.8918573e-05, %v2820_v44 }
 0x149   : > { %4120 = vst [vmem:[#allocation22_spill] sm:$0xff] %v3177_v1  ;;  %v2141_v54 = vclamps-f32 %v626_v0, 1.0  ;;  %v1284_v43 = vmul.f32 %v1283_v5, %v2818_v40  ;;  %v3186_v13 = vadd.f32 1.1283791, %v799_v49  ;;  %v1437_v52 = vmul.f32 %v1436_v31, %v3060_v55 }
 0x14a   : > { %v2294_v38 = vpop.eup %2293  ;;  %v837_v17 = vmul.f32 %v836_v12, %v3075_v26  ;;  %v650_v21 = vmul.f32 %v649_v41, %v2796_v16  ;;  %v1474_v61 = vadd.f32 0.0036580483, %v1473_v14  ;;  %v871_v51 = vmul.f32 2.1237322e-06, %v3171_v30 }
 0x14b   : > { %v1791_v36 = vadd.f32 1.0, %v2141_v54  ;;  %v1253_v53 = vmul.f32 %v2294_v38, %v3154_v63  ;;  %v1263_v56 = vand.u32 2147483648, %v3154_v63  ;;  %v3197_v4 = vmul.f32 0.70710677, %v3180_v29 }
 0x14c   : > { %v3194_v42 = vadd.f32 1.0, %v650_v21  ;;  %v1285_v49 = vadd.f32 0.014752088, %v1284_v43  ;;  %v1511_v31 = vmul.f32 2.1237322e-06, %v3182_v60  ;;  %v1475_v14 = vmul.f32 %v1474_v61, %v3121_v18 }
 0x14d   : > { %v1823_v45 = vmul.f32 %v1791_v36, %v2852_v10  ;;  %v1254_v8 = vsub.f32 1.0, %v1253_v53  ;;  %v683_v16 = vadd.f32 0.001143296, %v682_v25  ;;  %v1438_v12 = vadd.f32 0.18741608, %v1437_v52 }
 0x14e   : > { %v838_v19 = vadd.f32 0.18741608, %v837_v17  ;;  %2295 = vrcp.f32 %v3194_v42  ;;  %v1322_v27 = vmul.f32 3.8918573e-05, %v2846_v7  ;;  %vm1258_vm4 = vweird.f32 %v2294_v38 }
 0x14f   : > { %1895 = vmatmul.f32.gmra.mxu1 %v1823_v45  ;;  %v1255_v0 = vmul.f32 %v2294_v38, %v1254_v8  ;;  %v1261_v33 = vand.u32 2147483647, %v3154_v63  ;;  %v872_v5 = vadd.f32 0.00028619796, %v871_v51  ;;  %v909_v10 = vmul.f32 %v3197_v4, %v3197_v4 }
 0x150   : > { %v1286_v41 = vmul.f32 %v1285_v49, %v2818_v40  ;;  %v684_v54 = vmul.f32 %v683_v16, %v2820_v44  ;;  %vm1257_vm5 = vweird.f32 %v3154_v63  ;;  %v1264_v25 = vor.u32 1.1754944e-38, %v1263_v56 }
 0x151   : > { %v1256_v43 = vadd.f32 %v2294_v38, %v1255_v0  ;;  %v1512_v52 = vadd.f32 0.00028619796, %v1511_v31  ;;  %v1439_v17 = vmul.f32 %v1438_v12, %v3060_v55  ;;  %vm1259_vm6 = vmor %vm1257_vm5, %vm1258_vm4  ;;  %v1323_v36 = vadd.f32 0.001143296, %v1322_v27  ;;  %v427_v27 = vpop.f32.mrf.mxu2  ;;  %v3224_v0 = vld [vmem:[%s4086_s2] ss:$0 sm:$0xff] }
 0x152   : > { %v1287_v21 = vadd.f32 0.112945676, %v1286_v41  ;;  %v685_v61 = vadd.f32 0.014752088, %v684_v54  ;;  %v839_v51 = vmul.f32 %v838_v19, %v3075_v26  ;;  %v1476_v53 = vadd.f32 0.05243302, %v1475_v14 }
 0x153   : > { %v1260_v45 = vsel %vm1259_vm6, %v2294_v38, %v1256_v43  ;;  %vm1262_vm7 = vcmp.eq.f32.partialorder %v1261_v33, 8.507059e+37  ;;  %v3212_v1 = vmin.f32 %v909_v10, 16.0  ;;  %v873_v56 = vmul.f32 %v872_v5, %v3171_v30 }
 0x154   : > { %v2296_v8 = vpop.eup %2295  ;;  %v1265_v49 = vsel %vm1262_vm7, %v1264_v25, %v1260_v45  ;;  %v1288_v16 = vmul.f32 %v1287_v21, %v2818_v40  ;;  %v686_v63 = vmul.f32 %v685_v61, %v2820_v44  ;;  %v1324_v19 = vmul.f32 %v1323_v36, %v2846_v7 }
 0x155   : > { %v1266_v31 = vmul.f32 %v1265_v49, %v3009_v15  ;;  %v653_v12 = vmul.f32 %v2296_v8, %v3194_v42  ;;  %v1513_v38 = vmul.f32 %v1512_v52, %v3182_v60  ;;  %v3227_v33 = vadd.f32 %v3224_v0, %v427_v27 }
 0x156   : > { %v1289_v14 = vadd.f32 0.4994258, %v1288_v16  ;;  %v687_v10 = vadd.f32 0.112945676, %v686_v63  ;;  %v661_v15 = vand.u32 2147483647, %v3194_v42  ;;  %vm658_vm8 = vweird.f32 %v2296_v8 }
 0x157   : > { %v2157_v5 = vclamps-f32 %v1266_v31, 1.0  ;;  %v654_v41 = vsub.f32 1.0, %v653_v12  ;;  %v663_v54 = vand.u32 2147483648, %v3194_v42  ;;  %v911_v43 = vmul.f32 2.1237322e-06, %v3212_v1 }
 0x158   : > { %v1290_v25 = vmul.f32 %v1289_v14, %v2818_v40  ;;  %v3234_v52 = vmul.f32 0.70710677, %v3227_v33  ;;  %v688_v36 = vmul.f32 %v687_v10, %v2820_v44  ;;  %v1325_v45 = vadd.f32 0.014752088, %v1324_v19 }
 0x159   : > { %v1807_v21 = vadd.f32 1.0, %v2157_v5  ;;  %v655_v61 = vmul.f32 %v2296_v8, %v654_v41  ;;  %v1477_v49 = vmul.f32 %v1476_v53, %v3121_v18  ;;  %v874_v16 = vadd.f32 0.0036580483, %v873_v56  ;;  %v382_v53 = vpop.f32.mrf.mxu0 }
 0x15a   : > { %v3238_v63 = vadd.f32 1.0, %v1290_v25  ;;  %v1549_v31 = vmul.f32 %v3234_v52, %v3234_v52  ;;  %vm657_vm9 = vweird.f32 %v3194_v42  ;;  %v689_v40 = vadd.f32 0.4994258, %v688_v36 }
 0x15b   : > { %v1839_v12 = vmul.f32 %v1807_v21, %v2873_v39  ;;  %v656_v27 = vadd.f32 %v2296_v8, %v655_v61  ;;  %v1514_v14 = vadd.f32 0.0036580483, %v1513_v38  ;;  %vm659_vm10 = vmor %vm657_vm9, %vm658_vm8  ;;  %vm662_vm11 = vcmp.eq.f32.partialorder %v661_v15, 8.507059e+37 }
 0x15c   : > { %v664_v10 = vor.u32 1.1754944e-38, %v663_v54  ;;  %2297 = vrcp.f32 %v3238_v63  ;;  %v912_v19 = vadd.f32 0.00028619796, %v911_v43  ;;  %v3246_v5 = vmin.f32 %v1549_v31, 16.0 }
 0x15d   : > { %1943 = vmatmul.f32.gmra.mxu3 %v1839_v12  ;;  %v660_v56 = vsel %vm659_vm10, %v2296_v8, %v656_v27  ;;  %v1326_v41 = vmul.f32 %v1325_v45, %v2846_v7  ;;  %v3251_v39 = vmul.f32 %v3186_v13, %v2974_v35  ;;  %v1440_v42 = vadd.f32 1.1283791, %v1439_v17 }
 0x15e   : > { %v665_v38 = vsel %vm662_vm11, %v664_v10, %v660_v56  ;;  %v690_v25 = vmul.f32 %v689_v40, %v2820_v44  ;;  %v840_v15 = vadd.f32 1.1283791, %v839_v51  ;;  %v1478_v54 = vadd.f32 0.18741608, %v1477_v49 }
 0x15f   : > { %v666_v21 = vmul.f32 %v665_v38, %v3016_v28  ;;  %v3256_v61 = vadd.f32 %v3224_v0, %v382_v53  ;;  %v875_v8 = vmul.f32 %v874_v16, %v3171_v30  ;;  %v1515_v43 = vmul.f32 %v1514_v14, %v3182_v60  ;;  %v4121_v53 = vld [vmem:[#allocation12_spill] sm:$0xff] }
 0x160   : > { %v1551_v36 = vmul.f32 2.1237322e-06, %v3246_v5  ;;  %v3261_v45 = vadd.f32 1.0, %v690_v25  ;;  %v3264_v35 = vmul.f32 0.5, %v3083_v3  ;;  %v913_v44 = vmul.f32 %v912_v19, %v3212_v1 }
 0x161   : > { %v2142_v13 = vclamps-f32 %v666_v21, 1.0  ;;  %v1327_v17 = vadd.f32 0.112945676, %v1326_v41  ;;  %v3268_v28 = vmul.f32 %v1440_v42, %v3023_v47  ;;  %v3272_v49 = vmul.f32 0.70710677, %v3256_v61 }
 0x162   : > { %v2298_v51 = vpop.eup %2297  ;;  %2299 = vrcp.f32 %v3261_v45  ;;  %v722_v16 = vmul.f32 3.8918573e-05, %v2886_v37  ;;  %v1479_v31 = vmul.f32 %v1478_v54, %v3121_v18  ;;  %v3277_v3 = vmul.f32 0.5, %v3127_v62 }
 0x163   : > { %v1792_v12 = vadd.f32 1.0, %v2142_v13  ;;  %v1293_v27 = vmul.f32 %v2298_v51, %v3238_v63  ;;  %v3281_v40 = vmul.f32 %v840_v15, %v3054_v24  ;;  %v876_v47 = vadd.f32 0.05243302, %v875_v8 }
 0x164   : > { %v1516_v14 = vadd.f32 0.05243302, %v1515_v43  ;;  %v1552_v10 = vadd.f32 0.00028619796, %v1551_v36  ;;  %v914_v19 = vadd.f32 0.0036580483, %v913_v44  ;;  %v1328_v42 = vmul.f32 %v1327_v17, %v2846_v7 }
 0x165   : > { %v1824_v56 = vmul.f32 %v1792_v12, %v4121_v53  ;;  %v1294_v41 = vsub.f32 1.0, %v1293_v27  ;;  %v1301_v38 = vand.u32 2147483647, %v3238_v63  ;;  %v1303_v62 = vand.u32 2147483648, %v3238_v63 }
 0x166   : > { %v949_v25 = vmul.f32 %v3272_v49, %v3272_v49  ;;  %v723_v54 = vadd.f32 0.001143296, %v722_v16  ;;  %v1480_v21 = vadd.f32 1.1283791, %v1479_v31  ;;  %vm1298_vm12 = vweird.f32 %v2298_v51 }
 0x167   : > { %1898 = vmatmul.f32.gmra.mxu1 %v1824_v56  ;;  %v1295_v24 = vmul.f32 %v2298_v51, %v1294_v41  ;;  %v1329_v15 = vadd.f32 0.4994258, %v1328_v42  ;;  %v877_v43 = vmul.f32 %v876_v47, %v3171_v30  ;;  %v1517_v36 = vmul.f32 %v1516_v14, %v3182_v60 }
 0x168   : > { %v2300_v8 = vpop.eup %2299  ;;  %v1553_v13 = vmul.f32 %v1552_v10, %v3246_v5  ;;  %v724_v44 = vmul.f32 %v723_v54, %v2886_v37  ;;  %v915_v17 = vmul.f32 %v914_v19, %v3212_v1  ;;  %vm1297_vm13 = vweird.f32 %v3238_v63 }
 0x169   : > { %v1296_v12 = vadd.f32 %v2298_v51, %v1295_v24  ;;  %v693_v16 = vmul.f32 %v2300_v8, %v3261_v45  ;;  %vm1299_vm14 = vmor %vm1297_vm13, %vm1298_vm12  ;;  %vm1302_vm15 = vcmp.eq.f32.partialorder %v1301_v38, 8.507059e+37  ;;  %v1304_v31 = vor.u32 1.1754944e-38, %v1303_v62 }
 0x16a   : > { %v3296_v27 = vmin.f32 %v949_v25, 16.0  ;;  %v1330_v47 = vmul.f32 %v1329_v15, %v2846_v7  ;;  %v701_v10 = vand.u32 2147483647, %v3261_v45  ;;  %v725_v56 = vadd.f32 0.014752088, %v724_v44 }
 0x16b   : > { %v1300_v53 = vsel %vm1299_vm14, %v2298_v51, %v1296_v12  ;;  %v694_v14 = vsub.f32 1.0, %v693_v16  ;;  %v1554_v42 = vadd.f32 0.0036580483, %v1553_v13  ;;  %v703_v19 = vand.u32 2147483648, %v3261_v45  ;;  %v430_v13 = vpop.f32.mrf.mxu2 }
 0x16c   : > { %v1305_v41 = vsel %vm1302_vm15, %v1304_v31, %v1300_v53  ;;  %v3301_v54 = vadd.f32 1.0, %v1330_v47  ;;  %vm698_vm0 = vweird.f32 %v2300_v8  ;;  %v726_v38 = vmul.f32 %v725_v56, %v2886_v37 }
 0x16d   : > { %v1306_v63 = vmul.f32 %v1305_v41, %v3028_v58  ;;  %v695_v24 = vmul.f32 %v2300_v8, %v694_v14  ;;  %v878_v62 = vadd.f32 0.18741608, %v877_v43  ;;  %v1518_v25 = vadd.f32 0.18741608, %v1517_v36 }
 0x16e   : > { %v951_v7 = vmul.f32 2.1237322e-06, %v3296_v27  ;;  %2301 = vrcp.f32 %v3301_v54  ;;  %vm697_vm1 = vweird.f32 %v3261_v45  ;;  %v1362_v44 = vmul.f32 3.8918573e-05, %v2900_v23 }
 0x16f   : > { %v2158_v51 = vclamps-f32 %v1306_v63, 1.0  ;;  %v696_v15 = vadd.f32 %v2300_v8, %v695_v24  ;;  %v3310_v12 = vmul.f32 0.5, %v3147_v22  ;;  %v916_v58 = vadd.f32 0.05243302, %v915_v17  ;;  %vm699_vm2 = vmor %vm697_vm1, %vm698_vm0  ;;  %v4123_v22 = vld [vmem:[#allocation13_spill] sm:$0xff] }
 0x170   : > { %v704_v16 = vor.u32 1.1754944e-38, %v703_v19  ;;  %v727_v31 = vadd.f32 0.112945676, %v726_v38  ;;  %v1555_v36 = vmul.f32 %v1554_v42, %v3246_v5  ;;  %vm702_vm3 = vcmp.eq.f32.partialorder %v701_v10, 8.507059e+37 }
 0x171   : > { %4122 = vst [vmem:[#allocation12_spill] sm:$0xff] %v3310_v12  ;;  %v1808_v43 = vadd.f32 1.0, %v2158_v51  ;;  %v700_v47 = vsel %vm699_vm2, %v2300_v8, %v696_v15  ;;  %v952_v14 = vadd.f32 0.00028619796, %v951_v7  ;;  %v3314_v56 = vadd.f32 %v3224_v0, %v430_v13 }
 0x172   : > { %v705_v53 = vsel %vm702_vm3, %v704_v16, %v700_v47  ;;  %v728_v45 = vmul.f32 %v727_v31, %v2886_v37  ;;  %v3318_v41 = vmul.f32 %v1480_v21, %v3097_v59  ;;  %v1363_v63 = vadd.f32 0.001143296, %v1362_v44  ;;  %v385_v21 = vpop.f32.mrf.mxu0 }
 0x173   : > { %v1840_v17 = vmul.f32 %v1808_v43, %v4123_v22  ;;  %v706_v19 = vmul.f32 %v705_v53, %v3035_v11  ;;  %v879_v42 = vmul.f32 %v878_v62, %v3171_v30  ;;  %v1519_v8 = vmul.f32 %v1518_v25, %v3182_v60 }
 0x174   : > { %v2302_v24 = vpop.eup %2301  ;;  %v729_v10 = vadd.f32 0.4994258, %v728_v45  ;;  %v762_v38 = vmul.f32 3.8918573e-05, %v2933_v6  ;;  %v917_v7 = vmul.f32 %v916_v58, %v3212_v1  ;;  %v1364_v15 = vmul.f32 %v1363_v63, %v2900_v23  ;;  %v4124_v45 = vld [vmem:[#allocation14_spill] sm:$0xff] }
 0x175   : > { %1946 = vmatmul.f32.gmra.mxu3 %v1840_v17  ;;  %v2143_v51 = vclamps-f32 %v706_v19, 1.0  ;;  %v1333_v59 = vmul.f32 %v2302_v24, %v3301_v54  ;;  %v1556_v13 = vadd.f32 0.05243302, %v1555_v36  ;;  %v953_v11 = vmul.f32 %v952_v14, %v3296_v27 }
 0x176   : > { %v3330_v44 = vmul.f32 0.70710677, %v3314_v56  ;;  %v730_v62 = vmul.f32 %v729_v10, %v2886_v37  ;;  %v1341_v31 = vand.u32 2147483647, %v3301_v54  ;;  %v1365_v58 = vadd.f32 0.014752088, %v1364_v15 }
 0x177   : > { %v1793_v25 = vadd.f32 1.0, %v2143_v51  ;;  %v1334_v16 = vsub.f32 1.0, %v1333_v59  ;;  %v1343_v43 = vand.u32 2147483648, %v3301_v54  ;;  %v3338_v53 = vadd.f32 %v3224_v0, %v385_v21 }
 0x178   : > { %v3335_v47 = vadd.f32 1.0, %v730_v62  ;;  %v763_v36 = vadd.f32 0.001143296, %v762_v38  ;;  %vm1338_vm4 = vweird.f32 %v2302_v24  ;;  %v1366_v17 = vmul.f32 %v1365_v58, %v2900_v23 }
 0x179   : > { %v1825_v14 = vmul.f32 %v1793_v25, %v4124_v45  ;;  %v1335_v22 = vmul.f32 %v2302_v24, %v1334_v16  ;;  %v880_v37 = vadd.f32 1.1283791, %v879_v42  ;;  %v3343_v19 = vmul.f32 0.5, %v3180_v29 }
 0x17a   : > { %v1589_v63 = vmul.f32 %v3330_v44, %v3330_v44  ;;  %2303 = vrcp.f32 %v3335_v47  ;;  %v1520_v10 = vadd.f32 1.1283791, %v1519_v8  ;;  %v918_v51 = vadd.f32 0.18741608, %v917_v7 }
 0x17b   : > { %4125 = vst [vmem:[#allocation13_spill] sm:$0xff] %v3343_v19  ;;  %1901 = vmatmul.f32.gmra.mxu1 %v1825_v14  ;;  %v1336_v59 = vadd.f32 %v2302_v24, %v1335_v22  ;;  %vm1337_vm5 = vweird.f32 %v3301_v54  ;;  %v1344_v38 = vor.u32 1.1754944e-38, %v1343_v43  ;;  %v3350_v21 = vmul.f32 0.70710677, %v3338_v53 }
 0x17c   : > { %vm1339_vm6 = vmor %vm1337_vm5, %vm1338_vm4  ;;  %v1367_v42 = vadd.f32 0.112945676, %v1366_v17  ;;  %v764_v29 = vmul.f32 %v763_v36, %v2933_v6  ;;  %v1557_v15 = vmul.f32 %v1556_v13, %v3246_v5  ;;  %v954_v62 = vadd.f32 0.0036580483, %v953_v11  ;;  %v433_v11 = vpop.f32.mrf.mxu2 }
 0x17d   : > { %v1340_v25 = vsel %vm1339_vm6, %v2302_v24, %v1336_v59  ;;  %vm1342_vm7 = vcmp.eq.f32.partialorder %v1341_v31, 8.507059e+37  ;;  %v3354_v8 = vmin.f32 %v1589_v63, 16.0  ;;  %v3358_v54 = vmul.f32 %v880_v37, %v3141_v57 }
 0x17e   : > { %v1345_v16 = vsel %vm1342_vm7, %v1344_v38, %v1340_v25  ;;  %v1368_v7 = vmul.f32 %v1367_v42, %v2900_v23  ;;  %v765_v58 = vadd.f32 0.014752088, %v764_v29  ;;  %v3361_v43 = vmul.f32 %v1520_v10, %v3157_v32 }
 0x17f   : > { %v3364_v45 = vmul.f32 0.5, %v3227_v33  ;;  %v1346_v13 = vmul.f32 %v1345_v16, %v3038_v2  ;;  %v989_v31 = vmul.f32 %v3350_v21, %v3350_v21  ;;  %v1402_v22 = vmul.f32 3.8918573e-05, %v2977_v48 }
 0x180   : > { %v2304_v24 = vpop.eup %2303  ;;  %v1369_v36 = vadd.f32 0.4994258, %v1368_v7  ;;  %v766_v14 = vmul.f32 %v765_v58, %v2933_v6  ;;  %v919_v57 = vmul.f32 %v918_v51, %v3212_v1  ;;  %v1558_v17 = vadd.f32 0.18741608, %v1557_v15 }
 0x181   : > { %4126 = vst [vmem:[#allocation14_spill] sm:$0xff] %v3364_v45  ;;  %v2159_v32 = vclamps-f32 %v1346_v13, 1.0  ;;  %v733_v37 = vmul.f32 %v2304_v24, %v3335_v47  ;;  %v955_v33 = vmul.f32 %v954_v62, %v3296_v27  ;;  %v1591_v2 = vmul.f32 2.1237322e-06, %v3354_v8  ;;  %v4127_v62 = vld [vmem:[#allocation15_spill] sm:$0xff] }
 0x182   : > { %v1370_v63 = vmul.f32 %v1369_v36, %v2900_v23  ;;  %v3377_v10 = vadd.f32 %v3224_v0, %v433_v11  ;;  %v743_v42 = vand.u32 2147483648, %v3335_v47  ;;  %v767_v29 = vadd.f32 0.112945676, %v766_v14 }
 0x183   : > { %v1809_v59 = vadd.f32 1.0, %v2159_v32  ;;  %v734_v38 = vsub.f32 1.0, %v733_v37  ;;  %v741_v51 = vand.u32 2147483647, %v3335_v47  ;;  %v3381_v15 = vmin.f32 %v989_v31, 16.0 }
 0x184   : > { %v3383_v25 = vadd.f32 1.0, %v1370_v63  ;;  %v1403_v16 = vadd.f32 0.001143296, %v1402_v22  ;;  %vm738_vm8 = vweird.f32 %v2304_v24  ;;  %v768_v23 = vmul.f32 %v767_v29, %v2933_v6  ;;  %v388_v22 = vpop.f32.mrf.mxu0 }
 0x185   : > { %v1841_v7 = vmul.f32 %v1809_v59, %v4127_v62  ;;  %v735_v58 = vmul.f32 %v2304_v24, %v734_v38  ;;  %v920_v13 = vadd.f32 1.1283791, %v919_v57  ;;  %v956_v11 = vadd.f32 0.05243302, %v955_v33 }
 0x186   : > { %2305 = vrcp.f32 %v3383_v25  ;;  %v3389_v36 = vmul.f32 0.70710677, %v3377_v10  ;;  %v1592_v14 = vadd.f32 0.00028619796, %v1591_v2  ;;  %vm737_vm9 = vweird.f32 %v3335_v47 }
 0x187   : > { %1949 = vmatmul.f32.gmra.mxu3 %v1841_v7  ;;  %v736_v31 = vadd.f32 %v2304_v24, %v735_v58  ;;  %v744_v32 = vor.u32 1.1754944e-38, %v743_v42  ;;  %vm739_vm10 = vmor %vm737_vm9, %vm738_vm8  ;;  %v991_v37 = vmul.f32 2.1237322e-06, %v3381_v15  ;;  %v769_v63 = vadd.f32 0.4994258, %v768_v23 }
 0x188   : > { %v3394_v59 = vadd.f32 %v3224_v0, %v388_v22  ;;  %v1404_v57 = vmul.f32 %v1403_v16, %v2977_v48  ;;  %v1559_v33 = vmul.f32 %v1558_v17, %v3246_v5  ;;  %vm742_vm11 = vcmp.eq.f32.partialorder %v741_v51, 8.507059e+37 }
 0x189   : > { %v740_v38 = vsel %vm739_vm10, %v2304_v24, %v736_v31  ;;  %v802_v2 = vmul.f32 3.8918573e-05, %v2997_v46  ;;  %v1629_v47 = vmul.f32 %v3389_v36, %v3389_v36  ;;  %v770_v42 = vmul.f32 %v769_v63, %v2933_v6 }
 0x18a   : > { %v745_v29 = vsel %vm742_vm11, %v744_v32, %v740_v38  ;;  %v3403_v62 = vmul.f32 0.70710677, %v3394_v59  ;;  %v3406_v7 = vmul.f32 %v920_v13, %v3197_v4  ;;  %v3409_v16 = vmul.f32 0.5, %v3256_v61 }
 0x18b   : > { %v1593_v24 = vmul.f32 %v1592_v14, %v3354_v8  ;;  %v746_v17 = vmul.f32 %v745_v29, %v3072_v9  ;;  %v957_v58 = vmul.f32 %v956_v11, %v3296_v27  ;;  %v992_v23 = vadd.f32 0.00028619796, %v991_v37 }
 0x18c   : > { %4128 = vst [vmem:[#allocation15_spill] sm:$0xff] %v3409_v16  ;;  %v2306_v51 = vpop.eup %2305  ;;  %v3414_v31 = vadd.f32 1.0, %v770_v42  ;;  %v1405_v6 = vadd.f32 0.014752088, %v1404_v57  ;;  %v3416_v32 = vadd.f32 1.1283791, %v1559_v33  ;;  %v1029_v9 = vmul.f32 %v3403_v62, %v3403_v62 }
 0x18d   : > { %v3419_v22 = vmul.f32 0.5, %v3314_v56  ;;  %v2144_v4 = vclamps-f32 %v746_v17, 1.0  ;;  %v1373_v61 = vmul.f32 %v2306_v51, %v3383_v25  ;;  %v3422_v13 = vmin.f32 %v1629_v47, 16.0  ;;  %v4130_v47 = vld [vmem:[#allocation16_spill] sm:$0xff] }
 0x18e   : > { %2307 = vrcp.f32 %v3414_v31  ;;  %v803_v11 = vadd.f32 0.001143296, %v802_v2  ;;  %v1594_v14 = vadd.f32 0.0036580483, %v1593_v24  ;;  %v1442_v57 = vmul.f32 3.8918573e-05, %v3060_v55 }
 0x18f   : > { %4129 = vst [vmem:[#allocation23_spill] sm:$0xff] %v3419_v22  ;;  %v1794_v37 = vadd.f32 1.0, %v2144_v4  ;;  %v1374_v63 = vsub.f32 1.0, %v1373_v61  ;;  %v958_v33 = vadd.f32 0.18741608, %v957_v58  ;;  %v993_v56 = vmul.f32 %v992_v23, %v3381_v15 }
 0x190   : > { %v1383_v38 = vand.u32 2147483648, %v3383_v25  ;;  %v1406_v29 = vmul.f32 %v1405_v6, %v2977_v48  ;;  %vm1378_vm12 = vweird.f32 %v2306_v51  ;;  %v1381_v22 = vand.u32 2147483647, %v3383_v25 }
 0x191   : > { %v1826_v42 = vmul.f32 %v1794_v37, %v4130_v47  ;;  %v1375_v17 = vmul.f32 %v2306_v51, %v1374_v63  ;;  %v1631_v2 = vmul.f32 2.1237322e-06, %v3422_v13  ;;  %v3434_v24 = vmin.f32 %v1029_v9, 16.0 }
 0x192   : > { %v1407_v4 = vadd.f32 0.112945676, %v1406_v29  ;;  %v804_v61 = vmul.f32 %v803_v11, %v2997_v46  ;;  %v1595_v58 = vmul.f32 %v1594_v14, %v3354_v8  ;;  %vm1377_vm13 = vweird.f32 %v3383_v25  ;;  %v436_v29 = vpop.f32.mrf.mxu2 }
 0x193   : > { %1904 = vmatmul.f32.gmra.mxu1 %v1826_v42  ;;  %v1376_v23 = vadd.f32 %v2306_v51, %v1375_v17  ;;  %v1443_v6 = vadd.f32 0.001143296, %v1442_v57  ;;  %v994_v37 = vadd.f32 0.0036580483, %v993_v56  ;;  %vm1379_vm14 = vmor %vm1377_vm13, %vm1378_vm12  ;;  %v1384_v63 = vor.u32 1.1754944e-38, %v1383_v38  ;;  %v4131_v57 = vld [vmem:[#allocation21_spill] sm:$0xff] }
 0x194   : > { %v2308_v16 = vpop.eup %2307  ;;  %v1408_v47 = vmul.f32 %v1407_v4, %v2977_v48  ;;  %v805_v45 = vadd.f32 0.014752088, %v804_v61  ;;  %vm1382_vm15 = vcmp.eq.f32.partialorder %v1381_v22, 8.507059e+37  ;;  %v1632_v42 = vadd.f32 0.00028619796, %v1631_v2 }
 0x195   : > { %v1380_v19 = vsel %vm1379_vm14, %v2306_v51, %v1376_v23  ;;  %v773_v9 = vmul.f32 %v2308_v16, %v3414_v31  ;;  %v1444_v11 = vmul.f32 %v1443_v6, %v3060_v55  ;;  %v1031_v17 = vmul.f32 2.1237322e-06, %v3434_v24 }
 0x196   : > { %v1385_v14 = vsel %vm1382_vm15, %v1384_v63, %v1380_v19  ;;  %v1409_v25 = vadd.f32 0.4994258, %v1408_v47  ;;  %v3445_v38 = vadd.f32 %v3224_v0, %v436_v29  ;;  %v806_v4 = vmul.f32 %v805_v45, %v2997_v46 }
 0x197   : > { %v1386_v12 = vmul.f32 %v1385_v14, %v4131_v57  ;;  %v774_v56 = vsub.f32 1.0, %v773_v9  ;;  %v781_v51 = vand.u32 2147483647, %v3414_v31  ;;  %v783_v22 = vand.u32 2147483648, %v3414_v31  ;;  %v4133_v57 = vld [vmem:[#allocation17_spill] sm:$0xff] }
 0x198   : > { %4132 = vst [vmem:[#allocation16_spill] sm:$0xff] %v3445_v38  ;;  %v1410_v61 = vmul.f32 %v1409_v25, %v2977_v48  ;;  %v1445_v23 = vadd.f32 0.014752088, %v1444_v11  ;;  %vm778_vm0 = vweird.f32 %v2308_v16  ;;  %v3452_v6 = vmul.f32 0.70710677, %v3445_v38 }
 0x199   : > { %v2160_v19 = vclamps-f32 %v1386_v12, 1.0  ;;  %v775_v2 = vmul.f32 %v2308_v16, %v774_v56  ;;  %v1633_v63 = vmul.f32 %v1632_v42, %v3422_v13  ;;  %vm777_vm1 = vweird.f32 %v3414_v31 }
 0x19a   : > { %v1032_v47 = vadd.f32 0.00028619796, %v1031_v17  ;;  %v3456_v9 = vadd.f32 1.0, %v1410_v61  ;;  %v1669_v14 = vmul.f32 %v3452_v6, %v3452_v6  ;;  %v807_v48 = vadd.f32 0.112945676, %v806_v4  ;;  %vm779_vm2 = vmor %vm777_vm1, %vm778_vm0 }
 0x19b   : > { %v1810_v45 = vadd.f32 1.0, %v2160_v19  ;;  %v776_v29 = vadd.f32 %v2308_v16, %v775_v2  ;;  %v959_v12 = vmul.f32 %v958_v33, %v3296_v27  ;;  %v784_v11 = vor.u32 1.1754944e-38, %v783_v22 }
 0x19c   : > { %2309 = vrcp.f32 %v3456_v9  ;;  %v1446_v25 = vmul.f32 %v1445_v23, %v3060_v55  ;;  %v1596_v42 = vadd.f32 0.05243302, %v1595_v58  ;;  %vm782_vm3 = vcmp.eq.f32.partialorder %v781_v51, 8.507059e+37 }
 0x19d   : > { %v1842_v31 = vmul.f32 %v1810_v45, %v4133_v57  ;;  %v780_v17 = vsel %vm779_vm2, %v2308_v16, %v776_v29  ;;  %v1634_v56 = vadd.f32 0.0036580483, %v1633_v63  ;;  %v1033_v19 = vmul.f32 %v1032_v47, %v3434_v24  ;;  %v391_v63 = vpop.f32.mrf.mxu0 }
 0x19e   : > { %v785_v61 = vsel %vm782_vm3, %v784_v11, %v780_v17  ;;  %v3465_v2 = vmin.f32 %v1669_v14, 16.0  ;;  %v3468_v4 = vmul.f32 0.5, %v3338_v53  ;;  %v995_v33 = vmul.f32 %v994_v37, %v3381_v15 }
 0x19f   : > { %1952 = vmatmul.f32.gmra.mxu3 %v1842_v31  ;;  %v786_v22 = vmul.f32 %v785_v61, %v3133_v34  ;;  %v808_v58 = vmul.f32 %v807_v48, %v2997_v46  ;;  %v3475_v16 = vmul.f32 %v3416_v32, %v3234_v52  ;;  %v960_v51 = vadd.f32 1.1283791, %v959_v12 }
 0x1a0   : > { %v1671_v23 = vmul.f32 2.1237322e-06, %v3465_v2  ;;  %v1447_v47 = vadd.f32 0.112945676, %v1446_v25  ;;  %v1597_v45 = vmul.f32 %v1596_v42, %v3354_v8  ;;  %v3480_v37 = vadd.f32 %v3224_v0, %v391_v63 }
 0x1a1   : > { %v2145_v53 = vclamps-f32 %v786_v22, 1.0  ;;  %v809_v29 = vadd.f32 0.4994258, %v808_v58  ;;  %v1635_v34 = vmul.f32 %v1634_v56, %v3422_v13  ;;  %v1034_v48 = vadd.f32 0.0036580483, %v1033_v19  ;;  %v4136_v56 = vld [vmem:[#allocation18_spill] sm:$0xff] }
 0x1a2   : > { %4134 = vst [vmem:[#allocation21_spill] sm:$0xff] %v3480_v37  ;;  %v2310_v14 = vpop.eup %2309  ;;  %v1672_v11 = vadd.f32 0.00028619796, %v1671_v23  ;;  %v1448_v52 = vmul.f32 %v1447_v47, %v3060_v55  ;;  %v996_v32 = vadd.f32 0.05243302, %v995_v33  ;;  %v439_v23 = vpop.f32.mrf.mxu2  ;;  %vm1417_vm5 = vweird.f32 %v3456_v9 }
 0x1a3   : > { %v1795_v12 = vadd.f32 1.0, %v2145_v53  ;;  %v1413_v57 = vmul.f32 %v2310_v14, %v3456_v9  ;;  %v810_v25 = vmul.f32 %v809_v29, %v2997_v46  ;;  %v3488_v31 = vmul.f32 0.70710677, %v3480_v37 }
 0x1a4   : > { %v1673_v42 = vmul.f32 %v1672_v11, %v3465_v2  ;;  %v842_v17 = vmul.f32 3.8918573e-05, %v3075_v26  ;;  %v1482_v61 = vmul.f32 3.8918573e-05, %v3121_v18  ;;  %v1449_v33 = vadd.f32 0.4994258, %v1448_v52 }
 0x1a5   : > { %4135 = vst [vmem:[#allocation17_spill] sm:$0xff] %v3488_v31  ;;  %v1827_v19 = vmul.f32 %v1795_v12, %v4136_v56  ;;  %v1414_v22 = vsub.f32 1.0, %v1413_v57  ;;  %v3493_v58 = vadd.f32 1.0, %v810_v25  ;;  %v1636_v63 = vadd.f32 0.05243302, %v1635_v34 }
 0x1a6   : > { %v1035_v47 = vmul.f32 %v1034_v48, %v3434_v24  ;;  %v1423_v46 = vand.u32 2147483648, %v3456_v9  ;;  %v3498_v53 = vadd.f32 %v3224_v0, %v439_v23  ;;  %vm1418_vm4 = vweird.f32 %v2310_v14 }
 0x1a7   : > { %1907 = vmatmul.f32.gmra.mxu1 %v1827_v19  ;;  %v1415_v29 = vmul.f32 %v2310_v14, %v1414_v22  ;;  %v1421_v11 = vand.u32 2147483647, %v3456_v9  ;;  %2311 = vrcp.f32 %v3493_v58  ;;  %v1674_v12 = vadd.f32 0.0036580483, %v1673_v42  ;;  %vm1419_vm6 = vmor %vm1417_vm5, %vm1418_vm4 }
 0x1a8   : > { %4137 = vst [vmem:[#allocation18_spill] sm:$0xff] %v3498_v53  ;;  %v1450_v52 = vmul.f32 %v1449_v33, %v3060_v55  ;;  %v843_v34 = vadd.f32 0.001143296, %v842_v17  ;;  %v1069_v48 = vmul.f32 %v3488_v31, %v3488_v31  ;;  %v3507_v25 = vmul.f32 0.70710677, %v3498_v53 }
 0x1a9   : > { %v1416_v57 = vadd.f32 %v2310_v14, %v1415_v29  ;;  %v1483_v56 = vadd.f32 0.001143296, %v1482_v61  ;;  %v997_v19 = vmul.f32 %v996_v32, %v3381_v15  ;;  %v1036_v22 = vadd.f32 0.05243302, %v1035_v47 }
 0x1aa   : > { %4138 = vst [vmem:[#allocation24_spill] sm:$0xff] %v3507_v25  ;;  %v1424_v23 = vor.u32 1.1754944e-38, %v1423_v46  ;;  %v3510_v37 = vadd.f32 1.0, %v1450_v52  ;;  %v1598_v9 = vadd.f32 0.18741608, %v1597_v45  ;;  %v1637_v42 = vmul.f32 %v1636_v63, %v3422_v13 }
 0x1ab   : > { %v1420_v55 = vsel %vm1419_vm6, %v2310_v14, %v1416_v57  ;;  %vm1422_vm7 = vcmp.eq.f32.partialorder %v1421_v11, 8.507059e+37  ;;  %v1675_v33 = vmul.f32 %v1674_v12, %v3465_v2  ;;  %v844_v29 = vmul.f32 %v843_v34, %v3075_v26 }
 0x1ac   : > { %v1425_v17 = vsel %vm1422_vm7, %v1424_v23, %v1420_v55  ;;  %2313 = vrcp.f32 %v3510_v37  ;;  %v3517_v47 = vmin.f32 %v1069_v48, 16.0  ;;  %v1709_v46 = vmul.f32 %v3507_v25, %v3507_v25 }
 0x1ad   : > { %v2312_v61 = vpop.eup %2311  ;;  %v1426_v32 = vmul.f32 %v1425_v17, %v3174_v20  ;;  %v1484_v45 = vmul.f32 %v1483_v56, %v3121_v18  ;;  %v3523_v14 = vmul.f32 %v960_v51, %v3272_v49  ;;  %v3525_v63 = vadd.f32 0.18741608, %v997_v19 }
 0x1ae   : > { %v1037_v11 = vmul.f32 %v1036_v22, %v3434_v24  ;;  %v813_v12 = vmul.f32 %v2312_v61, %v3493_v58  ;;  %v3530_v52 = vmul.f32 %v1598_v9, %v3354_v8  ;;  %v3532_v20 = vadd.f32 0.18741608, %v1637_v42 }
 0x1af   : > { %v2161_v34 = vclamps-f32 %v1426_v32, 1.0  ;;  %v821_v57 = vand.u32 2147483647, %v3493_v58  ;;  %v1676_v48 = vadd.f32 0.05243302, %v1675_v33  ;;  %v823_v56 = vand.u32 2147483648, %v3493_v58 }
 0x1b0   : > { %v814_v23 = vsub.f32 1.0, %v813_v12  ;;  %v845_v49 = vadd.f32 0.014752088, %v844_v29  ;;  %v1071_v19 = vmul.f32 2.1237322e-06, %v3517_v47  ;;  %v3537_v55 = vmin.f32 %v1709_v46, 16.0 }
 0x1b1   : > { %v1811_v51 = vadd.f32 1.0, %v2161_v34  ;;  %v1485_v22 = vadd.f32 0.014752088, %v1484_v45  ;;  %v1038_v53 = vadd.f32 0.18741608, %v1037_v11  ;;  %vm818_vm8 = vweird.f32 %v2312_v61  ;;  %v4139_v32 = vld [vmem:[#allocation19_spill] sm:$0xff] }
 0x1b2   : > { %v2314_v17 = vpop.eup %2313  ;;  %v815_v9 = vmul.f32 %v2312_v61, %v814_v23  ;;  %v846_v42 = vmul.f32 %v845_v49, %v3075_v26  ;;  %vm817_vm9 = vweird.f32 %v3493_v58  ;;  %vm3542_vm10 = vcmp.eq.f32.partialorder %v821_v57, 8.507059e+37 }
 0x1b3   : > { %v1843_v25 = vmul.f32 %v1811_v51, %v4139_v32  ;;  %v1453_v29 = vmul.f32 %v2314_v17, %v3510_v37  ;;  %v1677_v46 = vmul.f32 %v1676_v48, %v3465_v2  ;;  %v824_v45 = vor.u32 1.1754944e-38, %v823_v56  ;;  %vm819_vm11 = vmor %vm817_vm9, %vm818_vm8 }
 0x1b4   : > { %v816_v12 = vadd.f32 %v2312_v61, %v815_v9  ;;  %v847_v34 = vadd.f32 0.112945676, %v846_v42  ;;  %v1072_v11 = vadd.f32 0.00028619796, %v1071_v19  ;;  %v1711_v49 = vmul.f32 2.1237322e-06, %v3537_v55 }
 0x1b5   : > { %1955 = vmatmul.f32.gmra.mxu3 %v1843_v25  ;;  %v1454_v23 = vsub.f32 1.0, %v1453_v29  ;;  %v1486_v51 = vmul.f32 %v1485_v22, %v3121_v18  ;;  %v1461_v57 = vand.u32 2147483647, %v3510_v37  ;;  %v1463_v32 = vand.u32 2147483648, %v3510_v37  ;;  %v394_v25 = vpop.f32.mrf.mxu0 }
 0x1b6   : > { %v820_v58 = vsel %vm819_vm11, %v2312_v61, %v816_v12  ;;  %v848_v31 = vmul.f32 %v847_v34, %v3075_v26  ;;  %vm1458_vm12 = vweird.f32 %v2314_v17  ;;  %vm1457_vm13 = vweird.f32 %v3510_v37 }
 0x1b7   : > { %v825_v48 = vsel %vm3542_vm10, %v824_v45, %v820_v58  ;;  %v1455_v56 = vmul.f32 %v2314_v17, %v1454_v23  ;;  %v1487_v9 = vadd.f32 0.112945676, %v1486_v51  ;;  %v3558_v61 = vadd.f32 %v3224_v0, %v394_v25  ;;  %vm1459_vm14 = vmor %vm1457_vm13, %vm1458_vm12 }
 0x1b8   : > { %v826_v19 = vmul.f32 %v825_v48, %v3251_v39  ;;  %v849_v42 = vadd.f32 0.4994258, %v848_v31  ;;  %v1678_v22 = vadd.f32 0.18741608, %v1677_v46  ;;  %v1712_v12 = vadd.f32 0.00028619796, %v1711_v49 }
 0x1b9   : > { %4142 = vst [vmem:[#allocation19_spill] sm:$0xff] %v3558_v61  ;;  %v1456_v29 = vadd.f32 %v2314_v17, %v1455_v56  ;;  %v1488_v34 = vmul.f32 %v1487_v9, %v3121_v18  ;;  %v1464_v33 = vor.u32 1.1754944e-38, %v1463_v32  ;;  %v882_v23 = vmul.f32 3.8918573e-05, %v3171_v30  ;;  %v4144_v56 = vld [vmem:[#allocation20_spill] sm:$0xff] }
 0x1ba   : > { %v2146_v38 = vclamps-f32 %v826_v19, 1.0  ;;  %v850_v45 = vmul.f32 %v849_v42, %v3075_v26  ;;  %vm1462_vm15 = vcmp.eq.f32.partialorder %v1461_v57, 8.507059e+37  ;;  %v3564_v39 = vmul.f32 0.70710677, %v3558_v61  ;;  %v442_v42 = vpop.f32.mrf.mxu2 }
 0x1bb   : > { %v1460_v51 = vsel %vm1459_vm14, %v2314_v17, %v1456_v29  ;;  %v1489_v37 = vadd.f32 0.4994258, %v1488_v34  ;;  %v1073_v46 = vmul.f32 %v1072_v11, %v3517_v47  ;;  %v1713_v32 = vmul.f32 %v1712_v12, %v3537_v55 }
 0x1bc   : > { %4143 = vst [vmem:[#allocation25_spill] sm:$0xff] %v3564_v39  ;;  %v1796_v31 = vadd.f32 1.0, %v2146_v38  ;;  %v1465_v58 = vsel %vm1462_vm15, %v1464_v33, %v1460_v51  ;;  %v3567_v49 = vadd.f32 1.0, %v850_v45  ;;  %v1109_v26 = vmul.f32 %v3564_v39, %v3564_v39 }
 0x1bd   : > { %v1466_v48 = vmul.f32 %v1465_v58, %v3268_v28  ;;  %v1490_v17 = vmul.f32 %v1489_v37, %v3121_v18  ;;  %v1600_v57 = vadd.f32 1.1283791, %v3530_v52  ;;  %v883_v38 = vadd.f32 0.001143296, %v882_v23 }
 0x1be   : > { %v1828_v25 = vmul.f32 %v1796_v31, %v4144_v56  ;;  %2315 = vrcp.f32 %v3567_v49  ;;  %v999_v11 = vmul.f32 %v3525_v63, %v3381_v15  ;;  %v1639_v28 = vmul.f32 %v3532_v20, %v3422_v13 }
 0x1bf   : > { %v1039_v9 = vmul.f32 %v1038_v53, %v3434_v24  ;;  %v2162_v19 = vclamps-f32 %v1466_v48, 1.0  ;;  %v1679_v29 = vmul.f32 %v1678_v22, %v3465_v2  ;;  %v1074_v18 = vadd.f32 0.0036580483, %v1073_v46 }
 0x1c0   : > { %1910 = vmatmul.f32.gmra.mxu1 %v1828_v25  ;;  %v3583_v52 = vmin.f32 %v1109_v26, 16.0  ;;  %v3585_v12 = vadd.f32 1.0, %v1490_v17  ;;  %v3588_v34 = vmul.f32 0.5, %v3377_v10  ;;  %v1714_v63 = vadd.f32 0.0036580483, %v1713_v32 }
 0x1c1   : > { %v1812_v33 = vadd.f32 1.0, %v2162_v19  ;;  %v861_v45 = vand.u32 2147483647, %v3567_v49  ;;  %v3593_v53 = vadd.f32 %v3224_v0, %v442_v42  ;;  %v884_v20 = vmul.f32 %v883_v38, %v3171_v30 }
 0x1c2   : > { %2317 = vrcp.f32 %v3585_v12  ;;  %v1522_v22 = vmul.f32 3.8918573e-05, %v3182_v60  ;;  %v3597_v23 = vadd.f32 1.1283791, %v999_v11  ;;  %v3599_v51 = vadd.f32 1.1283791, %v1639_v28 }
 0x1c3   : > { %4145 = vst [vmem:[#allocation20_spill] sm:$0xff] %v3593_v53  ;;  %v1844_v10 = vmul.f32 %v1812_v33, %v3162_v50  ;;  %v863_v37 = vand.u32 2147483648, %v3567_v49  ;;  %v3604_v46 = vmul.f32 %v1600_v57, %v3330_v44  ;;  %v3606_v58 = vadd.f32 1.1283791, %v1039_v9 }
 0x1c4   : > { %v2316_v31 = vpop.eup %2315  ;;  %v3608_v0 = vadd.f32 1.1283791, %v1679_v29  ;;  %v1111_v48 = vmul.f32 2.1237322e-06, %v3583_v52  ;;  %v3612_v32 = vmul.f32 %v1074_v18, %v3517_v47  ;;  %v3615_v26 = vmul.f32 %v1714_v63, %v3537_v55 }
 0x1c5   : > { %1958 = vmatmul.f32.gmra.mxu3 %v1844_v10  ;;  %v853_v50 = vmul.f32 %v2316_v31, %v3567_v49  ;;  %vm3618_vm0 = vcmp.eq.f32.partialorder %v861_v45, 8.507059e+37  ;;  %vm857_vm1 = vweird.f32 %v3567_v49  ;;  %v3624_v44 = vmul.f32 0.70710677, %v3593_v53 }
 0x1c6   : > { %v885_v57 = vadd.f32 0.014752088, %v884_v20  ;;  %v1523_v56 = vadd.f32 0.001143296, %v1522_v22  ;;  %v864_v38 = vor.u32 1.1754944e-38, %v863_v37  ;;  %vm1497_vm2 = vweird.f32 %v3585_v12 }
 0x1c7   : > { %4148 = vst [vmem:[#allocation26_spill] sm:$0xff] %v3624_v44  ;;  %v854_v25 = vsub.f32 1.0, %v853_v50  ;;  %v922_v11 = vmul.f32 3.8918573e-05, %v3212_v1  ;;  %v1562_v28 = vmul.f32 3.8918573e-05, %v3246_v5  ;;  %vm858_vm3 = vweird.f32 %v2316_v31 }
 0x1c8   : > { %v2318_v9 = vpop.eup %2317  ;;  %v1112_v19 = vadd.f32 0.00028619796, %v1111_v48  ;;  %v886_v42 = vmul.f32 %v885_v57, %v3171_v30  ;;  %v1524_v29 = vmul.f32 %v1523_v56, %v3182_v60  ;;  %v1501_v45 = vand.u32 2147483647, %v3585_v12  ;;  %vm859_vm4 = vmor %vm857_vm1, %vm858_vm3 }
 0x1c9   : > { %v855_v18 = vmul.f32 %v2316_v31, %v854_v25  ;;  %v1493_v33 = vmul.f32 %v2318_v9, %v3585_v12  ;;  %v923_v63 = vadd.f32 0.001143296, %v922_v11  ;;  %v1749_v20 = vmul.f32 %v3624_v44, %v3624_v44 }
 0x1ca   : > { %v887_v22 = vadd.f32 0.112945676, %v886_v42  ;;  %v1525_v10 = vadd.f32 0.014752088, %v1524_v29  ;;  %v1563_v53 = vadd.f32 0.001143296, %v1562_v28  ;;  %v1113_v57 = vmul.f32 %v1112_v19, %v3583_v52 }
 0x1cb   : > { %v856_v37 = vadd.f32 %v2316_v31, %v855_v18  ;;  %v1494_v48 = vsub.f32 1.0, %v1493_v33  ;;  %v924_v50 = vmul.f32 %v923_v63, %v3212_v1  ;;  %v1503_v56 = vand.u32 2147483648, %v3585_v12 }
 0x1cc   : > { %v888_v25 = vmul.f32 %v887_v22, %v3171_v30  ;;  %v1526_v11 = vmul.f32 %v1525_v10, %v3182_v60  ;;  %vm1498_vm5 = vweird.f32 %v2318_v9  ;;  %v3644_v18 = vmin.f32 %v1749_v20, 16.0 }
 0x1cd   : > { %v860_v61 = vsel %vm859_vm4, %v2316_v31, %v856_v37  ;;  %v1495_v44 = vmul.f32 %v2318_v9, %v1494_v48  ;;  %v925_v42 = vadd.f32 0.014752088, %v924_v50  ;;  %v1564_v49 = vmul.f32 %v1563_v53, %v3246_v5  ;;  %vm1499_vm6 = vmor %vm1497_vm2, %vm1498_vm5 }
 0x1ce   : > { %v865_v29 = vsel %vm3618_vm0, %v864_v38, %v860_v61  ;;  %v889_v28 = vadd.f32 0.4994258, %v888_v25  ;;  %v1527_v63 = vadd.f32 0.112945676, %v1526_v11  ;;  %v1114_v39 = vadd.f32 0.0036580483, %v1113_v57 }
 0x1cf   : > { %v866_v19 = vmul.f32 %v865_v29, %v3281_v40  ;;  %v1496_v33 = vadd.f32 %v2318_v9, %v1495_v44  ;;  %v926_v22 = vmul.f32 %v925_v42, %v3212_v1  ;;  %vm1502_vm7 = vcmp.eq.f32.partialorder %v1501_v45, 8.507059e+37  ;;  %v4149_v25 = vld [vmem:[#allocation22_spill] sm:$0xff] }
 0x1d0   : > { %v1504_v31 = vor.u32 1.1754944e-38, %v1503_v56  ;;  %v890_v17 = vmul.f32 %v889_v28, %v3171_v30  ;;  %v1528_v20 = vmul.f32 %v1527_v63, %v3182_v60  ;;  %v1751_v40 = vmul.f32 2.1237322e-06, %v3644_v18 }
 0x1d1   : > { %v2147_v61 = vclamps-f32 %v866_v19, 1.0  ;;  %v1500_v38 = vsel %vm1499_vm6, %v2318_v9, %v1496_v33  ;;  %v927_v10 = vadd.f32 0.112945676, %v926_v22  ;;  %v1565_v37 = vadd.f32 0.014752088, %v1564_v49 }
 0x1d2   : > { %v1505_v53 = vsel %vm1502_vm7, %v1504_v31, %v1500_v38  ;;  %v3654_v44 = vadd.f32 1.0, %v890_v17  ;;  %v1529_v12 = vadd.f32 0.4994258, %v1528_v20  ;;  %v3660_v30 = vmul.f32 %v3597_v23, %v3350_v21 }
 0x1d3   : > { %v1797_v48 = vadd.f32 1.0, %v2147_v61  ;;  %v1506_v50 = vmul.f32 %v1505_v53, %v3318_v41  ;;  %v928_v45 = vmul.f32 %v927_v10, %v3212_v1  ;;  %v3663_v9 = vmul.f32 0.5, %v3394_v59 }
 0x1d4   : > { %v1076_v57 = vadd.f32 0.05243302, %v3612_v32  ;;  %2319 = vrcp.f32 %v3654_v44  ;;  %v3669_v56 = vmul.f32 %v3599_v51, %v3389_v36  ;;  %v1716_v41 = vadd.f32 0.05243302, %v3615_v26 }
 0x1d5   : > { %v1829_v11 = vmul.f32 %v1797_v48, %v4149_v25  ;;  %v2163_v42 = vclamps-f32 %v1506_v50, 1.0  ;;  %v1115_v29 = vmul.f32 %v1114_v39, %v3583_v52  ;;  %v1752_v21 = vadd.f32 0.00028619796, %v1751_v40 }
 0x1d6   : > { %v1530_v23 = vmul.f32 %v1529_v12, %v3182_v60  ;;  %v929_v59 = vadd.f32 0.4994258, %v928_v45  ;;  %v3677_v32 = vmul.f32 %v3606_v58, %v3403_v62  ;;  %v3681_v28 = vmul.f32 %v3608_v0, %v3452_v6 }
 0x1d7   : > { %1913 = vmatmul.f32.gmra.mxu1 %v1829_v11  ;;  %v1813_v36 = vadd.f32 1.0, %v2163_v42  ;;  %v1566_v51 = vmul.f32 %v1565_v37, %v3246_v5  ;;  %v3685_v26 = vmul.f32 %v1076_v57, %v3517_v47  ;;  %v962_v49 = vmul.f32 3.8918573e-05, %v3296_v27 }
 0x1d8   : > { %v3687_v39 = vadd.f32 1.0, %v1530_v23  ;;  %v930_v60 = vmul.f32 %v929_v59, %v3212_v1  ;;  %v3692_v62 = vmul.f32 %v1716_v41, %v3537_v55  ;;  %v901_v6 = vand.u32 2147483647, %v3654_v44 }
 0x1d9   : > { %v1845_v58 = vmul.f32 %v1813_v36, %v3264_v35  ;;  %v1567_v0 = vadd.f32 0.112945676, %v1566_v51  ;;  %v3696_v33 = vadd.f32 0.05243302, %v1115_v29  ;;  %v3699_v63 = vmul.f32 %v1752_v21, %v3644_v18 }
 0x1da   : > { %v2320_v19 = vpop.eup %2319  ;;  %v903_v22 = vand.u32 2147483648, %v3654_v44  ;;  %2321 = vrcp.f32 %v3687_v39  ;;  %v3704_v31 = vadd.f32 1.0, %v930_v60  ;;  %v1602_v35 = vmul.f32 3.8918573e-05, %v3354_v8 }
 0x1db   : > { %1961 = vmatmul.f32.gmra.mxu3 %v1845_v58  ;;  %v893_v1 = vmul.f32 %v2320_v19, %v3654_v44  ;;  %v1002_v17 = vmul.f32 3.8918573e-05, %v3381_v15  ;;  %vm897_vm8 = vweird.f32 %v3654_v44  ;;  %v1543_v61 = vand.u32 2147483648, %v3687_v39 }
 0x1dc   : > { %v1568_v38 = vmul.f32 %v1567_v0, %v3246_v5  ;;  %v963_v20 = vadd.f32 0.001143296, %v962_v49  ;;  %vm3711_vm9 = vcmp.eq.f32.partialorder %v901_v6, 8.507059e+37  ;;  %v1541_v40 = vand.u32 2147483647, %v3687_v39 }
 0x1dd   : > { %v894_v10 = vsub.f32 1.0, %v893_v1  ;;  %2323 = vrcp.f32 %v3704_v31  ;;  %vm898_vm10 = vweird.f32 %v2320_v19  ;;  %v904_v37 = vor.u32 1.1754944e-38, %v903_v22 }
 0x1de   : > { %v943_v48 = vand.u32 2147483648, %v3704_v31  ;;  %v1569_v50 = vadd.f32 0.4994258, %v1568_v38  ;;  %v964_v45 = vmul.f32 %v963_v20, %v3296_v27  ;;  %v1603_v57 = vadd.f32 0.001143296, %v1602_v35  ;;  %vm899_vm13 = vmor %vm897_vm8, %vm898_vm10 }
 0x1df   : > { %v895_v12 = vmul.f32 %v2320_v19, %v894_v10  ;;  %v1003_v41 = vadd.f32 0.001143296, %v1002_v17  ;;  %vm1537_vm11 = vweird.f32 %v3687_v39  ;;  %v1544_v11 = vor.u32 1.1754944e-38, %v1543_v61 }
 0x1e0   : > { %v2322_v25 = vpop.eup %2321  ;;  %v941_v42 = vand.u32 2147483647, %v3704_v31  ;;  %v1570_v29 = vmul.f32 %v1569_v50, %v3246_v5  ;;  %vm3723_vm12 = vcmp.eq.f32.partialorder %v1541_v40, 8.507059e+37  ;;  %v965_v36 = vadd.f32 0.014752088, %v964_v45 }
 0x1e1   : > { %v896_v21 = vadd.f32 %v2320_v19, %v895_v12  ;;  %v1533_v23 = vmul.f32 %v2322_v25, %v3687_v39  ;;  %v1642_v51 = vmul.f32 3.8918573e-05, %v3422_v13  ;;  %vm937_vm14 = vweird.f32 %v3704_v31 }
 0x1e2   : > { %v944_v60 = vor.u32 1.1754944e-38, %v943_v48  ;;  %v3732_v49 = vadd.f32 1.0, %v1570_v29  ;;  %v1604_v5 = vmul.f32 %v1603_v57, %v3354_v8  ;;  %v966_v22 = vmul.f32 %v965_v36, %v3296_v27 }
 0x1e3   : > { %v2324_v58 = vpop.eup %2323  ;;  %v900_v6 = vsel %vm899_vm13, %v2320_v19, %v896_v21  ;;  %v1534_v0 = vsub.f32 1.0, %v1533_v23  ;;  %v1004_v1 = vmul.f32 %v1003_v41, %v3381_v15  ;;  %vm1538_vm15 = vweird.f32 %v2322_v25 }
 0x1e4   : > { %v905_v35 = vsel %vm3711_vm9, %v904_v37, %v900_v6  ;;  %v933_v44 = vmul.f32 %v2324_v58, %v3704_v31  ;;  %vm3740_vm0 = vcmp.eq.f32.partialorder %v941_v42, 8.507059e+37  ;;  %2325 = vrcp.f32 %v3732_v49  ;;  %vm1539_vm2 = vmor %vm1537_vm11, %vm1538_vm15 }
 0x1e5   : > { %v906_v61 = vmul.f32 %v905_v35, %v3358_v54  ;;  %v1535_v19 = vmul.f32 %v2322_v25, %v1534_v0  ;;  %v1643_v38 = vadd.f32 0.001143296, %v1642_v51  ;;  %v1042_v20 = vmul.f32 3.8918573e-05, %v3434_v24 }
 0x1e6   : > { %v934_v10 = vsub.f32 1.0, %v933_v44  ;;  %vm938_vm1 = vweird.f32 %v2324_v58  ;;  %v967_v40 = vadd.f32 0.112945676, %v966_v22  ;;  %v1605_v53 = vadd.f32 0.014752088, %v1604_v5 }
 0x1e7   : > { %v2148_v37 = vclamps-f32 %v906_v61, 1.0  ;;  %v1536_v48 = vadd.f32 %v2322_v25, %v1535_v19  ;;  %v1581_v50 = vand.u32 2147483647, %v3732_v49  ;;  %v1005_v12 = vadd.f32 0.014752088, %v1004_v1  ;;  %vm939_vm3 = vmor %vm937_vm14, %vm938_vm1 }
 0x1e8   : > { %v935_v45 = vmul.f32 %v2324_v58, %v934_v10  ;;  %v1583_v54 = vand.u32 2147483648, %v3732_v49  ;;  %v968_v57 = vmul.f32 %v967_v40, %v3296_v27  ;;  %v1606_v41 = vmul.f32 %v1605_v53, %v3354_v8 }
 0x1e9   : > { %v1798_v42 = vadd.f32 1.0, %v2148_v37  ;;  %v1540_v29 = vsel %vm1539_vm2, %v2322_v25, %v1536_v48  ;;  %v1006_v21 = vmul.f32 %v1005_v12, %v3381_v15  ;;  %v1644_v23 = vmul.f32 %v1643_v38, %v3422_v13 }
 0x1ea   : > { %v2326_v36 = vpop.eup %2325  ;;  %v1545_v51 = vsel %vm3723_vm12, %v1544_v11, %v1540_v29  ;;  %v936_v5 = vadd.f32 %v2324_v58, %v935_v45  ;;  %v969_v39 = vadd.f32 0.4994258, %v968_v57  ;;  %v1607_v6 = vadd.f32 0.112945676, %v1606_v41 }
 0x1eb   : > { %v1830_v0 = vmul.f32 %v1798_v42, %v3277_v3  ;;  %v1546_v22 = vmul.f32 %v1545_v51, %v3361_v43  ;;  %v1573_v25 = vmul.f32 %v2326_v36, %v3732_v49  ;;  %vm1578_vm4 = vweird.f32 %v2326_v36 }
 0x1ec   : > { %v940_v1 = vsel %vm939_vm3, %v2324_v58, %v936_v5  ;;  %v970_v35 = vmul.f32 %v969_v39, %v3296_v27  ;;  %v1608_v59 = vmul.f32 %v1607_v6, %v3354_v8  ;;  %v1007_v11 = vadd.f32 0.112945676, %v1006_v21 }
 0x1ed   : > { %1916 = vmatmul.f32.gmra.mxu1 %v1830_v0  ;;  %v2164_v44 = vclamps-f32 %v1546_v22, 1.0  ;;  %v945_v3 = vsel %vm3740_vm0, %v944_v60, %v940_v1  ;;  %v1574_v61 = vsub.f32 1.0, %v1573_v25  ;;  %v1645_v43 = vadd.f32 0.014752088, %v1644_v23  ;;  %v4159_v23 = vld [vmem:[#allocation13_spill] sm:$0xff] }
 0x1ee   : > { %v946_v19 = vmul.f32 %v945_v3, %v3406_v7  ;;  %v3769_v31 = vadd.f32 1.0, %v970_v35  ;;  %v1609_v38 = vadd.f32 0.4994258, %v1608_v59  ;;  %v1008_v10 = vmul.f32 %v1007_v11, %v3381_v15  ;;  %v4158_v7 = vld [vmem:[#allocation12_spill] sm:$0xff] }
 0x1ef   : > { %v1814_v58 = vadd.f32 1.0, %v2164_v44  ;;  %v1575_v40 = vmul.f32 %v2326_v36, %v1574_v61  ;;  %v1646_v27 = vmul.f32 %v1645_v43, %v3422_v13  ;;  %v1043_v53 = vadd.f32 0.001143296, %v1042_v20 }
 0x1f0   : > { %v2149_v37 = vclamps-f32 %v946_v19, 1.0  ;;  %vm1577_vm5 = vweird.f32 %v3732_v49  ;;  %vm3774_vm6 = vcmp.eq.f32.partialorder %v1581_v50, 8.507059e+37  ;;  %2327 = vrcp.f32 %v3769_v31 }
 0x1f1   : > { %v1846_v60 = vmul.f32 %v1814_v58, %v4158_v7  ;;  %v1576_v48 = vadd.f32 %v2326_v36, %v1575_v40  ;;  %v981_v12 = vand.u32 2147483647, %v3769_v31  ;;  %v1610_v45 = vmul.f32 %v1609_v38, %v3354_v8  ;;  %vm1579_vm7 = vmor %vm1577_vm5, %vm1578_vm4 }
 0x1f2   : > { %v1799_v57 = vadd.f32 1.0, %v2149_v37  ;;  %v1584_v20 = vor.u32 1.1754944e-38, %v1583_v54  ;;  %v1009_v41 = vadd.f32 0.4994258, %v1008_v10  ;;  %v1647_v42 = vadd.f32 0.112945676, %v1646_v27 }
 0x1f3   : > { %1964 = vmatmul.f32.gmra.mxu3 %v1846_v60  ;;  %v1580_v49 = vsel %vm1579_vm7, %v2326_v36, %v1576_v48  ;;  %v983_v50 = vand.u32 2147483648, %v3769_v31  ;;  %v3784_v29 = vadd.f32 1.0, %v1610_v45  ;;  %v1044_v21 = vmul.f32 %v1043_v53, %v3434_v24  ;;  %v4162_v10 = vld [vmem:[#allocation14_spill] sm:$0xff] }
 0x1f4   : > { %v1831_v51 = vmul.f32 %v1799_v57, %v4159_v23  ;;  %v1585_v5 = vsel %vm3774_vm6, %v1584_v20, %v1580_v49  ;;  %v1010_v8 = vmul.f32 %v1009_v41, %v3381_v15  ;;  %v1648_v39 = vmul.f32 %v1647_v42, %v3422_v13 }
 0x1f5   : > { %v3793_v54 = vadd.f32 0.18741608, %v3685_v26  ;;  %v3796_v36 = vadd.f32 0.18741608, %v3692_v62  ;;  %v1586_v6 = vmul.f32 %v1585_v5, %v3475_v16  ;;  %2329 = vrcp.f32 %v3784_v29 }
 0x1f6   : > { %v2328_v0 = vpop.eup %2327  ;;  %v3802_v22 = vmul.f32 %v3696_v33, %v3583_v52  ;;  %1919 = vmatmul.f32.gmra.mxu1 %v1831_v51  ;;  %v3804_v25 = vadd.f32 1.0, %v1010_v8  ;;  %v1649_v15 = vadd.f32 0.4994258, %v1648_v39  ;;  %v1045_v1 = vadd.f32 0.014752088, %v1044_v21 }
 0x1f7   : > { %v3807_v26 = vadd.f32 0.0036580483, %v3699_v63  ;;  %v2165_v35 = vclamps-f32 %v1586_v6, 1.0  ;;  %v973_v62 = vmul.f32 %v2328_v0, %v3769_v31  ;;  %vm977_vm8 = vweird.f32 %v3769_v31 }
 0x1f8   : > { %vm3811_vm9 = vcmp.eq.f32.partialorder %v981_v12, 8.507059e+37  ;;  %v984_v59 = vor.u32 1.1754944e-38, %v983_v50  ;;  %v1621_v33 = vand.u32 2147483647, %v3784_v29  ;;  %2331 = vrcp.f32 %v3804_v25 }
 0x1f9   : > { %v1815_v11 = vadd.f32 1.0, %v2165_v35  ;;  %v974_v44 = vsub.f32 1.0, %v973_v62  ;;  %v1623_v3 = vand.u32 2147483648, %v3784_v29  ;;  %v1650_v63 = vmul.f32 %v1649_v15, %v3422_v13 }
 0x1fa   : > { %vm978_vm10 = vweird.f32 %v2328_v0  ;;  %vm1617_vm11 = vweird.f32 %v3784_v29  ;;  %v1021_v61 = vand.u32 2147483647, %v3804_v25  ;;  %v1046_v43 = vmul.f32 %v1045_v1, %v3434_v24 }
 0x1fb   : > { %v1682_v19 = vmul.f32 3.8918573e-05, %v3465_v2  ;;  %v2330_v38 = vpop.eup %2329  ;;  %v1847_v58 = vmul.f32 %v1815_v11, %v4162_v10  ;;  %v975_v40 = vmul.f32 %v2328_v0, %v974_v44  ;;  %v1023_v27 = vand.u32 2147483648, %v3804_v25  ;;  %vm979_vm13 = vmor %vm977_vm8, %vm978_vm10  ;;  %v4167_v10 = vld [vmem:[#allocation15_spill] sm:$0xff] }
 0x1fc   : > { %v3825_v53 = vadd.f32 1.0, %v1650_v63  ;;  %v1613_v37 = vmul.f32 %v2330_v38, %v3784_v29  ;;  %vm3828_vm12 = vcmp.eq.f32.partialorder %v1621_v33, 8.507059e+37  ;;  %v1047_v17 = vadd.f32 0.112945676, %v1046_v43 }
 0x1fd   : > { %v1683_v7 = vadd.f32 0.001143296, %v1682_v19  ;;  %1967 = vmatmul.f32.gmra.mxu3 %v1847_v58  ;;  %v976_v60 = vadd.f32 %v2328_v0, %v975_v40  ;;  %v1624_v48 = vor.u32 1.1754944e-38, %v1623_v3  ;;  %v1082_v12 = vmul.f32 3.8918573e-05, %v3517_v47 }
 0x1fe   : > { %2333 = vrcp.f32 %v3825_v53  ;;  %v2332_v45 = vpop.eup %2331  ;;  %v1614_v57 = vsub.f32 1.0, %v1613_v37  ;;  %vm1017_vm14 = vweird.f32 %v3804_v25  ;;  %v1048_v20 = vmul.f32 %v1047_v17, %v3434_v24 }
 0x1ff   : > { %v1684_v41 = vmul.f32 %v1683_v7, %v3465_v2  ;;  %v980_v42 = vsel %vm979_vm13, %v2328_v0, %v976_v60  ;;  %v1013_v49 = vmul.f32 %v2332_v45, %v3804_v25  ;;  %vm3841_vm15 = vcmp.eq.f32.partialorder %v1021_v61, 8.507059e+37 }
 0x200   : > { %v1024_v21 = vor.u32 1.1754944e-38, %v1023_v27  ;;  %v985_v23 = vsel %vm3811_vm9, %v984_v59, %v980_v42  ;;  %v1615_v31 = vmul.f32 %v2330_v38, %v1614_v57  ;;  %vm1618_vm0 = vweird.f32 %v2330_v38 }
 0x201   : > { %v1049_v51 = vadd.f32 0.4994258, %v1048_v20  ;;  %v986_v5 = vmul.f32 %v985_v23, %v3523_v14  ;;  %v1014_v8 = vsub.f32 1.0, %v1013_v49  ;;  %v1685_v39 = vadd.f32 0.014752088, %v1684_v41  ;;  %vm1619_vm2 = vmor %vm1617_vm11, %vm1618_vm0 }
 0x202   : > { %v1083_v6 = vadd.f32 0.001143296, %v1082_v12  ;;  %v1616_v15 = vadd.f32 %v2330_v38, %v1615_v31  ;;  %vm1657_vm1 = vweird.f32 %v3825_v53  ;;  %v1661_v0 = vand.u32 2147483647, %v3825_v53 }
 0x203   : > { %v1663_v1 = vand.u32 2147483648, %v3825_v53  ;;  %v1050_v35 = vmul.f32 %v1049_v51, %v3434_v24  ;;  %v2150_v16 = vclamps-f32 %v986_v5, 1.0  ;;  %v1015_v59 = vmul.f32 %v2332_v45, %v1014_v8 }
 0x204   : > { %v2334_v62 = vpop.eup %2333  ;;  %vm1018_vm3 = vweird.f32 %v2332_v45  ;;  %v1686_v14 = vmul.f32 %v1685_v39, %v3465_v2  ;;  %v1620_v33 = vsel %vm1619_vm2, %v2330_v38, %v1616_v15  ;;  %v1084_v3 = vmul.f32 %v1083_v6, %v3517_v47 }
 0x205   : > { %v1653_v11 = vmul.f32 %v2334_v62, %v3825_v53  ;;  %v3856_v44 = vadd.f32 1.0, %v1050_v35  ;;  %v1800_v63 = vadd.f32 1.0, %v2150_v16  ;;  %v1625_v24 = vsel %vm3828_vm12, %v1624_v48, %v1620_v33  ;;  %vm1019_vm4 = vmor %vm1017_vm14, %vm1018_vm3 }
 0x206   : > { %v1016_v61 = vadd.f32 %v2332_v45, %v1015_v59  ;;  %v1687_v43 = vadd.f32 0.112945676, %v1686_v14  ;;  %v1626_v29 = vmul.f32 %v1625_v24, %v3604_v46  ;;  %v1722_v38 = vmul.f32 3.8918573e-05, %v3537_v55 }
 0x207   : > { %v1654_v19 = vsub.f32 1.0, %v1653_v11  ;;  %2335 = vrcp.f32 %v3856_v44  ;;  %v1832_v58 = vmul.f32 %v1800_v63, %v4167_v10  ;;  %vm1658_vm5 = vweird.f32 %v2334_v62 }
 0x208   : > { %v1020_v40 = vsel %vm1019_vm4, %v2332_v45, %v1016_v61  ;;  %v1122_v27 = vmul.f32 3.8918573e-05, %v3583_v52  ;;  %v2166_v37 = vclamps-f32 %v1626_v29, 1.0  ;;  %v1688_v46 = vmul.f32 %v1687_v43, %v3465_v2  ;;  %vm1659_vm7 = vmor %vm1657_vm1, %vm1658_vm5 }
 0x209   : > { %v1025_v13 = vsel %vm3841_vm15, %v1024_v21, %v1020_v40  ;;  %v1655_v17 = vmul.f32 %v2334_v62, %v1654_v19  ;;  %1922 = vmatmul.f32.gmra.mxu1 %v1832_v58  ;;  %vm3872_vm6 = vcmp.eq.f32.partialorder %v1661_v0, 8.507059e+37  ;;  %v1664_v60 = vor.u32 1.1754944e-38, %v1663_v1  ;;  %v4170_v21 = vld [vmem:[#allocation23_spill] sm:$0xff] }
 0x20a   : > { %v1026_v25 = vmul.f32 %v1025_v13, %v3660_v30  ;;  %v1085_v48 = vadd.f32 0.014752088, %v1084_v3  ;;  %v1816_v12 = vadd.f32 1.0, %v2166_v37  ;;  %v1689_v57 = vadd.f32 0.4994258, %v1688_v46 }
 0x20b   : > { %v1656_v45 = vadd.f32 %v2334_v62, %v1655_v17  ;;  %v1723_v20 = vadd.f32 0.001143296, %v1722_v38  ;;  %v1123_v49 = vadd.f32 0.001143296, %v1122_v27  ;;  %v1762_v30 = vmul.f32 3.8918573e-05, %v3644_v18 }
 0x20c   : > { %v2151_v41 = vclamps-f32 %v1026_v25, 1.0  ;;  %v1086_v42 = vmul.f32 %v1085_v48, %v3517_v47  ;;  %v1848_v23 = vmul.f32 %v1816_v12, %v4170_v21  ;;  %v1690_v51 = vmul.f32 %v1689_v57, %v3465_v2 }
 0x20d   : > { %v2336_v50 = vpop.eup %2335  ;;  %v1660_v31 = vsel %vm1659_vm7, %v2334_v62, %v1656_v45  ;;  %v1724_v5 = vmul.f32 %v1723_v20, %v3537_v55  ;;  %v1755_v8 = vmul.f32 %v3807_v26, %v3644_v18  ;;  %v1124_v16 = vmul.f32 %v1123_v49, %v3583_v52 }
 0x20e   : > { %v1801_v39 = vadd.f32 1.0, %v2151_v41  ;;  %v1665_v53 = vsel %vm3872_vm6, %v1664_v60, %v1660_v31  ;;  %v1053_v6 = vmul.f32 %v2336_v50, %v3856_v44  ;;  %1970 = vmatmul.f32.gmra.mxu3 %v1848_v23  ;;  %v3890_v0 = vadd.f32 1.0, %v1690_v51  ;;  %v3924_v23 = vld [vmem:[%s4088_s4] ss:$0 sm:$0xff] }
 0x20f   : > { %v1666_v15 = vmul.f32 %v1665_v53, %v3669_v56  ;;  %v1087_v1 = vadd.f32 0.112945676, %v1086_v42  ;;  %v1725_v35 = vadd.f32 0.014752088, %v1724_v5  ;;  %v1763_v59 = vadd.f32 0.001143296, %v1762_v30 }
 0x210   : > { %v1833_v2 = vmul.f32 %v1801_v39, %v3468_v4  ;;  %v1054_v62 = vsub.f32 1.0, %v1053_v6  ;;  %v1061_v14 = vand.u32 2147483647, %v3856_v44  ;;  %v1063_v33 = vand.u32 2147483648, %v3856_v44 }
 0x211   : > { %v2167_v26 = vclamps-f32 %v1666_v15, 1.0  ;;  %2337 = vrcp.f32 %v3890_v0  ;;  %vm1058_vm8 = vweird.f32 %v2336_v50  ;;  %v1088_v56 = vmul.f32 %v1087_v1, %v3517_v47 }
 0x212   : > { %1925 = vmatmul.f32.gmra.mxu1 %v1833_v2  ;;  %v1055_v11 = vmul.f32 %v2336_v50, %v1054_v62  ;;  %v1726_v3 = vmul.f32 %v1725_v35, %v3537_v55  ;;  %v1756_v63 = vadd.f32 0.05243302, %v1755_v8  ;;  %v1125_v24 = vadd.f32 0.014752088, %v1124_v16  ;;  %v4171_v16 = vld [vmem:[#allocation16_spill] sm:$0xff] }
 0x213   : > { %v1817_v4 = vadd.f32 1.0, %v2167_v26  ;;  %v1764_v61 = vmul.f32 %v1763_v59, %v3644_v18  ;;  %vm1057_vm9 = vweird.f32 %v3856_v44  ;;  %v1089_v29 = vadd.f32 0.4994258, %v1088_v56  ;;  %v4172_v26 = vld [vmem:[#allocation21_spill] sm:$0xff] }
 0x214   : > { %v1056_v43 = vadd.f32 %v2336_v50, %v1055_v11  ;;  %v1727_v19 = vadd.f32 0.112945676, %v1726_v3  ;;  %vm1059_vm10 = vmor %vm1057_vm9, %vm1058_vm8  ;;  %v1064_v10 = vor.u32 1.1754944e-38, %v1063_v33  ;;  %v1126_v58 = vmul.f32 %v1125_v24, %v3583_v52 }
 0x215   : > { %v1849_v38 = vmul.f32 %v1817_v4, %v3588_v34  ;;  %v1765_v40 = vadd.f32 0.014752088, %v1764_v61  ;;  %vm1062_vm11 = vcmp.eq.f32.partialorder %v1061_v14, 8.507059e+37  ;;  %v1090_v37 = vmul.f32 %v1089_v29, %v3517_v47  ;;  %v4173_v4 = vld [vmem:[#allocation17_spill] sm:$0xff] }
 0x216   : > { %v1060_v27 = vsel %vm1059_vm10, %v2336_v50, %v1056_v43  ;;  %v1728_v13 = vmul.f32 %v1727_v19, %v3537_v55  ;;  %v1079_v46 = vmul.f32 %v3793_v54, %v3517_v47  ;;  %v1127_v25 = vadd.f32 0.112945676, %v1126_v58  ;;  %v1890_v50 = vpop.f32.mrf.mxu1 }
 0x217   : > { %v2338_v17 = vpop.eup %2337  ;;  %1973 = vmatmul.f32.gmra.mxu3 %v1849_v38  ;;  %v1065_v44 = vsel %vm1062_vm11, %v1064_v10, %v1060_v27  ;;  %v1766_v34 = vmul.f32 %v1765_v40, %v3644_v18  ;;  %v1719_v7 = vmul.f32 %v3796_v36, %v3537_v55  ;;  %v3912_v12 = vadd.f32 1.0, %v1090_v37 }
 0x218   : > { %v1066_v60 = vmul.f32 %v1065_v44, %v3677_v32  ;;  %v1693_v48 = vmul.f32 %v2338_v17, %v3890_v0  ;;  %v1118_v45 = vadd.f32 0.18741608, %v3802_v22  ;;  %v1729_v57 = vadd.f32 0.4994258, %v1728_v13 }
 0x219   : > { %v1128_v20 = vmul.f32 %v1127_v25, %v3583_v52  ;;  %v1767_v47 = vadd.f32 0.112945676, %v1766_v34  ;;  %v1757_v54 = vmul.f32 %v1756_v63, %v3644_v18  ;;  %2339 = vrcp.f32 %v3912_v12 }
 0x21a   : > { %v2152_v41 = vclamps-f32 %v1066_v60, 1.0  ;;  %v1694_v42 = vsub.f32 1.0, %v1693_v48  ;;  %v1701_v36 = vand.u32 2147483647, %v3890_v0  ;;  %v1703_v32 = vand.u32 2147483648, %v3890_v0 }
 0x21b   : > { %v1730_v49 = vmul.f32 %v1729_v57, %v3537_v55  ;;  %v1129_v30 = vadd.f32 0.4994258, %v1128_v20  ;;  %vm1698_vm12 = vweird.f32 %v2338_v17  ;;  %v1768_v31 = vmul.f32 %v1767_v47, %v3644_v18 }
 0x21c   : > { %v1802_v21 = vadd.f32 1.0, %v2152_v41  ;;  %v1695_v22 = vmul.f32 %v2338_v17, %v1694_v42  ;;  %v1119_v51 = vmul.f32 %v1118_v45, %v3583_v52  ;;  %vm1697_vm13 = vweird.f32 %v3890_v0 }
 0x21d   : > { %v3929_v5 = vadd.f32 1.0, %v1730_v49  ;;  %v1130_v55 = vmul.f32 %v1129_v30, %v3583_v52  ;;  %v1891_v53 = vadd.f32 %v3924_v23, %v1890_v50  ;;  %v1769_v6 = vadd.f32 0.4994258, %v1768_v31  ;;  %vm1699_vm14 = vmor %vm1697_vm13, %vm1698_vm12 }
 0x21e   : > { %v1834_v8 = vmul.f32 %v1802_v21, %v3663_v9  ;;  %v1696_v39 = vadd.f32 %v2338_v17, %v1695_v22  ;;  %v1080_v15 = vadd.f32 1.1283791, %v1079_v46  ;;  %v1758_v1 = vadd.f32 0.18741608, %v1757_v54  ;;  %v1938_v9 = vpop.f32.mrf.mxu3  ;;  %v1893_v19 = vpop.f32.mrf.mxu1 }
 0x21f   : > { %v1704_v35 = vor.u32 1.1754944e-38, %v1703_v32  ;;  %2341 = vrcp.f32 %v3929_v5  ;;  %v2340_v2 = vpop.eup %2339  ;;  %vm1702_vm15 = vcmp.eq.f32.partialorder %v1701_v36, 8.507059e+37  ;;  %v3935_v62 = vadd.f32 1.0, %v1130_v55  ;;  %1986 = vst [vmem:[%s3939_s15] sm:$0xff] %v1891_v53 }
 0x220   : > { %1928 = vmatmul.f32.gmra.mxu1 %v1834_v8  ;;  %v1700_v0 = vsel %vm1699_vm14, %v2338_v17, %v1696_v39  ;;  %v1770_v52 = vmul.f32 %v1769_v6, %v3644_v18  ;;  %v474_v59 = vmul.f32 0.5, %v4171_v16  ;;  %v3945_v14 = vmul.f32 0.5, %v4172_v26  ;;  %v4175_v17 = vld [vmem:[#allocation25_spill] sm:$0xff] }
 0x221   : > { %v1705_v33 = vsel %vm1702_vm15, %v1704_v35, %v1700_v0  ;;  %v1093_v11 = vmul.f32 %v2340_v2, %v3912_v12  ;;  %v1720_v56 = vadd.f32 1.1283791, %v1719_v7  ;;  %v1120_v3 = vadd.f32 1.1283791, %v1119_v51 }
 0x222   : > { %v1706_v63 = vmul.f32 %v1705_v33, %v3681_v28  ;;  %2343 = vrcp.f32 %v3935_v62  ;;  %v1081_v24 = vmul.f32 %v1080_v15, %v4173_v4  ;;  %v1759_v61 = vmul.f32 %v1758_v1, %v3644_v18  ;;  %v4174_v18 = vld [vmem:[#allocation24_spill] sm:$0xff] }
 0x223   : > { %v1094_v43 = vsub.f32 1.0, %v1093_v11  ;;  %v3952_v29 = vadd.f32 1.0, %v1770_v52  ;;  %v1103_v10 = vand.u32 2147483648, %v3912_v12  ;;  %v1894_v58 = vadd.f32 %v3924_v23, %v1893_v19 }
 0x224   : > { %v2168_v38 = vclamps-f32 %v1706_v63, 1.0  ;;  %v1939_v40 = vadd.f32 %v3924_v23, %v1938_v9  ;;  %vm1098_vm0 = vweird.f32 %v2340_v2  ;;  %v1101_v37 = vand.u32 2147483647, %v3912_v12 }
 0x225   : > { %v2342_v28 = vpop.eup %2341  ;;  %v1095_v27 = vmul.f32 %v2340_v2, %v1094_v43  ;;  %2345 = vrcp.f32 %v3952_v29  ;;  %v1721_v13 = vmul.f32 %v1720_v56, %v4174_v18  ;;  %v3961_v46 = vmul.f32 %v1120_v3, %v4175_v17  ;;  %1987 = vst [vmem:[%s3939_s15 + $0x8] sm:$0xff] %v1894_v58  ;;  %v4179_v43 = vld [vmem:[#allocation26_spill] sm:$0xff] }
 0x226   : > { %v1818_v44 = vadd.f32 1.0, %v2168_v38  ;;  %v1733_v25 = vmul.f32 %v2342_v28, %v3929_v5  ;;  %v1760_v34 = vadd.f32 1.1283791, %v1759_v61  ;;  %vm1097_vm1 = vweird.f32 %v3912_v12  ;;  %2002 = vst [vmem:[%s3939_s15 + $0x80] sm:$0xff] %v1939_v40  ;;  %v1941_v54 = vpop.f32.mrf.mxu3  ;;  %v1896_v31 = vpop.f32.mrf.mxu1 }
 0x227   : > { %v1096_v7 = vadd.f32 %v2340_v2, %v1095_v27  ;;  %v1741_v60 = vand.u32 2147483647, %v3929_v5  ;;  %vm1099_vm2 = vmor %vm1097_vm1, %vm1098_vm0  ;;  %v1104_v57 = vor.u32 1.1754944e-38, %v1103_v10  ;;  %v1743_v47 = vand.u32 2147483648, %v3929_v5 }
 0x228   : > { %v2344_v48 = vpop.eup %2343  ;;  %v1850_v45 = vmul.f32 %v1818_v44, %v474_v59  ;;  %v1734_v20 = vsub.f32 1.0, %v1733_v25  ;;  %vm1102_vm3 = vcmp.eq.f32.partialorder %v1101_v37, 8.507059e+37  ;;  %v1143_v36 = vand.u32 2147483648, %v3935_v62 }
 0x229   : > { %v1100_v41 = vsel %vm1099_vm2, %v2340_v2, %v1096_v7  ;;  %v1133_v42 = vmul.f32 %v2344_v48, %v3935_v62  ;;  %vm1738_vm4 = vweird.f32 %v2342_v28  ;;  %v1942_v49 = vadd.f32 %v3924_v23, %v1941_v54 }
 0x22a   : > { %1976 = vmatmul.f32.gmra.mxu3 %v1850_v45  ;;  %v1105_v12 = vsel %vm1102_vm3, %v1104_v57, %v1100_v41  ;;  %v1735_v32 = vmul.f32 %v2342_v28, %v1734_v20  ;;  %vm1737_vm5 = vweird.f32 %v3929_v5  ;;  %vm3974_vm6 = vcmp.eq.f32.partialorder %v1741_v60, 8.507059e+37  ;;  %v4181_v60 = vld [vmem:[#allocation20_spill] sm:$0xff] }
 0x22b   : > { %v2346_v30 = vpop.eup %2345  ;;  %v1106_v50 = vmul.f32 %v1105_v12, %v1081_v24  ;;  %v1134_v22 = vsub.f32 1.0, %v1133_v42  ;;  %v1744_v55 = vor.u32 1.1754944e-38, %v1743_v47  ;;  %v1897_v39 = vadd.f32 %v3924_v23, %v1896_v31  ;;  %2003 = vst [vmem:[%s3939_s15 + $0x88] sm:$0xff] %v1942_v49  ;;  %vm1739_vm7 = vmor %vm1737_vm5, %vm1738_vm4  ;;  %v4178_v24 = vld [vmem:[#allocation18_spill] sm:$0xff] }
 0x22c   : > { %v1736_v51 = vadd.f32 %v2342_v28, %v1735_v32  ;;  %v1773_v8 = vmul.f32 %v2346_v30, %v3952_v29  ;;  %vm1138_vm8 = vweird.f32 %v2344_v48  ;;  %v1141_v5 = vand.u32 2147483647, %v3935_v62 }
 0x22d   : > { %v2153_v53 = vclamps-f32 %v1106_v50, 1.0  ;;  %v1135_v6 = vmul.f32 %v2344_v48, %v1134_v22  ;;  %vm1137_vm9 = vweird.f32 %v3935_v62  ;;  %v1144_v1 = vor.u32 1.1754944e-38, %v1143_v36  ;;  %1988 = vst [vmem:[%s3939_s15 + $0x10] sm:$0xff] %v1897_v39 }
 0x22e   : > { %v1740_v15 = vsel %vm1739_vm7, %v2342_v28, %v1736_v51  ;;  %v1774_v35 = vsub.f32 1.0, %v1773_v8  ;;  %v1783_v9 = vand.u32 2147483648, %v3952_v29  ;;  %vm1139_vm10 = vmor %vm1137_vm9, %vm1138_vm8  ;;  %vm1778_vm11 = vweird.f32 %v2346_v30  ;;  %v1944_v33 = vpop.f32.mrf.mxu3  ;;  %v1899_v10 = vpop.f32.mrf.mxu1 }
 0x22f   : > { %v1803_v2 = vadd.f32 1.0, %v2153_v53  ;;  %v1745_v0 = vsel %vm3974_vm6, %v1744_v55, %v1740_v15  ;;  %v1136_v52 = vadd.f32 %v2344_v48, %v1135_v6  ;;  %v1781_v26 = vand.u32 2147483647, %v3952_v29 }
 0x230   : > { %v1746_v16 = vmul.f32 %v1745_v0, %v1721_v13  ;;  %v1775_v59 = vmul.f32 %v2346_v30, %v1774_v35  ;;  %vm1142_vm12 = vcmp.eq.f32.partialorder %v1141_v5, 8.507059e+37  ;;  %v1945_v56 = vadd.f32 %v3924_v23, %v1944_v33  ;;  %v4180_v13 = vld [vmem:[#allocation19_spill] sm:$0xff] }
 0x231   : > { %v1835_v62 = vmul.f32 %v1803_v2, %v3945_v14  ;;  %v1140_v11 = vsel %vm1139_vm10, %v2344_v48, %v1136_v52  ;;  %vm1777_vm13 = vweird.f32 %v3952_v29  ;;  %v475_v61 = vmul.f32 0.5, %v4178_v24 }
 0x232   : > { %v2169_v3 = vclamps-f32 %v1746_v16, 1.0  ;;  %v1145_v63 = vsel %vm1142_vm12, %v1144_v1, %v1140_v11  ;;  %v1776_v4 = vadd.f32 %v2346_v30, %v1775_v59  ;;  %v1761_v19 = vmul.f32 %v1760_v34, %v4179_v43  ;;  %vm1779_vm14 = vmor %vm1777_vm13, %vm1778_vm11  ;;  %2004 = vst [vmem:[%s3939_s15 + $0x90] sm:$0xff] %v1945_v56 }
 0x233   : > { %1931 = vmatmul.f32.gmra.mxu1 %v1835_v62  ;;  %v1146_v38 = vmul.f32 %v1145_v63, %v3961_v46  ;;  %v1784_v14 = vor.u32 1.1754944e-38, %v1783_v9  ;;  %vm1782_vm15 = vcmp.eq.f32.partialorder %v1781_v26, 8.507059e+37  ;;  %v1900_v28 = vadd.f32 %v3924_v23, %v1899_v10 }
 0x234   : > { %v1819_v58 = vadd.f32 1.0, %v2169_v3  ;;  %v1780_v40 = vsel %vm1779_vm14, %v2346_v30, %v1776_v4  ;;  %v460_v17 = vmul.f32 0.5, %v4180_v13  ;;  %v476_v48 = vmul.f32 0.5, %v4181_v60 }
 0x235   : > { %v2154_v27 = vclamps-f32 %v1146_v38, 1.0  ;;  %v1785_v29 = vsel %vm1782_vm15, %v1784_v14, %v1780_v40  ;;  %1989 = vst [vmem:[%s3939_s15 + $0x18] sm:$0xff] %v1900_v28 }
 0x236   : > { %v1851_v37 = vmul.f32 %v1819_v58, %v475_v61  ;;  %v1786_v18 = vmul.f32 %v1785_v29, %v1761_v19  ;;  %v1947_v25 = vpop.f32.mrf.mxu3  ;;  %v1902_v57 = vpop.f32.mrf.mxu1 }
 0x237   : > { %v1804_v46 = vadd.f32 1.0, %v2154_v27  ;;  %v1948_v7 = vadd.f32 %v3924_v23, %v1947_v25  ;;  %v1903_v47 = vadd.f32 %v3924_v23, %v1902_v57 }
 0x238   : > { %1979 = vmatmul.f32.gmra.mxu3 %v1851_v37  ;;  %v2170_v44 = vclamps-f32 %v1786_v18, 1.0 }
 0x239   : > { %v1836_v34 = vmul.f32 %v1804_v46, %v460_v17  ;;  %2005 = vst [vmem:[%s3939_s15 + $0x98] sm:$0xff] %v1948_v7 }
 0x23a   : > { %v1820_v45 = vadd.f32 1.0, %v2170_v44  ;;  %1990 = vst [vmem:[%s3939_s15 + $0x20] sm:$0xff] %v1903_v47 }
 0x23b   : > { %1934 = vmatmul.f32.gmra.mxu1 %v1836_v34 }
 0x23c   : > { %v1852_v20 = vmul.f32 %v1820_v45, %v476_v48 }
 0x23e   : > { %v1950_v54 = vpop.f32.mrf.mxu3  ;;  %v1905_v42 = vpop.f32.mrf.mxu1 }
 0x23f   : > { %v1951_v41 = vadd.f32 %v3924_v23, %v1950_v54  ;;  %v1906_v36 = vadd.f32 %v3924_v23, %v1905_v42 }
 0x240   : > { %1982 = vmatmul.f32.gmra.mxu3 %v1852_v20 }
 0x241   : > { %2006 = vst [vmem:[%s3939_s15 + $0xa0] sm:$0xff] %v1951_v41 }
 0x242   : > { %1991 = vst [vmem:[%s3939_s15 + $0x28] sm:$0xff] %v1906_v36 }
 0x246   : > { %v1953_v12 = vpop.f32.mrf.mxu3  ;;  %v1908_v49 = vpop.f32.mrf.mxu1 }
 0x247   : > { %v1954_v32 = vadd.f32 %v3924_v23, %v1953_v12  ;;  %v1909_v30 = vadd.f32 %v3924_v23, %v1908_v49 }
 0x249   : > { %2007 = vst [vmem:[%s3939_s15 + $0xa8] sm:$0xff] %v1954_v32 }
 0x24a   : > { %1992 = vst [vmem:[%s3939_s15 + $0x30] sm:$0xff] %v1909_v30 }
 0x24e   : > { %v1956_v50 = vpop.f32.mrf.mxu3  ;;  %v1911_v22 = vpop.f32.mrf.mxu1 }
 0x24f   : > { %v1957_v21 = vadd.f32 %v3924_v23, %v1956_v50  ;;  %v1912_v31 = vadd.f32 %v3924_v23, %v1911_v22 }
 0x251   : > { %2008 = vst [vmem:[%s3939_s15 + $0xb0] sm:$0xff] %v1957_v21 }
 0x252   : > { %1993 = vst [vmem:[%s3939_s15 + $0x38] sm:$0xff] %v1912_v31 }
 0x256   : > { %v1959_v51 = vpop.f32.mrf.mxu3  ;;  %v1914_v8 = vpop.f32.mrf.mxu1 }
 0x257   : > { %v1960_v55 = vadd.f32 %v3924_v23, %v1959_v51  ;;  %v1915_v39 = vadd.f32 %v3924_v23, %v1914_v8 }
 0x259   : > { %2009 = vst [vmem:[%s3939_s15 + $0xb8] sm:$0xff] %v1960_v55 }
 0x25a   : > { %1994 = vst [vmem:[%s3939_s15 + $0x40] sm:$0xff] %v1915_v39 }
 0x25e   : > { %v1962_v53 = vpop.f32.mrf.mxu3 }
 0x25f   : > { %v1963_v6 = vadd.f32 %v3924_v23, %v1962_v53 }
 0x261   : > { %2010 = vst [vmem:[%s3939_s15 + $0xc0] sm:$0xff] %v1963_v6 }
 0x26a   : > { %v1917_v5 = vpop.f32.mrf.mxu1 }
 0x26b   : > { %v1918_v15 = vadd.f32 %v3924_v23, %v1917_v5 }
 0x26d   : > { %1995 = vst [vmem:[%s3939_s15 + $0x48] sm:$0xff] %v1918_v15 }
 0x273   : > { %v1920_v1 = vpop.f32.mrf.mxu1 }
 0x274   : > { %v1921_v35 = vadd.f32 %v3924_v23, %v1920_v1 }
 0x276   : > { %1996 = vst [vmem:[%s3939_s15 + $0x50] sm:$0xff] %v1921_v35  ;;  %v1965_v2 = vpop.f32.mrf.mxu3 }
 0x277   : > { %v1966_v0 = vadd.f32 %v3924_v23, %v1965_v2 }
 0x279   : > { %2011 = vst [vmem:[%s3939_s15 + $0xc8] sm:$0xff] %v1966_v0 }
 0x280   : > { %v1968_v52 = vpop.f32.mrf.mxu3 }
 0x281   : > { %v1969_v9 = vadd.f32 %v3924_v23, %v1968_v52 }
 0x283   : > { %2012 = vst [vmem:[%s3939_s15 + $0xd0] sm:$0xff] %v1969_v9 }
 0x286   : > { %v1923_v16 = vpop.f32.mrf.mxu1 }
 0x287   : > { %v1924_v59 = vadd.f32 %v3924_v23, %v1923_v16 }
 0x289   : > { %1997 = vst [vmem:[%s3939_s15 + $0x58] sm:$0xff] %v1924_v59 }
 0x28f   : > { %v1926_v26 = vpop.f32.mrf.mxu1 }
 0x290   : > { %v1927_v33 = vadd.f32 %v3924_v23, %v1926_v26 }
 0x291   : > { %v1971_v62 = vpop.f32.mrf.mxu3 }
 0x292   : > { %1998 = vst [vmem:[%s3939_s15 + $0x60] sm:$0xff] %v1927_v33  ;;  %v1972_v11 = vadd.f32 %v3924_v23, %v1971_v62 }
 0x294   : > { %2013 = vst [vmem:[%s3939_s15 + $0xd8] sm:$0xff] %v1972_v11 }
 0x29a   : > { %v1974_v56 = vpop.f32.mrf.mxu3 }
 0x29b   : > { %v1975_v3 = vadd.f32 %v3924_v23, %v1974_v56 }
 0x29d   : > { %v1929_v63 = vpop.f32.mrf.mxu1  ;;  %2014 = vst [vmem:[%s3939_s15 + $0xe0] sm:$0xff] %v1975_v3 }
 0x29e   : > { %v1930_v4 = vadd.f32 %v3924_v23, %v1929_v63 }
 0x2a0   : > { %1999 = vst [vmem:[%s3939_s15 + $0x68] sm:$0xff] %v1930_v4 }
 0x2ad   : > { %v1977_v24 = vpop.f32.mrf.mxu3 }
 0x2ae   : > { %v1978_v61 = vadd.f32 %v3924_v23, %v1977_v24 }
 0x2b0   : > { %v1932_v43 = vpop.f32.mrf.mxu1  ;;  %2015 = vst [vmem:[%s3939_s15 + $0xe8] sm:$0xff] %v1978_v61 }
 0x2b1   : > { %v1933_v19 = vadd.f32 %v3924_v23, %v1932_v43 }
 0x2b3   : > { %2000 = vst [vmem:[%s3939_s15 + $0x70] sm:$0xff] %v1933_v19 }
 0x2b8   : > { %v1935_v38 = vpop.f32.mrf.mxu1 }
 0x2b9   : > { %v1936_v14 = vadd.f32 %v3924_v23, %v1935_v38 }
 0x2bb   : > { %2001 = vst [vmem:[%s3939_s15 + $0x78] sm:$0xff] %v1936_v14  ;;  %v1980_v10 = vpop.f32.mrf.mxu3 }
 0x2bc   : > { %v1981_v58 = vadd.f32 %v3924_v23, %v1980_v10 }
 0x2be   : > { %2016 = vst [vmem:[%s3939_s15 + $0xf0] sm:$0xff] %v1981_v58 }
 0x2c3   : > { %v1983_v40 = vpop.f32.mrf.mxu3 }
 0x2c4   : > { %v1984_v28 = vadd.f32 %v3924_v23, %v1983_v40 }
 0x2c6   : > { %2017 = vst [vmem:[%s3939_s15 + $0xf8] sm:$0xff] %v1984_v28 }
 0x2c7   : > { %2465 = shalt.err (!%p2462_p10)
}
 0x2c8   : > { %s2514_s8 = smov 128   ;;  %s2515_s13 = smov 8  }
 0x2c9   : > { %2220 = dma.vmem_to_hbm [thread:$0]  (%p2618_p3), %s2032_s26, 4096, %s2034_s10, %s2019_s16, %s2514_s8, %s2514_s8, %s2515_s13  }
 0x2ca PF: > { %s2048_s15 = sand.u32 1, %s2496_s18   ;;  %p4182_p12 = scmp.ge.s32.totalorder %s2508_s21, 2 }
 0x2cb   : > { %s2049_s27 = scalar_lea.sflag [#allocation4], %s2048_s15 }
 0x2cc   : > { %p2234_p13 = pnand %p4182_p12, %p2581_p6 }
 0x2ce   : > { %p2235_p0 = pneg %p2234_p13 }
 0x2d0   : > { %2491 = dma.done.wait (%p2235_p0), %s2049_s27, 4096  }
 0x2d1   : > { %2493 = vsyncadd (%p2235_p0), %s2049_s27, 4294963200  ;;  %p19_p5 = scmp.ge.s32.totalorder %s2608_s14, 4   ;;  %s4183_s18 = smov %s2500_s19 }
 0x2d2   : > { %s4184_s19 = smov %s2504_s20  ;;  %s4185_s20 = smov %s2624_s23 }
 0x2d3   : > { %s4186_s21 = smov %s2608_s14  ;;  %21 = sbr.rel (!%p19_p5) target bundleno = 6 (0x6), region = 93 }
 0x2d8   :  { %2055 = vsyncpa [#allocation3], 1 }
 0x2d9   :  { %2057 = vsyncpa [#allocation3 + $0x1], 1 }
 0x2da   :  { %2058 = vsyncpa [#allocation6], 1 }
 0x2db   :  { %2059 = vsyncpa [#allocation4], 1 }
 0x2dc   :  { %2061 = vsyncpa [#allocation4 + $0x1], 1 }

// kernel: tpu_custom_call.1
= control target key start
LH: loop header
LB: loop body
LE: loop exit
PB: predicated region body
PF: predicated region fallthrough
CT: control target
= control target key end

     0   :  { %10 = vsyncpa [#allocation3], 0  ;;  %s4084_s0 = inlined_call_operand.hbm [shape: f32[512,128], index: 0, kind: input, shape index: {}]   ;;  %s4085_s1 = inlined_call_operand.hbm [shape: f32[128,128], index: 1, kind: input, shape index: {}]   ;;  %s4086_s2 = inlined_call_operand.vmem [shape: f32[1,128], index: 2, kind: input, shape index: {}]   ;;  %s4087_s3 = inlined_call_operand.hbm [shape: f32[128,128], index: 3, kind: input, shape index: {}]   ;;  %s4088_s4 = inlined_call_operand.vmem [shape: f32[1,128], index: 4, kind: input, shape index: {}]   ;;  %s4089_s5 = inlined_call_operand.hbm [shape: f32[512,128], index: 5, kind: output, shape index: {}]  }
   0x1   :  { %12 = vsyncpa [#allocation3 + $0x1], 0 }
   0x2   :  { %13 = vsyncpa [#allocation6], 0 }
   0x3   :  { %14 = vsyncpa [#allocation4], 0 }
   0x4   :  { %16 = vsyncpa [#allocation4 + $0x1], 0  ;;  %s2546_s18 = smov 0   ;;  %s2548_s19 = smov 0  }
   0x5   :  { %s2550_s20 = smov 0   ;;  %s2552_s21 = smov 0  }
   0x6 LB: > { %s2567_s22 = sadd.s32 4294967295, %s2508_s21   ;;  %s2126_s23 = sadd.s32 4294967294, %s2508_s21   ;;  %s2508_s21 = sphi %s2552_s21, %s4186_s21   ;;  %s2504_s20 = sphi %s2550_s20, %s4185_s20   ;;  %s2500_s19 = sphi %s2548_s19, %s4184_s19   ;;  %s2496_s18 = sphi %s2546_s18, %s4183_s18  }
   0x7   : > { %p42_p0 = scmp.ne.s32.totalorder %s2500_s19, %s2496_s18  ;;  %p43_p1 = scmp.eq.s32.totalorder %s2567_s22, 0 }
   0x8   : > { %p150_p2 = scmp.eq.s32.totalorder %s2567_s22, 1  ;;  %p156_p3 = scmp.eq.s32.totalorder %s2126_s23, 1 }
   0x9   : > { %p2576_p4 = por %p43_p1, %p42_p0  ;;  %p2127_p5 = scmp.ge.s32.totalorder %s2508_s21, 1 }
   0xa   : > { %p2581_p6 = por %p156_p3, %p42_p0  ;;  %p163_p7 = scmp.lt.s32.totalorder %s2508_s21, 3 }
   0xb   : > { %s174_s28 = sshll.u32 %s4085_s1, 4  ;;  %s2510_s30 = smov [#allocation5]   ;;  %s175_s28 = int_to_ptr.hbm [resolvable:$true] %s174_s28 }
   0xc   : > { %p2589_p8 = pnand %p2127_p5, %p163_p7  ;;  %s176_s6 = sshll.u32 %s2510_s30, 4  ;;  %s177_s6 = int_to_ptr.vmem [resolvable:$true] %s176_s6 }
   0xd   : > { %s191_s9 = sshll.u32 %s4087_s3, 4  ;;  %s4090_s10 = smov 128   ;;  %s192_s9 = int_to_ptr.hbm [resolvable:$true] %s191_s9 }
   0xe   : > { %p2222_p9 = pneg %p2589_p8  ;;  %s2512_s11 = smov 8  }
   0xf   : > { %s2513_s12 = smov [#allocation7]   ;;  %s2608_s14 = sadd.s32 1, %s2508_s21  }
  0x10   : > { %p2223_p10 = pnand %p2222_p9, %p43_p1  ;;  %s193_s13 = sshll.u32 %s2513_s12, 4  ;;  %s194_s13 = int_to_ptr.vmem [resolvable:$true] %s193_s13 }
  0x11   : > { %s29_s15 = sadd.s32 1, %s2504_s20  ;;  %s26_s16 = ssub.s32 %s2508_s21, %s2608_s14 }
  0x12   : > { %2225 = dma.hbm_to_vmem [thread:$0]  (!%p2223_p10), %s175_s28, 2048, %s177_s6, [#allocation6], %s4090_s10, %s4090_s10, %s2512_s11  }
  0x13   : > { %2228 = dma.hbm_to_vmem [thread:$0]  (!%p2223_p10), %s192_s9, 2048, %s194_s13, [#allocation6], %s4090_s10, %s4090_s10, %s2512_s11  }
  0x14   : > { %p36_p12 = scmp.ne.s32.totalorder %s2504_s20, %s2500_s19  ;;  %p27_p13 = scmp.eq.s32.totalorder %s26_s16, 0 }
  0x15   : > { %p37_p0 = scmp.eq.s32.totalorder %s2508_s21, 0  ;;  %p2239_p5 = scmp.lt.s32.totalorder %s2508_s21, 2 }
  0x16   : > { %p2618_p3 = por %p150_p2, %p36_p12  ;;  %s210_s26 = sand.u32 1, %s2504_s20  }
  0x17   : > { %s2624_s23 = scalar_select %p27_p13, %s2504_s20, %s29_s15  }
  0x18   : > { %p38_p7 = por %p37_p0, %p36_p12  ;;  %s2131_s27 = sshll.u32 %s210_s26, 8 }
  0x19   : > { %s2176_s28 = sshll.u32 %s2508_s21, 8  ;;  %s214_s8 = scalar_lea.vmem [#allocation2], %s2131_s27 }
  0x1a   : > { %s219_s7 = scalar_lea.hbm %s4084_s0, %s2176_s28  ;;  %s222_s9 = sshll.u32 %s214_s8, 4  ;;  %s223_s9 = int_to_ptr.vmem [resolvable:$true] %s222_s9 }
  0x1b   : > { %s220_s12 = sshll.u32 %s219_s7, 4  ;;  %p2631_p2 = pnand %p2239_p5, %p38_p7  ;;  %s221_s12 = int_to_ptr.hbm [resolvable:$true] %s220_s12 }
  0x1c   : > { %s211_s15 = scalar_lea.sflag [#allocation3], %s210_s26  ;;  %s2408_s16 = sshra.s32 %s221_s12, 4  ;;  %s2409_s16 = int_to_ptr.hbm [resolvable:$true] %s2408_s16 }
  0x1d   : > { %s2410_s10 = scalar_lea.hbm %s2409_s16, 256  ;;  %p2412_p10 = pneg %p2631_p2 }
  0x1e   : > { %p2411_p9 = scmp.ne.s32.totalorder %s2409_s16, %s2410_s10  ;;  %s2415_s30 = scalar_lea.hbm %s4084_s0, 512 }
  0x1f   : > { %p2416_p0 = scmp.lt.s32.totalorder %s2409_s16, %s4084_s0  ;;  %p2417_p5 = scmp.lt.s32.totalorder %s2415_s30, %s2410_s10 }
  0x20   : > { %p2413_p12 = pnand %p2412_p10, %p2411_p9 }
  0x21   : > { %p2418_p7 = por %p2417_p5, %p2416_p0 }
  0x22   : > { %p2414_p13 = pneg %p2413_p12 }
  0x24   : > { %p2419_p11 = pnand %p2418_p7, %p2414_p13 }
  0x26   : > { %2422 = shalt.err (!%p2419_p11)
}
  0x27   : > { %s4105_s26 = smov 128   ;;  %234 = sbr.rel (%p2589_p8) target bundleno = 714 (0x2ca), region = 40 }
  0x28   : > { %2232 = dma.hbm_to_vmem [thread:$0]  (!%p2631_p2), %s221_s12, 4096, %s223_s9, %s211_s15, %s4105_s26, %s4105_s26, %s2512_s11  }
  0x2c   : > { %s2651_s8 = sand.u32 1, %s2500_s19  }
  0x2d   : > { %s2135_s10 = sshll.u32 %s2651_s8, 8  ;;  %s237_s16 = scalar_lea.sflag [#allocation3], %s2651_s8 }
  0x2e   : > { %s2657_s28 = scalar_lea.vmem [#allocation2], %s2135_s10 }
  0x2f   : > { %2483 = dma.done.wait (%p2576_p4), %s237_s16, 4096  }
  0x30   : > { %2485 = vsyncadd (%p2576_p4), %s237_s16, 4294963200 }
  0x31   : > { %2487 = dma.done.wait (%p43_p1), [#allocation6], 4096  }
  0x32   : > { %2489 = vsyncadd (%p43_p1), [#allocation6], 4294963200  ;;  %v295_v0 = vld [vmem:[#allocation5 + $0x78] sm:$0xff]  ;;  %v294_v1 = vld [vmem:[#allocation5 + $0x70] sm:$0xff]  ;;  %s3939_s15 = scalar_lea.vmem [#allocation8], %s2135_s10  ;;  %s2177_s27 = sshll.u32 %s2567_s22, 8 }
  0x33   : > { %332 = vmatpush.msra.mxu0 %v295_v0  ;;  %2178 = vmatpush.msra.mxu2 %v295_v0  ;;  %v293_v2 = vld [vmem:[#allocation5 + $0x68] sm:$0xff]  ;;  %v292_v3 = vld [vmem:[#allocation5 + $0x60] sm:$0xff]  ;;  %v291_v4 = vld [vmem:[#allocation5 + $0x58] sm:$0xff]  ;;  %s2030_s7 = scalar_lea.hbm %s4089_s5, %s2177_s27  ;;  %s2031_s26 = sshll.u32 %s3939_s15, 4  ;;  %s2032_s26 = int_to_ptr.vmem [resolvable:$true] %s2031_s26 }
  0x34   : > { %v290_v5 = vld [vmem:[#allocation5 + $0x50] sm:$0xff]  ;;  %v289_v6 = vld [vmem:[#allocation5 + $0x48] sm:$0xff]  ;;  %v288_v7 = vld [vmem:[#allocation5 + $0x40] sm:$0xff]  ;;  %s2033_s10 = sshll.u32 %s2030_s7, 4  ;;  %s2019_s16 = scalar_lea.sflag [#allocation4], %s2651_s8  ;;  %s2034_s10 = int_to_ptr.hbm [resolvable:$true] %s2033_s10 }
  0x35   : > { %333 = vmatpush.msra.mxu0 %v294_v1  ;;  %2179 = vmatpush.msra.mxu2 %v294_v1  ;;  %v287_v8 = vld [vmem:[#allocation5 + $0x38] sm:$0xff]  ;;  %v286_v9 = vld [vmem:[#allocation5 + $0x30] sm:$0xff]  ;;  %v285_v10 = vld [vmem:[#allocation5 + $0x28] sm:$0xff]  ;;  %s2452_s22 = sshra.s32 %s2034_s10, 4  ;;  %s2458_s11 = scalar_lea.hbm %s4089_s5, 512  ;;  %s2453_s22 = int_to_ptr.hbm [resolvable:$true] %s2452_s22 }
  0x36   : > { %v284_v11 = vld [vmem:[#allocation5 + $0x20] sm:$0xff]  ;;  %v283_v12 = vld [vmem:[#allocation5 + $0x18] sm:$0xff]  ;;  %v282_v13 = vld [vmem:[#allocation5 + $0x10] sm:$0xff]  ;;  %p2459_p11 = scmp.lt.s32.totalorder %s2453_s22, %s4089_s5 }
  0x37   : > { %334 = vmatpush.msra.mxu0 %v293_v2  ;;  %2180 = vmatpush.msra.mxu2 %v293_v2  ;;  %v281_v14 = vld [vmem:[#allocation5 + $0x8] sm:$0xff]  ;;  %v280_v15 = vld [vmem:[#allocation5] sm:$0xff]  ;;  %v298_v20 = vld [vmem:[%s2657_s28 + $0x10] sm:$0xff] }
  0x38   : > { %v296_v16 = vld [vmem:[%s2657_s28] sm:$0xff]  ;;  %v297_v18 = vld [vmem:[%s2657_s28 + $0x8] sm:$0xff]  ;;  %v314_v21 = vld [vmem:[%s2657_s28 + $0x90] sm:$0xff] }
  0x39   : > { %335 = vmatpush.msra.mxu0 %v292_v3  ;;  %2181 = vmatpush.msra.mxu2 %v292_v3  ;;  %v312_v17 = vld [vmem:[%s2657_s28 + $0x80] sm:$0xff]  ;;  %v313_v19 = vld [vmem:[%s2657_s28 + $0x88] sm:$0xff]  ;;  %v299_v22 = vld [vmem:[%s2657_s28 + $0x18] sm:$0xff] }
  0x3a   : > { %v315_v23 = vld [vmem:[%s2657_s28 + $0x98] sm:$0xff]  ;;  %v300_v24 = vld [vmem:[%s2657_s28 + $0x20] sm:$0xff]  ;;  %v301_v26 = vld [vmem:[%s2657_s28 + $0x28] sm:$0xff] }
  0x3b   : > { %336 = vmatpush.msra.mxu0 %v291_v4  ;;  %2182 = vmatpush.msra.mxu2 %v291_v4  ;;  %v316_v25 = vld [vmem:[%s2657_s28 + $0xa0] sm:$0xff]  ;;  %v317_v27 = vld [vmem:[%s2657_s28 + $0xa8] sm:$0xff]  ;;  %v302_v28 = vld [vmem:[%s2657_s28 + $0x30] sm:$0xff] }
  0x3c   : > { %v318_v29 = vld [vmem:[%s2657_s28 + $0xb0] sm:$0xff]  ;;  %v303_v30 = vld [vmem:[%s2657_s28 + $0x38] sm:$0xff]  ;;  %v304_v32 = vld [vmem:[%s2657_s28 + $0x40] sm:$0xff] }
  0x3d   : > { %337 = vmatpush.msra.mxu0 %v290_v5  ;;  %2183 = vmatpush.msra.mxu2 %v290_v5  ;;  %v319_v31 = vld [vmem:[%s2657_s28 + $0xb8] sm:$0xff]  ;;  %v320_v33 = vld [vmem:[%s2657_s28 + $0xc0] sm:$0xff]  ;;  %v305_v34 = vld [vmem:[%s2657_s28 + $0x48] sm:$0xff] }
  0x3e   : > { %v321_v35 = vld [vmem:[%s2657_s28 + $0xc8] sm:$0xff]  ;;  %v306_v36 = vld [vmem:[%s2657_s28 + $0x50] sm:$0xff]  ;;  %v307_v38 = vld [vmem:[%s2657_s28 + $0x58] sm:$0xff] }
  0x3f   : > { %338 = vmatpush.msra.mxu0 %v289_v6  ;;  %2184 = vmatpush.msra.mxu2 %v289_v6  ;;  %v322_v37 = vld [vmem:[%s2657_s28 + $0xd0] sm:$0xff]  ;;  %v323_v39 = vld [vmem:[%s2657_s28 + $0xd8] sm:$0xff]  ;;  %v308_v40 = vld [vmem:[%s2657_s28 + $0x60] sm:$0xff] }
  0x40   : > { %v324_v41 = vld [vmem:[%s2657_s28 + $0xe0] sm:$0xff]  ;;  %v309_v42 = vld [vmem:[%s2657_s28 + $0x68] sm:$0xff]  ;;  %v310_v44 = vld [vmem:[%s2657_s28 + $0x70] sm:$0xff] }
  0x41   : > { %339 = vmatpush.msra.mxu0 %v288_v7  ;;  %2185 = vmatpush.msra.mxu2 %v288_v7  ;;  %v325_v43 = vld [vmem:[%s2657_s28 + $0xe8] sm:$0xff]  ;;  %v326_v45 = vld [vmem:[%s2657_s28 + $0xf0] sm:$0xff]  ;;  %v1868_v46 = vld [vmem:[#allocation7 + $0x78] sm:$0xff] }
  0x42   : > { %v311_v47 = vld [vmem:[%s2657_s28 + $0x78] sm:$0xff]  ;;  %1873 = vmatpush.msra.mxu1 %v1868_v46  ;;  %2194 = vmatpush.msra.mxu3 %v1868_v46  ;;  %v1867_v49 = vld [vmem:[#allocation7 + $0x70] sm:$0xff]  ;;  %v1866_v50 = vld [vmem:[#allocation7 + $0x68] sm:$0xff] }
  0x43   : > { %340 = vmatpush.msra.mxu0 %v287_v8  ;;  %2186 = vmatpush.msra.mxu2 %v287_v8  ;;  %v327_v48 = vld [vmem:[%s2657_s28 + $0xf8] sm:$0xff]  ;;  %v2702_v51 = vld [vmem:[%s4086_s2] ss:$0 sm:$0xff]  ;;  %v1863_v56 = vld [vmem:[#allocation7 + $0x50] sm:$0xff]  ;;  %s2454_s28 = scalar_lea.hbm %s2453_s22, 256 }
  0x44   : > { %1874 = vmatpush.msra.mxu1 %v1867_v49  ;;  %2195 = vmatpush.msra.mxu3 %v1867_v49  ;;  %v1865_v52 = vld [vmem:[#allocation7 + $0x60] sm:$0xff]  ;;  %v1864_v54 = vld [vmem:[#allocation7 + $0x58] sm:$0xff]  ;;  %v1862_v58 = vld [vmem:[#allocation7 + $0x48] sm:$0xff]  ;;  %p2455_p1 = scmp.ne.s32.totalorder %s2453_s22, %s2454_s28  ;;  %p2460_p2 = scmp.lt.s32.totalorder %s2458_s11, %s2454_s28 }
  0x45   : > { %341 = vmatpush.msra.mxu0 %v286_v9  ;;  %2187 = vmatpush.msra.mxu2 %v286_v9  ;;  %v1861_v61 = vld [vmem:[#allocation7 + $0x40] sm:$0xff]  ;;  %v1860_v1 = vld [vmem:[#allocation7 + $0x38] sm:$0xff]  ;;  %v1859_v7 = vld [vmem:[#allocation7 + $0x30] sm:$0xff] }
  0x46   : > { %1875 = vmatpush.msra.mxu1 %v1866_v50  ;;  %2196 = vmatpush.msra.mxu3 %v1866_v50  ;;  %p2456_p4 = pnand %p2455_p1, %p2618_p3  ;;  %p2461_p9 = por %p2460_p2, %p2459_p11 }
  0x47   : > { %342 = vmatpush.msra.mxu0 %v285_v10  ;;  %2188 = vmatpush.msra.mxu2 %v285_v10 }
  0x48   : > { %1876 = vmatpush.msra.mxu1 %v1865_v52  ;;  %2197 = vmatpush.msra.mxu3 %v1865_v52  ;;  %p2457_p8 = pneg %p2456_p4 }
  0x49   : > { %343 = vmatpush.msra.mxu0 %v284_v11  ;;  %2189 = vmatpush.msra.mxu2 %v284_v11  ;;  %v1858_v11 = vld [vmem:[#allocation7 + $0x28] sm:$0xff] }
  0x4a   : > { %1877 = vmatpush.msra.mxu1 %v1864_v54  ;;  %2198 = vmatpush.msra.mxu3 %v1864_v54  ;;  %p2462_p10 = pnand %p2461_p9, %p2457_p8 }
  0x4b   : > { %344 = vmatpush.msra.mxu0 %v283_v12  ;;  %2190 = vmatpush.msra.mxu2 %v283_v12 }
  0x4c   : > { %1878 = vmatpush.msra.mxu1 %v1863_v56  ;;  %2199 = vmatpush.msra.mxu3 %v1863_v56 }
  0x4d   : > { %345 = vmatpush.msra.mxu0 %v282_v13  ;;  %2191 = vmatpush.msra.mxu2 %v282_v13 }
  0x4e   : > { %1879 = vmatpush.msra.mxu1 %v1862_v58  ;;  %2200 = vmatpush.msra.mxu3 %v1862_v58 }
  0x4f   : > { %346 = vmatpush.msra.mxu0 %v281_v14  ;;  %2192 = vmatpush.msra.mxu2 %v281_v14 }
  0x50   : > { %1880 = vmatpush.msra.mxu1 %v1861_v61  ;;  %2201 = vmatpush.msra.mxu3 %v1861_v61 }
  0x51   : > { %347 = vmatpush.msra.mxu0 %v280_v15  ;;  %2193 = vmatpush.msra.mxu2 %v280_v15 }
  0x52   : > { %348 = vmatmul.f32.vlgmr.msra.gmra.mxu0 %v296_v16  ;;  %396 = vmatmul.f32.vlgmr.msra.gmra.mxu2 %v312_v17  ;;  %v1857_v16 = vld [vmem:[#allocation7 + $0x20] sm:$0xff] }
  0x53   : > { %1881 = vmatpush.msra.mxu1 %v1860_v1  ;;  %2202 = vmatpush.msra.mxu3 %v1860_v1 }
  0x55   : > { %1882 = vmatpush.msra.mxu1 %v1859_v7  ;;  %2203 = vmatpush.msra.mxu3 %v1859_v7 }
  0x57   : > { %1883 = vmatpush.msra.mxu1 %v1858_v11  ;;  %2204 = vmatpush.msra.mxu3 %v1858_v11 }
  0x59   : > { %1884 = vmatpush.msra.mxu1 %v1857_v16  ;;  %2205 = vmatpush.msra.mxu3 %v1857_v16 }
  0x5a   : > { %351 = vmatmul.f32.gmra.mxu0 %v297_v18  ;;  %399 = vmatmul.f32.gmra.mxu2 %v313_v19 }
  0x62   : > { %354 = vmatmul.f32.gmra.mxu0 %v298_v20  ;;  %402 = vmatmul.f32.gmra.mxu2 %v314_v21  ;;  %v1856_v21 = vld [vmem:[#allocation7 + $0x18] sm:$0xff] }
  0x63   : > { %1885 = vmatpush.msra.mxu1 %v1856_v21  ;;  %2206 = vmatpush.msra.mxu3 %v1856_v21 }
  0x6a   : > { %357 = vmatmul.f32.gmra.mxu0 %v299_v22  ;;  %405 = vmatmul.f32.gmra.mxu2 %v315_v23 }
  0x72   : > { %360 = vmatmul.f32.gmra.mxu0 %v300_v24  ;;  %408 = vmatmul.f32.gmra.mxu2 %v316_v25 }
  0x7a   : > { %363 = vmatmul.f32.gmra.mxu0 %v301_v26  ;;  %411 = vmatmul.f32.gmra.mxu2 %v317_v27  ;;  %v1855_v26 = vld [vmem:[#allocation7 + $0x10] sm:$0xff] }
  0x7b   : > { %1886 = vmatpush.msra.mxu1 %v1855_v26  ;;  %2207 = vmatpush.msra.mxu3 %v1855_v26 }
  0x82   : > { %366 = vmatmul.f32.gmra.mxu0 %v302_v28  ;;  %414 = vmatmul.f32.gmra.mxu2 %v318_v29 }
  0x8a   : > { %369 = vmatmul.f32.gmra.mxu0 %v303_v30  ;;  %417 = vmatmul.f32.gmra.mxu2 %v319_v31  ;;  %v1854_v31 = vld [vmem:[#allocation7 + $0x8] sm:$0xff] }
  0x8b   : > { %1887 = vmatpush.msra.mxu1 %v1854_v31  ;;  %2208 = vmatpush.msra.mxu3 %v1854_v31 }
  0x92   : > { %372 = vmatmul.f32.gmra.mxu0 %v304_v32  ;;  %420 = vmatmul.f32.gmra.mxu2 %v320_v33 }
  0x9a   : > { %375 = vmatmul.f32.gmra.mxu0 %v305_v34  ;;  %423 = vmatmul.f32.gmra.mxu2 %v321_v35 }
  0xa2   : > { %378 = vmatmul.f32.gmra.mxu0 %v306_v36  ;;  %426 = vmatmul.f32.gmra.mxu2 %v322_v37 }
  0xaa   : > { %381 = vmatmul.f32.gmra.mxu0 %v307_v38  ;;  %429 = vmatmul.f32.gmra.mxu2 %v323_v39  ;;  %v1853_v38 = vld [vmem:[#allocation7] sm:$0xff] }
  0xab   : > { %1888 = vmatpush.msra.mxu1 %v1853_v38  ;;  %2209 = vmatpush.msra.mxu3 %v1853_v38 }
  0xb2   : > { %384 = vmatmul.f32.gmra.mxu0 %v308_v40  ;;  %432 = vmatmul.f32.gmra.mxu2 %v324_v41 }
  0xba   : > { %387 = vmatmul.f32.gmra.mxu0 %v309_v42  ;;  %435 = vmatmul.f32.gmra.mxu2 %v325_v43 }
  0xc2   : > { %390 = vmatmul.f32.gmra.mxu0 %v310_v44  ;;  %438 = vmatmul.f32.gmra.mxu2 %v326_v45 }
  0xca   : > { %393 = vmatmul.f32.gmra.mxu0 %v311_v47  ;;  %441 = vmatmul.f32.gmra.mxu2 %v327_v48 }
  0xcf   : > { %v349_v53 = vpop.f32.mrf.mxu0 }
  0xd0   : > { %v2705_v55 = vadd.f32 %v2702_v51, %v349_v53 }
  0xd2   : > { %v2708_v57 = vmul.f32 0.70710677, %v2705_v55 }
  0xd4   : > { %v509_v59 = vmul.f32 %v2708_v57, %v2708_v57 }
  0xd5   : > { %v397_v60 = vpop.f32.mrf.mxu2 }
  0xd6   : > { %v2712_v62 = vmin.f32 %v509_v59, 16.0  ;;  %v2715_v63 = vadd.f32 %v2702_v51, %v397_v60 }
  0xd7   : > { %v352_v0 = vpop.f32.mrf.mxu0 }
  0xd8   : > { %v2718_v2 = vmul.f32 0.70710677, %v2715_v63  ;;  %v2721_v3 = vadd.f32 %v2702_v51, %v352_v0  ;;  %v522_v4 = vmul.f32 3.8918573e-05, %v2712_v62  ;;  %v511_v14 = vmul.f32 2.1237322e-06, %v2712_v62 }
  0xda   : > { %v1149_v5 = vmul.f32 %v2718_v2, %v2718_v2  ;;  %v2727_v6 = vmul.f32 0.70710677, %v2721_v3  ;;  %v523_v8 = vadd.f32 0.001143296, %v522_v4  ;;  %v512_v25 = vadd.f32 0.00028619796, %v511_v14 }
  0xdc   : > { %v2729_v9 = vmin.f32 %v1149_v5, 16.0  ;;  %v549_v10 = vmul.f32 %v2727_v6, %v2727_v6  ;;  %v524_v13 = vmul.f32 %v523_v8, %v2712_v62  ;;  %v513_v36 = vmul.f32 %v512_v25, %v2712_v62 }
  0xdd   : > { %v400_v12 = vpop.f32.mrf.mxu2 }
  0xde   : > { %v2736_v15 = vadd.f32 %v2702_v51, %v400_v12  ;;  %v1151_v17 = vmul.f32 2.1237322e-06, %v2729_v9  ;;  %v2739_v18 = vmin.f32 %v549_v10, 16.0  ;;  %v525_v20 = vadd.f32 0.014752088, %v524_v13 }
  0xdf   : > { %v355_v19 = vpop.f32.mrf.mxu0  ;;  %v514_v49 = vadd.f32 0.0036580483, %v513_v36 }
  0xe0   : > { %v2742_v22 = vmul.f32 0.70710677, %v2736_v15  ;;  %v2745_v23 = vadd.f32 %v2702_v51, %v355_v19  ;;  %v526_v24 = vmul.f32 %v525_v20, %v2712_v62  ;;  %v1152_v27 = vadd.f32 0.00028619796, %v1151_v17 }
  0xe1   : > { %v551_v28 = vmul.f32 2.1237322e-06, %v2739_v18  ;;  %v515_v4 = vmul.f32 %v514_v49, %v2712_v62  ;;  %v2830_v49 = vmul.f32 0.5, %v2715_v63 }
  0xe2   : > { %v1189_v29 = vmul.f32 %v2742_v22, %v2742_v22  ;;  %v2752_v30 = vmul.f32 0.70710677, %v2745_v23  ;;  %v527_v32 = vadd.f32 0.112945676, %v526_v24  ;;  %v1153_v39 = vmul.f32 %v1152_v27, %v2729_v9 }
  0xe3   : > { %v552_v40 = vadd.f32 0.00028619796, %v551_v28  ;;  %v516_v19 = vadd.f32 0.05243302, %v515_v4 }
  0xe4   : > { %v2754_v33 = vmin.f32 %v1189_v29, 16.0  ;;  %v589_v34 = vmul.f32 %v2752_v30, %v2752_v30  ;;  %v528_v44 = vmul.f32 %v527_v32, %v2712_v62  ;;  %v1154_v50 = vadd.f32 0.0036580483, %v1153_v39 }
  0xe5   : > { %v403_v35 = vpop.f32.mrf.mxu2  ;;  %v553_v52 = vmul.f32 %v552_v40, %v2739_v18  ;;  %v517_v36 = vmul.f32 %v516_v19, %v2712_v62 }
  0xe6   : > { %v2760_v37 = vadd.f32 %v2702_v51, %v403_v35  ;;  %v1191_v41 = vmul.f32 2.1237322e-06, %v2754_v33  ;;  %v2764_v42 = vmin.f32 %v589_v34, 16.0  ;;  %v529_v58 = vadd.f32 0.4994258, %v528_v44 }
  0xe7   : > { %v358_v43 = vpop.f32.mrf.mxu0  ;;  %v1155_v5 = vmul.f32 %v1154_v50, %v2729_v9  ;;  %v554_v7 = vadd.f32 0.0036580483, %v553_v52 }
  0xe8   : > { %v1192_v45 = vadd.f32 0.00028619796, %v1191_v41  ;;  %v591_v46 = vmul.f32 2.1237322e-06, %v2764_v42  ;;  %v2769_v47 = vmul.f32 0.70710677, %v2760_v37  ;;  %v2772_v48 = vadd.f32 %v2702_v51, %v358_v43 }
  0xe9   : > { %v530_v11 = vmul.f32 %v529_v58, %v2712_v62  ;;  %v1156_v20 = vadd.f32 0.05243302, %v1155_v5  ;;  %v555_v21 = vmul.f32 %v554_v7, %v2739_v18 }
  0xea   : > { %v1229_v53 = vmul.f32 %v2769_v47, %v2769_v47  ;;  %v1193_v54 = vmul.f32 %v1192_v45, %v2754_v33  ;;  %v2779_v56 = vmul.f32 0.70710677, %v2772_v48  ;;  %v592_v59 = vadd.f32 0.00028619796, %v591_v46 }
  0xeb   : > { %v2808_v27 = vadd.f32 1.0, %v530_v11  ;;  %v1157_v38 = vmul.f32 %v1156_v20, %v2729_v9  ;;  %v556_v39 = vadd.f32 0.05243302, %v555_v21  ;;  %v2827_v46 = vmul.f32 0.5, %v2705_v55 }
  0xec   : > { %v2781_v61 = vmin.f32 %v1229_v53, 16.0  ;;  %v629_v0 = vmul.f32 %v2779_v56, %v2779_v56  ;;  %v1194_v10 = vadd.f32 0.0036580483, %v1193_v54  ;;  %v593_v12 = vmul.f32 %v592_v59, %v2764_v42 }
  0xed   : > { %v406_v60 = vpop.f32.mrf.mxu2  ;;  %2283 = vrcp.f32 %v2808_v27  ;;  %v518_v59 = vadd.f32 0.18741608, %v517_v36  ;;  %v557_v55 = vmul.f32 %v556_v39, %v2739_v18  ;;  %v2869_v36 = vmul.f32 3.8918573e-05, %v2729_v9 }
  0xee   : > { %v2786_v1 = vadd.f32 %v2702_v51, %v406_v60  ;;  %v1231_v14 = vmul.f32 2.1237322e-06, %v2781_v61  ;;  %v2796_v16 = vmin.f32 %v629_v0, 16.0  ;;  %v1195_v25 = vmul.f32 %v1194_v10, %v2754_v33 }
  0xef   : > { %v361_v8 = vpop.f32.mrf.mxu0  ;;  %v594_v28 = vadd.f32 0.0036580483, %v593_v12  ;;  %v2840_v60 = vmul.f32 0.5, %v2721_v3  ;;  %v1158_v0 = vadd.f32 0.18741608, %v1157_v38  ;;  %v2852_v10 = vmul.f32 0.5, %v2745_v23 }
  0xf0   : > { %v2793_v13 = vmul.f32 0.70710677, %v2786_v1  ;;  %v2799_v17 = vadd.f32 %v2702_v51, %v361_v8  ;;  %v1232_v31 = vadd.f32 0.00028619796, %v1231_v14  ;;  %v631_v32 = vmul.f32 2.1237322e-06, %v2796_v16 }
  0xf1   : > { %v1196_v43 = vadd.f32 0.05243302, %v1195_v25  ;;  %v595_v50 = vmul.f32 %v594_v28, %v2764_v42  ;;  %v2849_v8 = vmul.f32 0.5, %v2736_v15  ;;  %v519_v15 = vmul.f32 %v518_v59, %v2712_v62 }
  0xf2   : > { %v1269_v24 = vmul.f32 %v2793_v13, %v2793_v13  ;;  %v2806_v26 = vmul.f32 0.70710677, %v2799_v17  ;;  %v1233_v52 = vmul.f32 %v1232_v31, %v2781_v61  ;;  %v632_v53 = vadd.f32 0.00028619796, %v631_v32 }
  0xf3   : > { %v1197_v4 = vmul.f32 %v1196_v43, %v2754_v33  ;;  %v596_v11 = vadd.f32 0.05243302, %v595_v50  ;;  %v2857_v14 = vpop.eup %2283  ;;  %v558_v25 = vadd.f32 0.18741608, %v557_v55  ;;  %v1159_v31 = vmul.f32 %v1158_v0, %v2729_v9 }
  0xf4   : > { %v669_v34 = vmul.f32 %v2806_v26, %v2806_v26  ;;  %v2818_v40 = vmin.f32 %v1269_v24, 16.0  ;;  %v1234_v19 = vadd.f32 0.0036580483, %v1233_v52  ;;  %v633_v20 = vmul.f32 %v632_v53, %v2796_v16 }
  0xf5   : > { %v409_v29 = vpop.f32.mrf.mxu2  ;;  %v1198_v32 = vadd.f32 0.18741608, %v1197_v4  ;;  %v597_v38 = vmul.f32 %v596_v11, %v2764_v42  ;;  %v2873_v39 = vmul.f32 0.5, %v2760_v37  ;;  %v559_v59 = vmul.f32 %v558_v25, %v2739_v18 }
  0xf6   : > { %v2814_v35 = vadd.f32 %v2702_v51, %v409_v29  ;;  %v2820_v44 = vmin.f32 %v669_v34, 16.0  ;;  %v1271_v63 = vmul.f32 2.1237322e-06, %v2818_v40  ;;  %v1235_v43 = vmul.f32 %v1234_v19, %v2781_v61 }
  0xf7   : > { %v364_v41 = vpop.f32.mrf.mxu0  ;;  %v634_v50 = vadd.f32 0.0036580483, %v633_v20  ;;  %v1199_v0 = vmul.f32 %v1198_v32, %v2754_v33  ;;  %v598_v11 = vadd.f32 0.18741608, %v597_v38  ;;  %vm538_vm0 = vweird.f32 %v2857_v14 }
  0xf8   : > { %v2823_v45 = vmul.f32 0.70710677, %v2814_v35  ;;  %v2837_v58 = vadd.f32 %v2702_v51, %v364_v41  ;;  %v671_v5 = vmul.f32 2.1237322e-06, %v2820_v44  ;;  %v1272_v23 = vadd.f32 0.00028619796, %v1271_v63 }
  0xf9   : > { %v533_v41 = vmul.f32 %v2857_v14, %v2808_v27  ;;  %v1160_v63 = vadd.f32 1.1283791, %v1159_v31  ;;  %vm537_vm1 = vweird.f32 %v2808_v27 }
  0xfa   : > { %v1309_v54 = vmul.f32 %v2823_v45, %v2823_v45  ;;  %v2855_v3 = vmul.f32 0.70710677, %v2837_v58  ;;  %v672_v34 = vadd.f32 0.00028619796, %v671_v5  ;;  %v1273_v55 = vmul.f32 %v1272_v23, %v2818_v40  ;;  %vm2948_vm2 = vmor %vm537_vm1, %vm538_vm0 }
  0xfb   : > { %v534_v20 = vsub.f32 1.0, %v533_v41  ;;  %v2908_v41 = vmul.f32 %v1160_v63, %v2718_v2  ;;  %v2921_v63 = vmul.f32 0.5, %v2799_v17 }
  0xfc   : > { %v2846_v7 = vmin.f32 %v1309_v54, 16.0  ;;  %v709_v28 = vmul.f32 %v2855_v3, %v2855_v3  ;;  %v520_v54 = vadd.f32 1.1283791, %v519_v15  ;;  %v673_v4 = vmul.f32 %v672_v34, %v2820_v44 }
  0xfd   : > { %v412_v12 = vpop.f32.mrf.mxu2  ;;  %v635_v15 = vmul.f32 %v634_v50, %v2796_v16  ;;  %v1200_v34 = vadd.f32 1.1283791, %v1199_v0  ;;  %4108 = vst [vmem:[#allocation14_spill] sm:$0xff] %v2921_v63 }
  0xfe   : > { %v1311_v21 = vmul.f32 2.1237322e-06, %v2846_v7  ;;  %v2862_v24 = vadd.f32 %v2702_v51, %v412_v12  ;;  %v2886_v37 = vmin.f32 %v709_v28, 16.0  ;;  %v2893_v12 = vmul.f32 0.5, %v2772_v48 }
  0xff   : > { %v367_v29 = vpop.f32.mrf.mxu0  ;;  %v560_v28 = vadd.f32 1.1283791, %v559_v59  ;;  %v521_v32 = vmul.f32 %v520_v54, %v2708_v57  ;;  %v2905_v48 = vmul.f32 0.5, %v2786_v1  ;;  %v674_v38 = vadd.f32 0.0036580483, %v673_v4 }
 0x100   : > { %v2876_v62 = vadd.f32 %v2702_v51, %v367_v29  ;;  %v1312_v52 = vadd.f32 0.00028619796, %v1311_v21  ;;  %v2882_v53 = vmul.f32 0.70710677, %v2862_v24  ;;  %4106 = vst [vmem:[#allocation12_spill] sm:$0xff] %v2893_v12  ;;  %v535_v59 = vmul.f32 %v2857_v14, %v534_v20 }
 0x101   : > { %v1236_v21 = vadd.f32 0.05243302, %v1235_v43  ;;  %v1274_v29 = vadd.f32 0.0036580483, %v1273_v55  ;;  %v711_v31 = vmul.f32 2.1237322e-06, %v2886_v37  ;;  %v599_v55 = vmul.f32 %v598_v11, %v2764_v42 }
 0x102   : > { %v1349_v5 = vmul.f32 %v2882_v53, %v2882_v53  ;;  %v2896_v19 = vmul.f32 0.70710677, %v2876_v62  ;;  %v1313_v25 = vmul.f32 %v1312_v52, %v2846_v7  ;;  %4107 = vst [vmem:[#allocation13_spill] sm:$0xff] %v2905_v48  ;;  %v636_v54 = vadd.f32 0.05243302, %v635_v15 }
 0x103   : > { %v1237_v57 = vmul.f32 %v1236_v21, %v2781_v61  ;;  %v2917_v1 = vmul.f32 %v560_v28, %v2727_v6  ;;  %v1275_v2 = vmul.f32 %v1274_v29, %v2818_v40  ;;  %v712_v4 = vadd.f32 0.00028619796, %v711_v31 }
 0x104   : > { %v2900_v23 = vmin.f32 %v1349_v5, 16.0  ;;  %v749_v50 = vmul.f32 %v2896_v19, %v2896_v19  ;;  %v1314_v0 = vadd.f32 0.0036580483, %v1313_v25  ;;  %v2924_v5 = vmul.f32 %v1200_v34, %v2742_v22 }
 0x105   : > { %v415_v52 = vpop.f32.mrf.mxu2  ;;  %v675_v20 = vmul.f32 %v674_v38, %v2820_v44  ;;  %v2928_v11 = vmul.f32 0.5, %v2814_v35  ;;  %v536_v25 = vadd.f32 %v2857_v14, %v535_v59  ;;  %v600_v17 = vadd.f32 1.1283791, %v599_v55 }
 0x106   : > { %v1351_v43 = vmul.f32 2.1237322e-06, %v2900_v23  ;;  %v2931_v21 = vadd.f32 %v2702_v51, %v415_v52  ;;  %v2933_v6 = vmin.f32 %v749_v50, 16.0  ;;  %v1238_v28 = vadd.f32 0.18741608, %v1237_v57 }
 0x107   : > { %4109 = vst [vmem:[#allocation15_spill] sm:$0xff] %v2928_v11  ;;  %v637_v22 = vmul.f32 %v636_v54, %v2796_v16  ;;  %v1315_v29 = vmul.f32 %v1314_v0, %v2846_v7  ;;  %v1276_v31 = vadd.f32 0.05243302, %v1275_v2  ;;  %v713_v35 = vmul.f32 %v712_v4, %v2886_v37  ;;  %v370_v38 = vpop.f32.mrf.mxu0 }
 0x108   : > { %v1352_v15 = vadd.f32 0.00028619796, %v1351_v43  ;;  %v541_v34 = vand.u32 2147483647, %v2808_v27  ;;  %v676_v43 = vadd.f32 0.05243302, %v675_v20  ;;  %v540_v0 = vsel %vm2948_vm2, %v2857_v14, %v536_v25 }
 0x109   : > { %v2943_v50 = vmul.f32 0.5, %v2837_v58  ;;  %v2946_v52 = vmul.f32 0.70710677, %v2931_v21  ;;  %v543_v55 = vand.u32 2147483648, %v2808_v27  ;;  %v751_v54 = vmul.f32 2.1237322e-06, %v2933_v6 }
 0x10a   : > { %v1353_v57 = vmul.f32 %v1352_v15, %v2900_v23  ;;  %v1163_v58 = vadd.f32 0.001143296, %v2869_v36  ;;  %v638_v2 = vadd.f32 0.18741608, %v637_v22  ;;  %v1316_v4 = vadd.f32 0.05243302, %v1315_v29 }
 0x10b   : > { %4110 = vst [vmem:[#allocation16_spill] sm:$0xff] %v2943_v50  ;;  %v544_v20 = vor.u32 1.1754944e-38, %v543_v55  ;;  %v2960_v50 = vadd.f32 %v2702_v51, %v370_v38  ;;  %v1239_v11 = vmul.f32 %v1238_v28, %v2781_v61  ;;  %v1277_v27 = vmul.f32 %v1276_v31, %v2818_v40 }
 0x10c   : > { %v714_v63 = vadd.f32 0.0036580483, %v713_v35  ;;  %vm542_vm3 = vcmp.eq.f32.partialorder %v541_v34, 8.507059e+37  ;;  %v677_v15 = vmul.f32 %v676_v43, %v2820_v44  ;;  %v1389_v59 = vmul.f32 %v2946_v52, %v2946_v52 }
 0x10d   : > { %v545_v14 = vsel %vm542_vm3, %v544_v20, %v540_v0  ;;  %v1164_v36 = vmul.f32 %v1163_v58, %v2729_v9  ;;  %v2969_v25 = vmul.f32 %v600_v17, %v2752_v30  ;;  %v1354_v22 = vadd.f32 0.0036580483, %v1353_v57 }
 0x10e   : > { %v752_v29 = vadd.f32 0.00028619796, %v751_v54  ;;  %v546_v38 = vmul.f32 %v545_v14, %v521_v32  ;;  %v639_v28 = vmul.f32 %v638_v2, %v2796_v16  ;;  %v1317_v31 = vmul.f32 %v1316_v4, %v2846_v7 }
 0x10f   : > { %v2974_v35 = vmul.f32 0.70710677, %v2960_v50  ;;  %v1165_v34 = vadd.f32 0.014752088, %v1164_v36  ;;  %v1240_v43 = vadd.f32 1.1283791, %v1239_v11  ;;  %v715_v0 = vmul.f32 %v714_v63, %v2886_v37 }
 0x110   : > { %v1278_v55 = vadd.f32 0.18741608, %v1277_v27  ;;  %v2139_v20 = vclamps-f32 %v546_v38, 1.0  ;;  %v678_v58 = vadd.f32 0.18741608, %v677_v15  ;;  %v2977_v48 = vmin.f32 %v1389_v59, 16.0 }
 0x111   : > { %v1166_v30 = vmul.f32 %v1165_v34, %v2729_v9  ;;  %v562_v32 = vmul.f32 3.8918573e-05, %v2739_v18  ;;  %v2982_v17 = vmul.f32 0.5, %v2862_v24  ;;  %v1355_v57 = vmul.f32 %v1354_v22, %v2900_v23  ;;  %v418_v34 = vpop.f32.mrf.mxu2 }
 0x112   : > { %v753_v54 = vmul.f32 %v752_v29, %v2933_v6  ;;  %v1789_v2 = vadd.f32 1.0, %v2139_v20  ;;  %v640_v11 = vadd.f32 1.1283791, %v639_v28  ;;  %v1318_v4 = vadd.f32 0.18741608, %v1317_v31 }
 0x113   : > { %4113 = vst [vmem:[#allocation17_spill] sm:$0xff] %v2982_v17  ;;  %v789_v63 = vmul.f32 %v2974_v35, %v2974_v35  ;;  %v1167_v27 = vadd.f32 0.112945676, %v1166_v30  ;;  %v1279_v15 = vmul.f32 %v1278_v55, %v2818_v40  ;;  %v716_v59 = vadd.f32 0.05243302, %v715_v0 }
 0x114   : > { %v1821_v14 = vmul.f32 %v1789_v2, %v2827_v46  ;;  %v563_v36 = vadd.f32 0.001143296, %v562_v32  ;;  %v679_v24 = vmul.f32 %v678_v58, %v2820_v44  ;;  %v1391_v38 = vmul.f32 2.1237322e-06, %v2977_v48 }
 0x115   : > { %v1168_v22 = vmul.f32 %v1167_v27, %v2729_v9  ;;  %v1202_v29 = vmul.f32 3.8918573e-05, %v2754_v33  ;;  %v1356_v28 = vadd.f32 0.05243302, %v1355_v57  ;;  %v754_v31 = vadd.f32 0.0036580483, %v753_v54 }
 0x116   : > { %1889 = vmatmul.f32.vlgmr.msra.gmra.mxu1 %v1821_v14  ;;  %v564_v20 = vmul.f32 %v563_v36, %v2739_v18  ;;  %v602_v55 = vmul.f32 3.8918573e-05, %v2764_v42  ;;  %v1319_v0 = vmul.f32 %v1318_v4, %v2846_v7  ;;  %v2997_v46 = vmin.f32 %v789_v63, 16.0 }
 0x117   : > { %v1169_v30 = vadd.f32 0.4994258, %v1168_v22  ;;  %v1203_v58 = vadd.f32 0.001143296, %v1202_v29  ;;  %v1280_v32 = vadd.f32 1.1283791, %v1279_v15  ;;  %v717_v2 = vmul.f32 %v716_v59, %v2886_v37 }
 0x118   : > { %v565_v27 = vadd.f32 0.014752088, %v564_v20  ;;  %v603_v17 = vadd.f32 0.001143296, %v602_v55  ;;  %v680_v12 = vadd.f32 1.1283791, %v679_v24  ;;  %v3002_v14 = vadd.f32 %v2702_v51, %v418_v34 }
 0x119   : > { %v1392_v57 = vadd.f32 0.00028619796, %v1391_v38  ;;  %v1170_v54 = vmul.f32 %v1169_v30, %v2729_v9  ;;  %v1357_v36 = vmul.f32 %v1356_v28, %v2900_v23  ;;  %v755_v4 = vmul.f32 %v754_v31, %v2933_v6 }
 0x11a   : > { %v566_v63 = vmul.f32 %v565_v27, %v2739_v18  ;;  %v1204_v22 = vmul.f32 %v1203_v58, %v2754_v33  ;;  %v3009_v15 = vmul.f32 %v1240_v43, %v2769_v47  ;;  %v1320_v59 = vadd.f32 1.1283791, %v1319_v0 }
 0x11b   : > { %v791_v24 = vmul.f32 2.1237322e-06, %v2997_v46  ;;  %v3012_v38 = vadd.f32 1.0, %v1170_v54  ;;  %v718_v9 = vadd.f32 0.18741608, %v717_v2  ;;  %v604_v20 = vmul.f32 %v603_v17, %v2764_v42 }
 0x11c   : > { %v567_v29 = vadd.f32 0.112945676, %v566_v63  ;;  %v1205_v34 = vadd.f32 0.014752088, %v1204_v22  ;;  %v3016_v28 = vmul.f32 %v640_v11, %v2779_v56  ;;  %v3019_v31 = vmul.f32 0.5, %v2876_v62 }
 0x11d   : > { %2285 = vrcp.f32 %v3012_v38  ;;  %v3023_v47 = vmul.f32 0.70710677, %v3002_v14  ;;  %v1358_v43 = vadd.f32 0.18741608, %v1357_v36  ;;  %v756_v55 = vadd.f32 0.05243302, %v755_v4 }
 0x11e   : > { %4114 = vst [vmem:[#allocation18_spill] sm:$0xff] %v3019_v31  ;;  %v1393_v0 = vmul.f32 %v1392_v57, %v2977_v48  ;;  %v568_v30 = vmul.f32 %v567_v29, %v2739_v18  ;;  %v3028_v58 = vmul.f32 %v1280_v32, %v2793_v13  ;;  %v3031_v56 = vmul.f32 0.5, %v2931_v21  ;;  %v373_v57 = vpop.f32.mrf.mxu0 }
 0x11f   : > { %v792_v17 = vadd.f32 0.00028619796, %v791_v24  ;;  %v1206_v62 = vmul.f32 %v1205_v34, %v2754_v33  ;;  %v3035_v11 = vmul.f32 %v680_v12, %v2806_v26  ;;  %v3038_v2 = vmul.f32 %v1320_v59, %v2823_v45 }
 0x120   : > { %4115 = vst [vmem:[#allocation19_spill] sm:$0xff] %v3031_v56  ;;  %v719_v27 = vmul.f32 %v718_v9, %v2886_v37  ;;  %v605_v54 = vadd.f32 0.014752088, %v604_v20  ;;  %v1429_v13 = vmul.f32 %v3023_v47, %v3023_v47  ;;  %v569_v32 = vadd.f32 0.4994258, %v568_v30 }
 0x121   : > { %v3044_v21 = vadd.f32 %v2702_v51, %v373_v57  ;;  %v1207_v36 = vadd.f32 0.112945676, %v1206_v62  ;;  %v1359_v4 = vmul.f32 %v1358_v43, %v2900_v23  ;;  %v757_v26 = vmul.f32 %v756_v55, %v2933_v6 }
 0x122   : > { %v1394_v12 = vadd.f32 0.0036580483, %v1393_v0  ;;  %v3049_v45 = vmul.f32 0.5, %v2960_v50  ;;  %v793_v22 = vmul.f32 %v792_v17, %v2997_v46  ;;  %v570_v59 = vmul.f32 %v569_v32, %v2739_v18 }
 0x123   : > { %v2286_v63 = vpop.eup %2285  ;;  %v3054_v24 = vmul.f32 0.70710677, %v3044_v21  ;;  %v1208_v9 = vmul.f32 %v1207_v36, %v2754_v33  ;;  %v720_v29 = vadd.f32 1.1283791, %v719_v27  ;;  %v606_v20 = vmul.f32 %v605_v54, %v2764_v42 }
 0x124   : > { %4116 = vst [vmem:[#allocation20_spill] sm:$0xff] %v3049_v45  ;;  %v1173_v34 = vmul.f32 %v2286_v63, %v3012_v38  ;;  %v1242_v43 = vmul.f32 3.8918573e-05, %v2781_v61  ;;  %v3060_v55 = vmin.f32 %v1429_v13, 16.0  ;;  %v3062_v50 = vadd.f32 1.0, %v570_v59  ;;  %v421_v59 = vpop.f32.mrf.mxu2 }
 0x125   : > { %v829_v0 = vmul.f32 %v3054_v24, %v3054_v24  ;;  %v1209_v18 = vadd.f32 0.4994258, %v1208_v9  ;;  %v1360_v30 = vadd.f32 1.1283791, %v1359_v4  ;;  %v758_v17 = vadd.f32 0.18741608, %v757_v26 }
 0x126   : > { %v1395_v62 = vmul.f32 %v1394_v12, %v2977_v48  ;;  %v1174_v57 = vsub.f32 1.0, %v1173_v34  ;;  %v794_v27 = vadd.f32 0.0036580483, %v793_v22  ;;  %v1181_v32 = vand.u32 2147483647, %v3012_v38 }
 0x127   : > { %v1183_v54 = vand.u32 2147483648, %v3012_v38  ;;  %2287 = vrcp.f32 %v3062_v50  ;;  %vm1178_vm4 = vweird.f32 %v2286_v63  ;;  %v1210_v36 = vmul.f32 %v1209_v18, %v2754_v33 }
 0x128   : > { %v1175_v13 = vmul.f32 %v2286_v63, %v1174_v57  ;;  %v607_v45 = vadd.f32 0.112945676, %v606_v20  ;;  %v3072_v9 = vmul.f32 %v720_v29, %v2855_v3  ;;  %v1431_v4 = vmul.f32 2.1237322e-06, %v3060_v55 }
 0x129   : > { %v3075_v26 = vmin.f32 %v829_v0, 16.0  ;;  %v1243_v12 = vadd.f32 0.001143296, %v1242_v43  ;;  %v759_v22 = vmul.f32 %v758_v17, %v2933_v6  ;;  %vm1177_vm5 = vweird.f32 %v3012_v38 }
 0x12a   : > { %v1176_v34 = vadd.f32 %v2286_v63, %v1175_v13  ;;  %v3079_v56 = vadd.f32 1.0, %v1210_v36  ;;  %v1396_v57 = vadd.f32 0.05243302, %v1395_v62  ;;  %v795_v33 = vmul.f32 %v794_v27, %v2997_v46  ;;  %vm1179_vm6 = vmor %vm1177_vm5, %vm1178_vm4 }
 0x12b   : > { %v1184_v20 = vor.u32 1.1754944e-38, %v1183_v54  ;;  %v3083_v3 = vadd.f32 %v2702_v51, %v421_v59  ;;  %vm1182_vm7 = vcmp.eq.f32.partialorder %v1181_v32, 8.507059e+37  ;;  %v608_v43 = vmul.f32 %v607_v45, %v2764_v42 }
 0x12c   : > { %v1180_v29 = vsel %vm1179_vm6, %v2286_v63, %v1176_v34  ;;  %2289 = vrcp.f32 %v3079_v56  ;;  %v1432_v17 = vadd.f32 0.00028619796, %v1431_v4  ;;  %v831_v38 = vmul.f32 2.1237322e-06, %v3075_v26 }
 0x12d   : > { %v2288_v0 = vpop.eup %2287  ;;  %v1185_v18 = vsel %vm1182_vm7, %v1184_v20, %v1180_v29  ;;  %v1244_v62 = vmul.f32 %v1243_v12, %v2781_v61  ;;  %v3090_v27 = vmul.f32 %v1360_v30, %v2882_v53  ;;  %v760_v54 = vadd.f32 1.1283791, %v759_v22 }
 0x12e   : > { %v1186_v13 = vmul.f32 %v1185_v18, %v2908_v41  ;;  %v573_v63 = vmul.f32 %v2288_v0, %v3062_v50  ;;  %v1397_v32 = vmul.f32 %v1396_v57, %v2977_v48  ;;  %v796_v36 = vadd.f32 0.05243302, %v795_v33 }
 0x12f   : > { %4117 = vst [vmem:[#allocation21_spill] sm:$0xff] %v3090_v27  ;;  %v581_v45 = vand.u32 2147483647, %v3062_v50  ;;  %v3097_v59 = vmul.f32 0.70710677, %v3083_v3  ;;  %v583_v12 = vand.u32 2147483648, %v3062_v50  ;;  %v1433_v53 = vmul.f32 %v1432_v17, %v3060_v55 }
 0x130   : > { %v2155_v4 = vclamps-f32 %v1186_v13, 1.0  ;;  %v574_v34 = vsub.f32 1.0, %v573_v63  ;;  %v609_v20 = vadd.f32 0.4994258, %v608_v43  ;;  %v832_v30 = vadd.f32 0.00028619796, %v831_v38 }
 0x131   : > { %v1245_v22 = vadd.f32 0.014752088, %v1244_v62  ;;  %v642_v41 = vmul.f32 3.8918573e-05, %v2796_v16  ;;  %vm578_vm8 = vweird.f32 %v2288_v0  ;;  %vm577_vm9 = vweird.f32 %v3062_v50 }
 0x132   : > { %v2290_v29 = vpop.eup %2289  ;;  %v1805_v18 = vadd.f32 1.0, %v2155_v4  ;;  %v575_v57 = vmul.f32 %v2288_v0, %v574_v34  ;;  %v610_v33 = vmul.f32 %v609_v20, %v2764_v42  ;;  %vm3104_vm10 = vcmp.eq.f32.partialorder %v581_v45, 8.507059e+37  ;;  %vm579_vm11 = vmor %vm577_vm9, %vm578_vm8 }
 0x133   : > { %v1213_v43 = vmul.f32 %v2290_v29, %v3079_v56  ;;  %v1469_v17 = vmul.f32 %v3097_v59, %v3097_v59  ;;  %v584_v63 = vor.u32 1.1754944e-38, %v583_v12  ;;  %v1221_v42 = vand.u32 2147483647, %v3079_v56 }
 0x134   : > { %v1837_v38 = vmul.f32 %v1805_v18, %v2830_v49  ;;  %v576_v62 = vadd.f32 %v2288_v0, %v575_v57  ;;  %v3112_v4 = vadd.f32 1.0, %v610_v33  ;;  %v1246_v50 = vmul.f32 %v1245_v22, %v2781_v61  ;;  %v376_v57 = vpop.f32.mrf.mxu0 }
 0x135   : > { %v1214_v34 = vsub.f32 1.0, %v1213_v43  ;;  %v643_v45 = vadd.f32 0.001143296, %v642_v41  ;;  %v833_v31 = vmul.f32 %v832_v30, %v3075_v26  ;;  %v1223_v27 = vand.u32 2147483648, %v3079_v56 }
 0x136   : > { %1937 = vmatmul.f32.vlgmr.msra.gmra.mxu3 %v1837_v38  ;;  %v580_v20 = vsel %vm579_vm11, %v2288_v0, %v576_v62  ;;  %2291 = vrcp.f32 %v3112_v4  ;;  %vm1218_vm12 = vweird.f32 %v2290_v29  ;;  %v3121_v18 = vmin.f32 %v1469_v17, 16.0 }
 0x137   : > { %v585_v49 = vsel %vm3104_vm10, %v584_v63, %v580_v20  ;;  %v1215_v12 = vmul.f32 %v2290_v29, %v1214_v34  ;;  %v1398_v33 = vadd.f32 0.18741608, %v1397_v32  ;;  %v797_v22 = vmul.f32 %v796_v36, %v2997_v46 }
 0x138   : > { %v1434_v41 = vadd.f32 0.0036580483, %v1433_v53  ;;  %v586_v0 = vmul.f32 %v585_v49, %v2917_v1  ;;  %vm1217_vm13 = vweird.f32 %v3079_v56  ;;  %vm1222_vm14 = vcmp.eq.f32.partialorder %v1221_v42, 8.507059e+37 }
 0x139   : > { %v1216_v43 = vadd.f32 %v2290_v29, %v1215_v12  ;;  %v1247_v30 = vadd.f32 0.112945676, %v1246_v50  ;;  %vm1219_vm15 = vmor %vm1217_vm13, %vm1218_vm12  ;;  %v1224_v13 = vor.u32 1.1754944e-38, %v1223_v27  ;;  %v3127_v62 = vadd.f32 %v2702_v51, %v376_v57 }
 0x13a   : > { %v2140_v38 = vclamps-f32 %v586_v0, 1.0  ;;  %v644_v17 = vmul.f32 %v643_v45, %v2796_v16  ;;  %v834_v63 = vadd.f32 0.0036580483, %v833_v31  ;;  %v1471_v36 = vmul.f32 2.1237322e-06, %v3121_v18  ;;  %v424_v31 = vpop.f32.mrf.mxu2 }
 0x13b   : > { %v1220_v32 = vsel %vm1219_vm15, %v2290_v29, %v1216_v43  ;;  %v1248_v53 = vmul.f32 %v1247_v30, %v2781_v61  ;;  %v3133_v34 = vmul.f32 %v760_v54, %v2896_v19  ;;  %v1399_v27 = vmul.f32 %v1398_v33, %v2977_v48 }
 0x13c   : > { %v2292_v1 = vpop.eup %2291  ;;  %v1790_v56 = vadd.f32 1.0, %v2140_v38  ;;  %v1225_v42 = vsel %vm1222_vm14, %v1224_v13, %v1220_v32  ;;  %v645_v50 = vadd.f32 0.014752088, %v644_v17  ;;  %v798_v20 = vadd.f32 0.18741608, %v797_v22 }
 0x13d   : > { %v1226_v49 = vmul.f32 %v1225_v42, %v2924_v5  ;;  %v613_v45 = vmul.f32 %v2292_v1, %v3112_v4  ;;  %v1435_v29 = vmul.f32 %v1434_v41, %v3060_v55  ;;  %v3141_v57 = vmul.f32 0.70710677, %v3127_v62 }
 0x13e   : > { %v1822_v12 = vmul.f32 %v1790_v56, %v2840_v60  ;;  %v1249_v19 = vadd.f32 0.4994258, %v1248_v53  ;;  %v835_v54 = vmul.f32 %v834_v63, %v3075_v26  ;;  %v1472_v43 = vadd.f32 0.00028619796, %v1471_v36 }
 0x13f   : > { %v2156_v0 = vclamps-f32 %v1226_v49, 1.0  ;;  %v614_v30 = vsub.f32 1.0, %v613_v45  ;;  %v623_v33 = vand.u32 2147483648, %v3112_v4  ;;  %v3147_v22 = vadd.f32 %v2702_v51, %v424_v31 }
 0x140   : > { %1892 = vmatmul.f32.gmra.mxu1 %v1822_v12  ;;  %v1250_v5 = vmul.f32 %v1249_v19, %v2781_v61  ;;  %v646_v41 = vmul.f32 %v645_v50, %v2796_v16  ;;  %vm618_vm0 = vweird.f32 %v2292_v1  ;;  %v621_v13 = vand.u32 2147483647, %v3112_v4 }
 0x141   : > { %v1806_v60 = vadd.f32 1.0, %v2156_v0  ;;  %v615_v38 = vmul.f32 %v2292_v1, %v614_v30  ;;  %vm617_vm1 = vweird.f32 %v3112_v4  ;;  %v869_v17 = vmul.f32 %v3141_v57, %v3141_v57 }
 0x142   : > { %v3154_v63 = vadd.f32 1.0, %v1250_v5  ;;  %v3157_v32 = vmul.f32 0.70710677, %v3147_v22  ;;  %v647_v53 = vadd.f32 0.112945676, %v646_v41  ;;  %v3162_v50 = vmul.f32 0.5, %v3002_v14  ;;  %vm619_vm2 = vmor %vm617_vm1, %vm618_vm0 }
 0x143   : > { %v1838_v61 = vmul.f32 %v1806_v60, %v2849_v8  ;;  %v616_v36 = vadd.f32 %v2292_v1, %v615_v38  ;;  %v1282_v56 = vmul.f32 3.8918573e-05, %v2818_v40  ;;  %v1400_v42 = vadd.f32 1.1283791, %v1399_v27 }
 0x144   : > { %v624_v4 = vor.u32 1.1754944e-38, %v623_v33  ;;  %2293 = vrcp.f32 %v3154_v63  ;;  %v799_v49 = vmul.f32 %v798_v20, %v2997_v46  ;;  %vm622_vm3 = vcmp.eq.f32.partialorder %v621_v13, 8.507059e+37  ;;  %v379_v33 = vpop.f32.mrf.mxu0 }
 0x145   : > { %1940 = vmatmul.f32.gmra.mxu3 %v1838_v61  ;;  %v620_v45 = vsel %vm619_vm2, %v2292_v1, %v616_v36  ;;  %v1509_v8 = vmul.f32 %v3157_v32, %v3157_v32  ;;  %v1436_v31 = vadd.f32 0.05243302, %v1435_v29  ;;  %v836_v12 = vadd.f32 0.05243302, %v835_v54 }
 0x146   : > { %v625_v19 = vsel %vm622_vm3, %v624_v4, %v620_v45  ;;  %v648_v27 = vmul.f32 %v647_v53, %v2796_v16  ;;  %v1473_v14 = vmul.f32 %v1472_v43, %v3121_v18  ;;  %v3171_v30 = vmin.f32 %v869_v17, 16.0 }
 0x147   : > { %v626_v0 = vmul.f32 %v625_v19, %v2969_v25  ;;  %v1283_v5 = vadd.f32 0.001143296, %v1282_v56  ;;  %v3174_v20 = vmul.f32 %v1400_v42, %v2946_v52  ;;  %v3177_v1 = vmul.f32 0.5, %v3044_v21 }
 0x148   : > { %v649_v41 = vadd.f32 0.4994258, %v648_v27  ;;  %v3180_v29 = vadd.f32 %v2702_v51, %v379_v33  ;;  %v3182_v60 = vmin.f32 %v1509_v8, 16.0  ;;  %v682_v25 = vmul.f32 3.8918573e-05, %v2820_v44 }
 0x149   : > { %4120 = vst [vmem:[#allocation22_spill] sm:$0xff] %v3177_v1  ;;  %v2141_v54 = vclamps-f32 %v626_v0, 1.0  ;;  %v1284_v43 = vmul.f32 %v1283_v5, %v2818_v40  ;;  %v3186_v13 = vadd.f32 1.1283791, %v799_v49  ;;  %v1437_v52 = vmul.f32 %v1436_v31, %v3060_v55 }
 0x14a   : > { %v2294_v38 = vpop.eup %2293  ;;  %v837_v17 = vmul.f32 %v836_v12, %v3075_v26  ;;  %v650_v21 = vmul.f32 %v649_v41, %v2796_v16  ;;  %v1474_v61 = vadd.f32 0.0036580483, %v1473_v14  ;;  %v871_v51 = vmul.f32 2.1237322e-06, %v3171_v30 }
 0x14b   : > { %v1791_v36 = vadd.f32 1.0, %v2141_v54  ;;  %v1253_v53 = vmul.f32 %v2294_v38, %v3154_v63  ;;  %v1263_v56 = vand.u32 2147483648, %v3154_v63  ;;  %v3197_v4 = vmul.f32 0.70710677, %v3180_v29 }
 0x14c   : > { %v3194_v42 = vadd.f32 1.0, %v650_v21  ;;  %v1285_v49 = vadd.f32 0.014752088, %v1284_v43  ;;  %v1511_v31 = vmul.f32 2.1237322e-06, %v3182_v60  ;;  %v1475_v14 = vmul.f32 %v1474_v61, %v3121_v18 }
 0x14d   : > { %v1823_v45 = vmul.f32 %v1791_v36, %v2852_v10  ;;  %v1254_v8 = vsub.f32 1.0, %v1253_v53  ;;  %v683_v16 = vadd.f32 0.001143296, %v682_v25  ;;  %v1438_v12 = vadd.f32 0.18741608, %v1437_v52 }
 0x14e   : > { %v838_v19 = vadd.f32 0.18741608, %v837_v17  ;;  %2295 = vrcp.f32 %v3194_v42  ;;  %v1322_v27 = vmul.f32 3.8918573e-05, %v2846_v7  ;;  %vm1258_vm4 = vweird.f32 %v2294_v38 }
 0x14f   : > { %1895 = vmatmul.f32.gmra.mxu1 %v1823_v45  ;;  %v1255_v0 = vmul.f32 %v2294_v38, %v1254_v8  ;;  %v1261_v33 = vand.u32 2147483647, %v3154_v63  ;;  %v872_v5 = vadd.f32 0.00028619796, %v871_v51  ;;  %v909_v10 = vmul.f32 %v3197_v4, %v3197_v4 }
 0x150   : > { %v1286_v41 = vmul.f32 %v1285_v49, %v2818_v40  ;;  %v684_v54 = vmul.f32 %v683_v16, %v2820_v44  ;;  %vm1257_vm5 = vweird.f32 %v3154_v63  ;;  %v1264_v25 = vor.u32 1.1754944e-38, %v1263_v56 }
 0x151   : > { %v1256_v43 = vadd.f32 %v2294_v38, %v1255_v0  ;;  %v1512_v52 = vadd.f32 0.00028619796, %v1511_v31  ;;  %v1439_v17 = vmul.f32 %v1438_v12, %v3060_v55  ;;  %vm1259_vm6 = vmor %vm1257_vm5, %vm1258_vm4  ;;  %v1323_v36 = vadd.f32 0.001143296, %v1322_v27  ;;  %v427_v27 = vpop.f32.mrf.mxu2  ;;  %v3224_v0 = vld [vmem:[%s4086_s2] ss:$0 sm:$0xff] }
 0x152   : > { %v1287_v21 = vadd.f32 0.112945676, %v1286_v41  ;;  %v685_v61 = vadd.f32 0.014752088, %v684_v54  ;;  %v839_v51 = vmul.f32 %v838_v19, %v3075_v26  ;;  %v1476_v53 = vadd.f32 0.05243302, %v1475_v14 }
 0x153   : > { %v1260_v45 = vsel %vm1259_vm6, %v2294_v38, %v1256_v43  ;;  %vm1262_vm7 = vcmp.eq.f32.partialorder %v1261_v33, 8.507059e+37  ;;  %v3212_v1 = vmin.f32 %v909_v10, 16.0  ;;  %v873_v56 = vmul.f32 %v872_v5, %v3171_v30 }
 0x154   : > { %v2296_v8 = vpop.eup %2295  ;;  %v1265_v49 = vsel %vm1262_vm7, %v1264_v25, %v1260_v45  ;;  %v1288_v16 = vmul.f32 %v1287_v21, %v2818_v40  ;;  %v686_v63 = vmul.f32 %v685_v61, %v2820_v44  ;;  %v1324_v19 = vmul.f32 %v1323_v36, %v2846_v7 }
 0x155   : > { %v1266_v31 = vmul.f32 %v1265_v49, %v3009_v15  ;;  %v653_v12 = vmul.f32 %v2296_v8, %v3194_v42  ;;  %v1513_v38 = vmul.f32 %v1512_v52, %v3182_v60  ;;  %v3227_v33 = vadd.f32 %v3224_v0, %v427_v27 }
 0x156   : > { %v1289_v14 = vadd.f32 0.4994258, %v1288_v16  ;;  %v687_v10 = vadd.f32 0.112945676, %v686_v63  ;;  %v661_v15 = vand.u32 2147483647, %v3194_v42  ;;  %vm658_vm8 = vweird.f32 %v2296_v8 }
 0x157   : > { %v2157_v5 = vclamps-f32 %v1266_v31, 1.0  ;;  %v654_v41 = vsub.f32 1.0, %v653_v12  ;;  %v663_v54 = vand.u32 2147483648, %v3194_v42  ;;  %v911_v43 = vmul.f32 2.1237322e-06, %v3212_v1 }
 0x158   : > { %v1290_v25 = vmul.f32 %v1289_v14, %v2818_v40  ;;  %v3234_v52 = vmul.f32 0.70710677, %v3227_v33  ;;  %v688_v36 = vmul.f32 %v687_v10, %v2820_v44  ;;  %v1325_v45 = vadd.f32 0.014752088, %v1324_v19 }
 0x159   : > { %v1807_v21 = vadd.f32 1.0, %v2157_v5  ;;  %v655_v61 = vmul.f32 %v2296_v8, %v654_v41  ;;  %v1477_v49 = vmul.f32 %v1476_v53, %v3121_v18  ;;  %v874_v16 = vadd.f32 0.0036580483, %v873_v56  ;;  %v382_v53 = vpop.f32.mrf.mxu0 }
 0x15a   : > { %v3238_v63 = vadd.f32 1.0, %v1290_v25  ;;  %v1549_v31 = vmul.f32 %v3234_v52, %v3234_v52  ;;  %vm657_vm9 = vweird.f32 %v3194_v42  ;;  %v689_v40 = vadd.f32 0.4994258, %v688_v36 }
 0x15b   : > { %v1839_v12 = vmul.f32 %v1807_v21, %v2873_v39  ;;  %v656_v27 = vadd.f32 %v2296_v8, %v655_v61  ;;  %v1514_v14 = vadd.f32 0.0036580483, %v1513_v38  ;;  %vm659_vm10 = vmor %vm657_vm9, %vm658_vm8  ;;  %vm662_vm11 = vcmp.eq.f32.partialorder %v661_v15, 8.507059e+37 }
 0x15c   : > { %v664_v10 = vor.u32 1.1754944e-38, %v663_v54  ;;  %2297 = vrcp.f32 %v3238_v63  ;;  %v912_v19 = vadd.f32 0.00028619796, %v911_v43  ;;  %v3246_v5 = vmin.f32 %v1549_v31, 16.0 }
 0x15d   : > { %1943 = vmatmul.f32.gmra.mxu3 %v1839_v12  ;;  %v660_v56 = vsel %vm659_vm10, %v2296_v8, %v656_v27  ;;  %v1326_v41 = vmul.f32 %v1325_v45, %v2846_v7  ;;  %v3251_v39 = vmul.f32 %v3186_v13, %v2974_v35  ;;  %v1440_v42 = vadd.f32 1.1283791, %v1439_v17 }
 0x15e   : > { %v665_v38 = vsel %vm662_vm11, %v664_v10, %v660_v56  ;;  %v690_v25 = vmul.f32 %v689_v40, %v2820_v44  ;;  %v840_v15 = vadd.f32 1.1283791, %v839_v51  ;;  %v1478_v54 = vadd.f32 0.18741608, %v1477_v49 }
 0x15f   : > { %v666_v21 = vmul.f32 %v665_v38, %v3016_v28  ;;  %v3256_v61 = vadd.f32 %v3224_v0, %v382_v53  ;;  %v875_v8 = vmul.f32 %v874_v16, %v3171_v30  ;;  %v1515_v43 = vmul.f32 %v1514_v14, %v3182_v60  ;;  %v4121_v53 = vld [vmem:[#allocation12_spill] sm:$0xff] }
 0x160   : > { %v1551_v36 = vmul.f32 2.1237322e-06, %v3246_v5  ;;  %v3261_v45 = vadd.f32 1.0, %v690_v25  ;;  %v3264_v35 = vmul.f32 0.5, %v3083_v3  ;;  %v913_v44 = vmul.f32 %v912_v19, %v3212_v1 }
 0x161   : > { %v2142_v13 = vclamps-f32 %v666_v21, 1.0  ;;  %v1327_v17 = vadd.f32 0.112945676, %v1326_v41  ;;  %v3268_v28 = vmul.f32 %v1440_v42, %v3023_v47  ;;  %v3272_v49 = vmul.f32 0.70710677, %v3256_v61 }
 0x162   : > { %v2298_v51 = vpop.eup %2297  ;;  %2299 = vrcp.f32 %v3261_v45  ;;  %v722_v16 = vmul.f32 3.8918573e-05, %v2886_v37  ;;  %v1479_v31 = vmul.f32 %v1478_v54, %v3121_v18  ;;  %v3277_v3 = vmul.f32 0.5, %v3127_v62 }
 0x163   : > { %v1792_v12 = vadd.f32 1.0, %v2142_v13  ;;  %v1293_v27 = vmul.f32 %v2298_v51, %v3238_v63  ;;  %v3281_v40 = vmul.f32 %v840_v15, %v3054_v24  ;;  %v876_v47 = vadd.f32 0.05243302, %v875_v8 }
 0x164   : > { %v1516_v14 = vadd.f32 0.05243302, %v1515_v43  ;;  %v1552_v10 = vadd.f32 0.00028619796, %v1551_v36  ;;  %v914_v19 = vadd.f32 0.0036580483, %v913_v44  ;;  %v1328_v42 = vmul.f32 %v1327_v17, %v2846_v7 }
 0x165   : > { %v1824_v56 = vmul.f32 %v1792_v12, %v4121_v53  ;;  %v1294_v41 = vsub.f32 1.0, %v1293_v27  ;;  %v1301_v38 = vand.u32 2147483647, %v3238_v63  ;;  %v1303_v62 = vand.u32 2147483648, %v3238_v63 }
 0x166   : > { %v949_v25 = vmul.f32 %v3272_v49, %v3272_v49  ;;  %v723_v54 = vadd.f32 0.001143296, %v722_v16  ;;  %v1480_v21 = vadd.f32 1.1283791, %v1479_v31  ;;  %vm1298_vm12 = vweird.f32 %v2298_v51 }
 0x167   : > { %1898 = vmatmul.f32.gmra.mxu1 %v1824_v56  ;;  %v1295_v24 = vmul.f32 %v2298_v51, %v1294_v41  ;;  %v1329_v15 = vadd.f32 0.4994258, %v1328_v42  ;;  %v877_v43 = vmul.f32 %v876_v47, %v3171_v30  ;;  %v1517_v36 = vmul.f32 %v1516_v14, %v3182_v60 }
 0x168   : > { %v2300_v8 = vpop.eup %2299  ;;  %v1553_v13 = vmul.f32 %v1552_v10, %v3246_v5  ;;  %v724_v44 = vmul.f32 %v723_v54, %v2886_v37  ;;  %v915_v17 = vmul.f32 %v914_v19, %v3212_v1  ;;  %vm1297_vm13 = vweird.f32 %v3238_v63 }
 0x169   : > { %v1296_v12 = vadd.f32 %v2298_v51, %v1295_v24  ;;  %v693_v16 = vmul.f32 %v2300_v8, %v3261_v45  ;;  %vm1299_vm14 = vmor %vm1297_vm13, %vm1298_vm12  ;;  %vm1302_vm15 = vcmp.eq.f32.partialorder %v1301_v38, 8.507059e+37  ;;  %v1304_v31 = vor.u32 1.1754944e-38, %v1303_v62 }
 0x16a   : > { %v3296_v27 = vmin.f32 %v949_v25, 16.0  ;;  %v1330_v47 = vmul.f32 %v1329_v15, %v2846_v7  ;;  %v701_v10 = vand.u32 2147483647, %v3261_v45  ;;  %v725_v56 = vadd.f32 0.014752088, %v724_v44 }
 0x16b   : > { %v1300_v53 = vsel %vm1299_vm14, %v2298_v51, %v1296_v12  ;;  %v694_v14 = vsub.f32 1.0, %v693_v16  ;;  %v1554_v42 = vadd.f32 0.0036580483, %v1553_v13  ;;  %v703_v19 = vand.u32 2147483648, %v3261_v45  ;;  %v430_v13 = vpop.f32.mrf.mxu2 }
 0x16c   : > { %v1305_v41 = vsel %vm1302_vm15, %v1304_v31, %v1300_v53  ;;  %v3301_v54 = vadd.f32 1.0, %v1330_v47  ;;  %vm698_vm0 = vweird.f32 %v2300_v8  ;;  %v726_v38 = vmul.f32 %v725_v56, %v2886_v37 }
 0x16d   : > { %v1306_v63 = vmul.f32 %v1305_v41, %v3028_v58  ;;  %v695_v24 = vmul.f32 %v2300_v8, %v694_v14  ;;  %v878_v62 = vadd.f32 0.18741608, %v877_v43  ;;  %v1518_v25 = vadd.f32 0.18741608, %v1517_v36 }
 0x16e   : > { %v951_v7 = vmul.f32 2.1237322e-06, %v3296_v27  ;;  %2301 = vrcp.f32 %v3301_v54  ;;  %vm697_vm1 = vweird.f32 %v3261_v45  ;;  %v1362_v44 = vmul.f32 3.8918573e-05, %v2900_v23 }
 0x16f   : > { %v2158_v51 = vclamps-f32 %v1306_v63, 1.0  ;;  %v696_v15 = vadd.f32 %v2300_v8, %v695_v24  ;;  %v3310_v12 = vmul.f32 0.5, %v3147_v22  ;;  %v916_v58 = vadd.f32 0.05243302, %v915_v17  ;;  %vm699_vm2 = vmor %vm697_vm1, %vm698_vm0  ;;  %v4123_v22 = vld [vmem:[#allocation13_spill] sm:$0xff] }
 0x170   : > { %v704_v16 = vor.u32 1.1754944e-38, %v703_v19  ;;  %v727_v31 = vadd.f32 0.112945676, %v726_v38  ;;  %v1555_v36 = vmul.f32 %v1554_v42, %v3246_v5  ;;  %vm702_vm3 = vcmp.eq.f32.partialorder %v701_v10, 8.507059e+37 }
 0x171   : > { %4122 = vst [vmem:[#allocation12_spill] sm:$0xff] %v3310_v12  ;;  %v1808_v43 = vadd.f32 1.0, %v2158_v51  ;;  %v700_v47 = vsel %vm699_vm2, %v2300_v8, %v696_v15  ;;  %v952_v14 = vadd.f32 0.00028619796, %v951_v7  ;;  %v3314_v56 = vadd.f32 %v3224_v0, %v430_v13 }
 0x172   : > { %v705_v53 = vsel %vm702_vm3, %v704_v16, %v700_v47  ;;  %v728_v45 = vmul.f32 %v727_v31, %v2886_v37  ;;  %v3318_v41 = vmul.f32 %v1480_v21, %v3097_v59  ;;  %v1363_v63 = vadd.f32 0.001143296, %v1362_v44  ;;  %v385_v21 = vpop.f32.mrf.mxu0 }
 0x173   : > { %v1840_v17 = vmul.f32 %v1808_v43, %v4123_v22  ;;  %v706_v19 = vmul.f32 %v705_v53, %v3035_v11  ;;  %v879_v42 = vmul.f32 %v878_v62, %v3171_v30  ;;  %v1519_v8 = vmul.f32 %v1518_v25, %v3182_v60 }
 0x174   : > { %v2302_v24 = vpop.eup %2301  ;;  %v729_v10 = vadd.f32 0.4994258, %v728_v45  ;;  %v762_v38 = vmul.f32 3.8918573e-05, %v2933_v6  ;;  %v917_v7 = vmul.f32 %v916_v58, %v3212_v1  ;;  %v1364_v15 = vmul.f32 %v1363_v63, %v2900_v23  ;;  %v4124_v45 = vld [vmem:[#allocation14_spill] sm:$0xff] }
 0x175   : > { %1946 = vmatmul.f32.gmra.mxu3 %v1840_v17  ;;  %v2143_v51 = vclamps-f32 %v706_v19, 1.0  ;;  %v1333_v59 = vmul.f32 %v2302_v24, %v3301_v54  ;;  %v1556_v13 = vadd.f32 0.05243302, %v1555_v36  ;;  %v953_v11 = vmul.f32 %v952_v14, %v3296_v27 }
 0x176   : > { %v3330_v44 = vmul.f32 0.70710677, %v3314_v56  ;;  %v730_v62 = vmul.f32 %v729_v10, %v2886_v37  ;;  %v1341_v31 = vand.u32 2147483647, %v3301_v54  ;;  %v1365_v58 = vadd.f32 0.014752088, %v1364_v15 }
 0x177   : > { %v1793_v25 = vadd.f32 1.0, %v2143_v51  ;;  %v1334_v16 = vsub.f32 1.0, %v1333_v59  ;;  %v1343_v43 = vand.u32 2147483648, %v3301_v54  ;;  %v3338_v53 = vadd.f32 %v3224_v0, %v385_v21 }
 0x178   : > { %v3335_v47 = vadd.f32 1.0, %v730_v62  ;;  %v763_v36 = vadd.f32 0.001143296, %v762_v38  ;;  %vm1338_vm4 = vweird.f32 %v2302_v24  ;;  %v1366_v17 = vmul.f32 %v1365_v58, %v2900_v23 }
 0x179   : > { %v1825_v14 = vmul.f32 %v1793_v25, %v4124_v45  ;;  %v1335_v22 = vmul.f32 %v2302_v24, %v1334_v16  ;;  %v880_v37 = vadd.f32 1.1283791, %v879_v42  ;;  %v3343_v19 = vmul.f32 0.5, %v3180_v29 }
 0x17a   : > { %v1589_v63 = vmul.f32 %v3330_v44, %v3330_v44  ;;  %2303 = vrcp.f32 %v3335_v47  ;;  %v1520_v10 = vadd.f32 1.1283791, %v1519_v8  ;;  %v918_v51 = vadd.f32 0.18741608, %v917_v7 }
 0x17b   : > { %4125 = vst [vmem:[#allocation13_spill] sm:$0xff] %v3343_v19  ;;  %1901 = vmatmul.f32.gmra.mxu1 %v1825_v14  ;;  %v1336_v59 = vadd.f32 %v2302_v24, %v1335_v22  ;;  %vm1337_vm5 = vweird.f32 %v3301_v54  ;;  %v1344_v38 = vor.u32 1.1754944e-38, %v1343_v43  ;;  %v3350_v21 = vmul.f32 0.70710677, %v3338_v53 }
 0x17c   : > { %vm1339_vm6 = vmor %vm1337_vm5, %vm1338_vm4  ;;  %v1367_v42 = vadd.f32 0.112945676, %v1366_v17  ;;  %v764_v29 = vmul.f32 %v763_v36, %v2933_v6  ;;  %v1557_v15 = vmul.f32 %v1556_v13, %v3246_v5  ;;  %v954_v62 = vadd.f32 0.0036580483, %v953_v11  ;;  %v433_v11 = vpop.f32.mrf.mxu2 }
 0x17d   : > { %v1340_v25 = vsel %vm1339_vm6, %v2302_v24, %v1336_v59  ;;  %vm1342_vm7 = vcmp.eq.f32.partialorder %v1341_v31, 8.507059e+37  ;;  %v3354_v8 = vmin.f32 %v1589_v63, 16.0  ;;  %v3358_v54 = vmul.f32 %v880_v37, %v3141_v57 }
 0x17e   : > { %v1345_v16 = vsel %vm1342_vm7, %v1344_v38, %v1340_v25  ;;  %v1368_v7 = vmul.f32 %v1367_v42, %v2900_v23  ;;  %v765_v58 = vadd.f32 0.014752088, %v764_v29  ;;  %v3361_v43 = vmul.f32 %v1520_v10, %v3157_v32 }
 0x17f   : > { %v3364_v45 = vmul.f32 0.5, %v3227_v33  ;;  %v1346_v13 = vmul.f32 %v1345_v16, %v3038_v2  ;;  %v989_v31 = vmul.f32 %v3350_v21, %v3350_v21  ;;  %v1402_v22 = vmul.f32 3.8918573e-05, %v2977_v48 }
 0x180   : > { %v2304_v24 = vpop.eup %2303  ;;  %v1369_v36 = vadd.f32 0.4994258, %v1368_v7  ;;  %v766_v14 = vmul.f32 %v765_v58, %v2933_v6  ;;  %v919_v57 = vmul.f32 %v918_v51, %v3212_v1  ;;  %v1558_v17 = vadd.f32 0.18741608, %v1557_v15 }
 0x181   : > { %4126 = vst [vmem:[#allocation14_spill] sm:$0xff] %v3364_v45  ;;  %v2159_v32 = vclamps-f32 %v1346_v13, 1.0  ;;  %v733_v37 = vmul.f32 %v2304_v24, %v3335_v47  ;;  %v955_v33 = vmul.f32 %v954_v62, %v3296_v27  ;;  %v1591_v2 = vmul.f32 2.1237322e-06, %v3354_v8  ;;  %v4127_v62 = vld [vmem:[#allocation15_spill] sm:$0xff] }
 0x182   : > { %v1370_v63 = vmul.f32 %v1369_v36, %v2900_v23  ;;  %v3377_v10 = vadd.f32 %v3224_v0, %v433_v11  ;;  %v743_v42 = vand.u32 2147483648, %v3335_v47  ;;  %v767_v29 = vadd.f32 0.112945676, %v766_v14 }
 0x183   : > { %v1809_v59 = vadd.f32 1.0, %v2159_v32  ;;  %v734_v38 = vsub.f32 1.0, %v733_v37  ;;  %v741_v51 = vand.u32 2147483647, %v3335_v47  ;;  %v3381_v15 = vmin.f32 %v989_v31, 16.0 }
 0x184   : > { %v3383_v25 = vadd.f32 1.0, %v1370_v63  ;;  %v1403_v16 = vadd.f32 0.001143296, %v1402_v22  ;;  %vm738_vm8 = vweird.f32 %v2304_v24  ;;  %v768_v23 = vmul.f32 %v767_v29, %v2933_v6  ;;  %v388_v22 = vpop.f32.mrf.mxu0 }
 0x185   : > { %v1841_v7 = vmul.f32 %v1809_v59, %v4127_v62  ;;  %v735_v58 = vmul.f32 %v2304_v24, %v734_v38  ;;  %v920_v13 = vadd.f32 1.1283791, %v919_v57  ;;  %v956_v11 = vadd.f32 0.05243302, %v955_v33 }
 0x186   : > { %2305 = vrcp.f32 %v3383_v25  ;;  %v3389_v36 = vmul.f32 0.70710677, %v3377_v10  ;;  %v1592_v14 = vadd.f32 0.00028619796, %v1591_v2  ;;  %vm737_vm9 = vweird.f32 %v3335_v47 }
 0x187   : > { %1949 = vmatmul.f32.gmra.mxu3 %v1841_v7  ;;  %v736_v31 = vadd.f32 %v2304_v24, %v735_v58  ;;  %v744_v32 = vor.u32 1.1754944e-38, %v743_v42  ;;  %vm739_vm10 = vmor %vm737_vm9, %vm738_vm8  ;;  %v991_v37 = vmul.f32 2.1237322e-06, %v3381_v15  ;;  %v769_v63 = vadd.f32 0.4994258, %v768_v23 }
 0x188   : > { %v3394_v59 = vadd.f32 %v3224_v0, %v388_v22  ;;  %v1404_v57 = vmul.f32 %v1403_v16, %v2977_v48  ;;  %v1559_v33 = vmul.f32 %v1558_v17, %v3246_v5  ;;  %vm742_vm11 = vcmp.eq.f32.partialorder %v741_v51, 8.507059e+37 }
 0x189   : > { %v740_v38 = vsel %vm739_vm10, %v2304_v24, %v736_v31  ;;  %v802_v2 = vmul.f32 3.8918573e-05, %v2997_v46  ;;  %v1629_v47 = vmul.f32 %v3389_v36, %v3389_v36  ;;  %v770_v42 = vmul.f32 %v769_v63, %v2933_v6 }
 0x18a   : > { %v745_v29 = vsel %vm742_vm11, %v744_v32, %v740_v38  ;;  %v3403_v62 = vmul.f32 0.70710677, %v3394_v59  ;;  %v3406_v7 = vmul.f32 %v920_v13, %v3197_v4  ;;  %v3409_v16 = vmul.f32 0.5, %v3256_v61 }
 0x18b   : > { %v1593_v24 = vmul.f32 %v1592_v14, %v3354_v8  ;;  %v746_v17 = vmul.f32 %v745_v29, %v3072_v9  ;;  %v957_v58 = vmul.f32 %v956_v11, %v3296_v27  ;;  %v992_v23 = vadd.f32 0.00028619796, %v991_v37 }
 0x18c   : > { %4128 = vst [vmem:[#allocation15_spill] sm:$0xff] %v3409_v16  ;;  %v2306_v51 = vpop.eup %2305  ;;  %v3414_v31 = vadd.f32 1.0, %v770_v42  ;;  %v1405_v6 = vadd.f32 0.014752088, %v1404_v57  ;;  %v3416_v32 = vadd.f32 1.1283791, %v1559_v33  ;;  %v1029_v9 = vmul.f32 %v3403_v62, %v3403_v62 }
 0x18d   : > { %v3419_v22 = vmul.f32 0.5, %v3314_v56  ;;  %v2144_v4 = vclamps-f32 %v746_v17, 1.0  ;;  %v1373_v61 = vmul.f32 %v2306_v51, %v3383_v25  ;;  %v3422_v13 = vmin.f32 %v1629_v47, 16.0  ;;  %v4130_v47 = vld [vmem:[#allocation16_spill] sm:$0xff] }
 0x18e   : > { %2307 = vrcp.f32 %v3414_v31  ;;  %v803_v11 = vadd.f32 0.001143296, %v802_v2  ;;  %v1594_v14 = vadd.f32 0.0036580483, %v1593_v24  ;;  %v1442_v57 = vmul.f32 3.8918573e-05, %v3060_v55 }
 0x18f   : > { %4129 = vst [vmem:[#allocation23_spill] sm:$0xff] %v3419_v22  ;;  %v1794_v37 = vadd.f32 1.0, %v2144_v4  ;;  %v1374_v63 = vsub.f32 1.0, %v1373_v61  ;;  %v958_v33 = vadd.f32 0.18741608, %v957_v58  ;;  %v993_v56 = vmul.f32 %v992_v23, %v3381_v15 }
 0x190   : > { %v1383_v38 = vand.u32 2147483648, %v3383_v25  ;;  %v1406_v29 = vmul.f32 %v1405_v6, %v2977_v48  ;;  %vm1378_vm12 = vweird.f32 %v2306_v51  ;;  %v1381_v22 = vand.u32 2147483647, %v3383_v25 }
 0x191   : > { %v1826_v42 = vmul.f32 %v1794_v37, %v4130_v47  ;;  %v1375_v17 = vmul.f32 %v2306_v51, %v1374_v63  ;;  %v1631_v2 = vmul.f32 2.1237322e-06, %v3422_v13  ;;  %v3434_v24 = vmin.f32 %v1029_v9, 16.0 }
 0x192   : > { %v1407_v4 = vadd.f32 0.112945676, %v1406_v29  ;;  %v804_v61 = vmul.f32 %v803_v11, %v2997_v46  ;;  %v1595_v58 = vmul.f32 %v1594_v14, %v3354_v8  ;;  %vm1377_vm13 = vweird.f32 %v3383_v25  ;;  %v436_v29 = vpop.f32.mrf.mxu2 }
 0x193   : > { %1904 = vmatmul.f32.gmra.mxu1 %v1826_v42  ;;  %v1376_v23 = vadd.f32 %v2306_v51, %v1375_v17  ;;  %v1443_v6 = vadd.f32 0.001143296, %v1442_v57  ;;  %v994_v37 = vadd.f32 0.0036580483, %v993_v56  ;;  %vm1379_vm14 = vmor %vm1377_vm13, %vm1378_vm12  ;;  %v1384_v63 = vor.u32 1.1754944e-38, %v1383_v38  ;;  %v4131_v57 = vld [vmem:[#allocation21_spill] sm:$0xff] }
 0x194   : > { %v2308_v16 = vpop.eup %2307  ;;  %v1408_v47 = vmul.f32 %v1407_v4, %v2977_v48  ;;  %v805_v45 = vadd.f32 0.014752088, %v804_v61  ;;  %vm1382_vm15 = vcmp.eq.f32.partialorder %v1381_v22, 8.507059e+37  ;;  %v1632_v42 = vadd.f32 0.00028619796, %v1631_v2 }
 0x195   : > { %v1380_v19 = vsel %vm1379_vm14, %v2306_v51, %v1376_v23  ;;  %v773_v9 = vmul.f32 %v2308_v16, %v3414_v31  ;;  %v1444_v11 = vmul.f32 %v1443_v6, %v3060_v55  ;;  %v1031_v17 = vmul.f32 2.1237322e-06, %v3434_v24 }
 0x196   : > { %v1385_v14 = vsel %vm1382_vm15, %v1384_v63, %v1380_v19  ;;  %v1409_v25 = vadd.f32 0.4994258, %v1408_v47  ;;  %v3445_v38 = vadd.f32 %v3224_v0, %v436_v29  ;;  %v806_v4 = vmul.f32 %v805_v45, %v2997_v46 }
 0x197   : > { %v1386_v12 = vmul.f32 %v1385_v14, %v4131_v57  ;;  %v774_v56 = vsub.f32 1.0, %v773_v9  ;;  %v781_v51 = vand.u32 2147483647, %v3414_v31  ;;  %v783_v22 = vand.u32 2147483648, %v3414_v31  ;;  %v4133_v57 = vld [vmem:[#allocation17_spill] sm:$0xff] }
 0x198   : > { %4132 = vst [vmem:[#allocation16_spill] sm:$0xff] %v3445_v38  ;;  %v1410_v61 = vmul.f32 %v1409_v25, %v2977_v48  ;;  %v1445_v23 = vadd.f32 0.014752088, %v1444_v11  ;;  %vm778_vm0 = vweird.f32 %v2308_v16  ;;  %v3452_v6 = vmul.f32 0.70710677, %v3445_v38 }
 0x199   : > { %v2160_v19 = vclamps-f32 %v1386_v12, 1.0  ;;  %v775_v2 = vmul.f32 %v2308_v16, %v774_v56  ;;  %v1633_v63 = vmul.f32 %v1632_v42, %v3422_v13  ;;  %vm777_vm1 = vweird.f32 %v3414_v31 }
 0x19a   : > { %v1032_v47 = vadd.f32 0.00028619796, %v1031_v17  ;;  %v3456_v9 = vadd.f32 1.0, %v1410_v61  ;;  %v1669_v14 = vmul.f32 %v3452_v6, %v3452_v6  ;;  %v807_v48 = vadd.f32 0.112945676, %v806_v4  ;;  %vm779_vm2 = vmor %vm777_vm1, %vm778_vm0 }
 0x19b   : > { %v1810_v45 = vadd.f32 1.0, %v2160_v19  ;;  %v776_v29 = vadd.f32 %v2308_v16, %v775_v2  ;;  %v959_v12 = vmul.f32 %v958_v33, %v3296_v27  ;;  %v784_v11 = vor.u32 1.1754944e-38, %v783_v22 }
 0x19c   : > { %2309 = vrcp.f32 %v3456_v9  ;;  %v1446_v25 = vmul.f32 %v1445_v23, %v3060_v55  ;;  %v1596_v42 = vadd.f32 0.05243302, %v1595_v58  ;;  %vm782_vm3 = vcmp.eq.f32.partialorder %v781_v51, 8.507059e+37 }
 0x19d   : > { %v1842_v31 = vmul.f32 %v1810_v45, %v4133_v57  ;;  %v780_v17 = vsel %vm779_vm2, %v2308_v16, %v776_v29  ;;  %v1634_v56 = vadd.f32 0.0036580483, %v1633_v63  ;;  %v1033_v19 = vmul.f32 %v1032_v47, %v3434_v24  ;;  %v391_v63 = vpop.f32.mrf.mxu0 }
 0x19e   : > { %v785_v61 = vsel %vm782_vm3, %v784_v11, %v780_v17  ;;  %v3465_v2 = vmin.f32 %v1669_v14, 16.0  ;;  %v3468_v4 = vmul.f32 0.5, %v3338_v53  ;;  %v995_v33 = vmul.f32 %v994_v37, %v3381_v15 }
 0x19f   : > { %1952 = vmatmul.f32.gmra.mxu3 %v1842_v31  ;;  %v786_v22 = vmul.f32 %v785_v61, %v3133_v34  ;;  %v808_v58 = vmul.f32 %v807_v48, %v2997_v46  ;;  %v3475_v16 = vmul.f32 %v3416_v32, %v3234_v52  ;;  %v960_v51 = vadd.f32 1.1283791, %v959_v12 }
 0x1a0   : > { %v1671_v23 = vmul.f32 2.1237322e-06, %v3465_v2  ;;  %v1447_v47 = vadd.f32 0.112945676, %v1446_v25  ;;  %v1597_v45 = vmul.f32 %v1596_v42, %v3354_v8  ;;  %v3480_v37 = vadd.f32 %v3224_v0, %v391_v63 }
 0x1a1   : > { %v2145_v53 = vclamps-f32 %v786_v22, 1.0  ;;  %v809_v29 = vadd.f32 0.4994258, %v808_v58  ;;  %v1635_v34 = vmul.f32 %v1634_v56, %v3422_v13  ;;  %v1034_v48 = vadd.f32 0.0036580483, %v1033_v19  ;;  %v4136_v56 = vld [vmem:[#allocation18_spill] sm:$0xff] }
 0x1a2   : > { %4134 = vst [vmem:[#allocation21_spill] sm:$0xff] %v3480_v37  ;;  %v2310_v14 = vpop.eup %2309  ;;  %v1672_v11 = vadd.f32 0.00028619796, %v1671_v23  ;;  %v1448_v52 = vmul.f32 %v1447_v47, %v3060_v55  ;;  %v996_v32 = vadd.f32 0.05243302, %v995_v33  ;;  %v439_v23 = vpop.f32.mrf.mxu2  ;;  %vm1417_vm5 = vweird.f32 %v3456_v9 }
 0x1a3   : > { %v1795_v12 = vadd.f32 1.0, %v2145_v53  ;;  %v1413_v57 = vmul.f32 %v2310_v14, %v3456_v9  ;;  %v810_v25 = vmul.f32 %v809_v29, %v2997_v46  ;;  %v3488_v31 = vmul.f32 0.70710677, %v3480_v37 }
 0x1a4   : > { %v1673_v42 = vmul.f32 %v1672_v11, %v3465_v2  ;;  %v842_v17 = vmul.f32 3.8918573e-05, %v3075_v26  ;;  %v1482_v61 = vmul.f32 3.8918573e-05, %v3121_v18  ;;  %v1449_v33 = vadd.f32 0.4994258, %v1448_v52 }
 0x1a5   : > { %4135 = vst [vmem:[#allocation17_spill] sm:$0xff] %v3488_v31  ;;  %v1827_v19 = vmul.f32 %v1795_v12, %v4136_v56  ;;  %v1414_v22 = vsub.f32 1.0, %v1413_v57  ;;  %v3493_v58 = vadd.f32 1.0, %v810_v25  ;;  %v1636_v63 = vadd.f32 0.05243302, %v1635_v34 }
 0x1a6   : > { %v1035_v47 = vmul.f32 %v1034_v48, %v3434_v24  ;;  %v1423_v46 = vand.u32 2147483648, %v3456_v9  ;;  %v3498_v53 = vadd.f32 %v3224_v0, %v439_v23  ;;  %vm1418_vm4 = vweird.f32 %v2310_v14 }
 0x1a7   : > { %1907 = vmatmul.f32.gmra.mxu1 %v1827_v19  ;;  %v1415_v29 = vmul.f32 %v2310_v14, %v1414_v22  ;;  %v1421_v11 = vand.u32 2147483647, %v3456_v9  ;;  %2311 = vrcp.f32 %v3493_v58  ;;  %v1674_v12 = vadd.f32 0.0036580483, %v1673_v42  ;;  %vm1419_vm6 = vmor %vm1417_vm5, %vm1418_vm4 }
 0x1a8   : > { %4137 = vst [vmem:[#allocation18_spill] sm:$0xff] %v3498_v53  ;;  %v1450_v52 = vmul.f32 %v1449_v33, %v3060_v55  ;;  %v843_v34 = vadd.f32 0.001143296, %v842_v17  ;;  %v1069_v48 = vmul.f32 %v3488_v31, %v3488_v31  ;;  %v3507_v25 = vmul.f32 0.70710677, %v3498_v53 }
 0x1a9   : > { %v1416_v57 = vadd.f32 %v2310_v14, %v1415_v29  ;;  %v1483_v56 = vadd.f32 0.001143296, %v1482_v61  ;;  %v997_v19 = vmul.f32 %v996_v32, %v3381_v15  ;;  %v1036_v22 = vadd.f32 0.05243302, %v1035_v47 }
 0x1aa   : > { %4138 = vst [vmem:[#allocation24_spill] sm:$0xff] %v3507_v25  ;;  %v1424_v23 = vor.u32 1.1754944e-38, %v1423_v46  ;;  %v3510_v37 = vadd.f32 1.0, %v1450_v52  ;;  %v1598_v9 = vadd.f32 0.18741608, %v1597_v45  ;;  %v1637_v42 = vmul.f32 %v1636_v63, %v3422_v13 }
 0x1ab   : > { %v1420_v55 = vsel %vm1419_vm6, %v2310_v14, %v1416_v57  ;;  %vm1422_vm7 = vcmp.eq.f32.partialorder %v1421_v11, 8.507059e+37  ;;  %v1675_v33 = vmul.f32 %v1674_v12, %v3465_v2  ;;  %v844_v29 = vmul.f32 %v843_v34, %v3075_v26 }
 0x1ac   : > { %v1425_v17 = vsel %vm1422_vm7, %v1424_v23, %v1420_v55  ;;  %2313 = vrcp.f32 %v3510_v37  ;;  %v3517_v47 = vmin.f32 %v1069_v48, 16.0  ;;  %v1709_v46 = vmul.f32 %v3507_v25, %v3507_v25 }
 0x1ad   : > { %v2312_v61 = vpop.eup %2311  ;;  %v1426_v32 = vmul.f32 %v1425_v17, %v3174_v20  ;;  %v1484_v45 = vmul.f32 %v1483_v56, %v3121_v18  ;;  %v3523_v14 = vmul.f32 %v960_v51, %v3272_v49  ;;  %v3525_v63 = vadd.f32 0.18741608, %v997_v19 }
 0x1ae   : > { %v1037_v11 = vmul.f32 %v1036_v22, %v3434_v24  ;;  %v813_v12 = vmul.f32 %v2312_v61, %v3493_v58  ;;  %v3530_v52 = vmul.f32 %v1598_v9, %v3354_v8  ;;  %v3532_v20 = vadd.f32 0.18741608, %v1637_v42 }
 0x1af   : > { %v2161_v34 = vclamps-f32 %v1426_v32, 1.0  ;;  %v821_v57 = vand.u32 2147483647, %v3493_v58  ;;  %v1676_v48 = vadd.f32 0.05243302, %v1675_v33  ;;  %v823_v56 = vand.u32 2147483648, %v3493_v58 }
 0x1b0   : > { %v814_v23 = vsub.f32 1.0, %v813_v12  ;;  %v845_v49 = vadd.f32 0.014752088, %v844_v29  ;;  %v1071_v19 = vmul.f32 2.1237322e-06, %v3517_v47  ;;  %v3537_v55 = vmin.f32 %v1709_v46, 16.0 }
 0x1b1   : > { %v1811_v51 = vadd.f32 1.0, %v2161_v34  ;;  %v1485_v22 = vadd.f32 0.014752088, %v1484_v45  ;;  %v1038_v53 = vadd.f32 0.18741608, %v1037_v11  ;;  %vm818_vm8 = vweird.f32 %v2312_v61  ;;  %v4139_v32 = vld [vmem:[#allocation19_spill] sm:$0xff] }
 0x1b2   : > { %v2314_v17 = vpop.eup %2313  ;;  %v815_v9 = vmul.f32 %v2312_v61, %v814_v23  ;;  %v846_v42 = vmul.f32 %v845_v49, %v3075_v26  ;;  %vm817_vm9 = vweird.f32 %v3493_v58  ;;  %vm3542_vm10 = vcmp.eq.f32.partialorder %v821_v57, 8.507059e+37 }
 0x1b3   : > { %v1843_v25 = vmul.f32 %v1811_v51, %v4139_v32  ;;  %v1453_v29 = vmul.f32 %v2314_v17, %v3510_v37  ;;  %v1677_v46 = vmul.f32 %v1676_v48, %v3465_v2  ;;  %v824_v45 = vor.u32 1.1754944e-38, %v823_v56  ;;  %vm819_vm11 = vmor %vm817_vm9, %vm818_vm8 }
 0x1b4   : > { %v816_v12 = vadd.f32 %v2312_v61, %v815_v9  ;;  %v847_v34 = vadd.f32 0.112945676, %v846_v42  ;;  %v1072_v11 = vadd.f32 0.00028619796, %v1071_v19  ;;  %v1711_v49 = vmul.f32 2.1237322e-06, %v3537_v55 }
 0x1b5   : > { %1955 = vmatmul.f32.gmra.mxu3 %v1843_v25  ;;  %v1454_v23 = vsub.f32 1.0, %v1453_v29  ;;  %v1486_v51 = vmul.f32 %v1485_v22, %v3121_v18  ;;  %v1461_v57 = vand.u32 2147483647, %v3510_v37  ;;  %v1463_v32 = vand.u32 2147483648, %v3510_v37  ;;  %v394_v25 = vpop.f32.mrf.mxu0 }
 0x1b6   : > { %v820_v58 = vsel %vm819_vm11, %v2312_v61, %v816_v12  ;;  %v848_v31 = vmul.f32 %v847_v34, %v3075_v26  ;;  %vm1458_vm12 = vweird.f32 %v2314_v17  ;;  %vm1457_vm13 = vweird.f32 %v3510_v37 }
 0x1b7   : > { %v825_v48 = vsel %vm3542_vm10, %v824_v45, %v820_v58  ;;  %v1455_v56 = vmul.f32 %v2314_v17, %v1454_v23  ;;  %v1487_v9 = vadd.f32 0.112945676, %v1486_v51  ;;  %v3558_v61 = vadd.f32 %v3224_v0, %v394_v25  ;;  %vm1459_vm14 = vmor %vm1457_vm13, %vm1458_vm12 }
 0x1b8   : > { %v826_v19 = vmul.f32 %v825_v48, %v3251_v39  ;;  %v849_v42 = vadd.f32 0.4994258, %v848_v31  ;;  %v1678_v22 = vadd.f32 0.18741608, %v1677_v46  ;;  %v1712_v12 = vadd.f32 0.00028619796, %v1711_v49 }
 0x1b9   : > { %4142 = vst [vmem:[#allocation19_spill] sm:$0xff] %v3558_v61  ;;  %v1456_v29 = vadd.f32 %v2314_v17, %v1455_v56  ;;  %v1488_v34 = vmul.f32 %v1487_v9, %v3121_v18  ;;  %v1464_v33 = vor.u32 1.1754944e-38, %v1463_v32  ;;  %v882_v23 = vmul.f32 3.8918573e-05, %v3171_v30  ;;  %v4144_v56 = vld [vmem:[#allocation20_spill] sm:$0xff] }
 0x1ba   : > { %v2146_v38 = vclamps-f32 %v826_v19, 1.0  ;;  %v850_v45 = vmul.f32 %v849_v42, %v3075_v26  ;;  %vm1462_vm15 = vcmp.eq.f32.partialorder %v1461_v57, 8.507059e+37  ;;  %v3564_v39 = vmul.f32 0.70710677, %v3558_v61  ;;  %v442_v42 = vpop.f32.mrf.mxu2 }
 0x1bb   : > { %v1460_v51 = vsel %vm1459_vm14, %v2314_v17, %v1456_v29  ;;  %v1489_v37 = vadd.f32 0.4994258, %v1488_v34  ;;  %v1073_v46 = vmul.f32 %v1072_v11, %v3517_v47  ;;  %v1713_v32 = vmul.f32 %v1712_v12, %v3537_v55 }
 0x1bc   : > { %4143 = vst [vmem:[#allocation25_spill] sm:$0xff] %v3564_v39  ;;  %v1796_v31 = vadd.f32 1.0, %v2146_v38  ;;  %v1465_v58 = vsel %vm1462_vm15, %v1464_v33, %v1460_v51  ;;  %v3567_v49 = vadd.f32 1.0, %v850_v45  ;;  %v1109_v26 = vmul.f32 %v3564_v39, %v3564_v39 }
 0x1bd   : > { %v1466_v48 = vmul.f32 %v1465_v58, %v3268_v28  ;;  %v1490_v17 = vmul.f32 %v1489_v37, %v3121_v18  ;;  %v1600_v57 = vadd.f32 1.1283791, %v3530_v52  ;;  %v883_v38 = vadd.f32 0.001143296, %v882_v23 }
 0x1be   : > { %v1828_v25 = vmul.f32 %v1796_v31, %v4144_v56  ;;  %2315 = vrcp.f32 %v3567_v49  ;;  %v999_v11 = vmul.f32 %v3525_v63, %v3381_v15  ;;  %v1639_v28 = vmul.f32 %v3532_v20, %v3422_v13 }
 0x1bf   : > { %v1039_v9 = vmul.f32 %v1038_v53, %v3434_v24  ;;  %v2162_v19 = vclamps-f32 %v1466_v48, 1.0  ;;  %v1679_v29 = vmul.f32 %v1678_v22, %v3465_v2  ;;  %v1074_v18 = vadd.f32 0.0036580483, %v1073_v46 }
 0x1c0   : > { %1910 = vmatmul.f32.gmra.mxu1 %v1828_v25  ;;  %v3583_v52 = vmin.f32 %v1109_v26, 16.0  ;;  %v3585_v12 = vadd.f32 1.0, %v1490_v17  ;;  %v3588_v34 = vmul.f32 0.5, %v3377_v10  ;;  %v1714_v63 = vadd.f32 0.0036580483, %v1713_v32 }
 0x1c1   : > { %v1812_v33 = vadd.f32 1.0, %v2162_v19  ;;  %v861_v45 = vand.u32 2147483647, %v3567_v49  ;;  %v3593_v53 = vadd.f32 %v3224_v0, %v442_v42  ;;  %v884_v20 = vmul.f32 %v883_v38, %v3171_v30 }
 0x1c2   : > { %2317 = vrcp.f32 %v3585_v12  ;;  %v1522_v22 = vmul.f32 3.8918573e-05, %v3182_v60  ;;  %v3597_v23 = vadd.f32 1.1283791, %v999_v11  ;;  %v3599_v51 = vadd.f32 1.1283791, %v1639_v28 }
 0x1c3   : > { %4145 = vst [vmem:[#allocation20_spill] sm:$0xff] %v3593_v53  ;;  %v1844_v10 = vmul.f32 %v1812_v33, %v3162_v50  ;;  %v863_v37 = vand.u32 2147483648, %v3567_v49  ;;  %v3604_v46 = vmul.f32 %v1600_v57, %v3330_v44  ;;  %v3606_v58 = vadd.f32 1.1283791, %v1039_v9 }
 0x1c4   : > { %v2316_v31 = vpop.eup %2315  ;;  %v3608_v0 = vadd.f32 1.1283791, %v1679_v29  ;;  %v1111_v48 = vmul.f32 2.1237322e-06, %v3583_v52  ;;  %v3612_v32 = vmul.f32 %v1074_v18, %v3517_v47  ;;  %v3615_v26 = vmul.f32 %v1714_v63, %v3537_v55 }
 0x1c5   : > { %1958 = vmatmul.f32.gmra.mxu3 %v1844_v10  ;;  %v853_v50 = vmul.f32 %v2316_v31, %v3567_v49  ;;  %vm3618_vm0 = vcmp.eq.f32.partialorder %v861_v45, 8.507059e+37  ;;  %vm857_vm1 = vweird.f32 %v3567_v49  ;;  %v3624_v44 = vmul.f32 0.70710677, %v3593_v53 }
 0x1c6   : > { %v885_v57 = vadd.f32 0.014752088, %v884_v20  ;;  %v1523_v56 = vadd.f32 0.001143296, %v1522_v22  ;;  %v864_v38 = vor.u32 1.1754944e-38, %v863_v37  ;;  %vm1497_vm2 = vweird.f32 %v3585_v12 }
 0x1c7   : > { %4148 = vst [vmem:[#allocation26_spill] sm:$0xff] %v3624_v44  ;;  %v854_v25 = vsub.f32 1.0, %v853_v50  ;;  %v922_v11 = vmul.f32 3.8918573e-05, %v3212_v1  ;;  %v1562_v28 = vmul.f32 3.8918573e-05, %v3246_v5  ;;  %vm858_vm3 = vweird.f32 %v2316_v31 }
 0x1c8   : > { %v2318_v9 = vpop.eup %2317  ;;  %v1112_v19 = vadd.f32 0.00028619796, %v1111_v48  ;;  %v886_v42 = vmul.f32 %v885_v57, %v3171_v30  ;;  %v1524_v29 = vmul.f32 %v1523_v56, %v3182_v60  ;;  %v1501_v45 = vand.u32 2147483647, %v3585_v12  ;;  %vm859_vm4 = vmor %vm857_vm1, %vm858_vm3 }
 0x1c9   : > { %v855_v18 = vmul.f32 %v2316_v31, %v854_v25  ;;  %v1493_v33 = vmul.f32 %v2318_v9, %v3585_v12  ;;  %v923_v63 = vadd.f32 0.001143296, %v922_v11  ;;  %v1749_v20 = vmul.f32 %v3624_v44, %v3624_v44 }
 0x1ca   : > { %v887_v22 = vadd.f32 0.112945676, %v886_v42  ;;  %v1525_v10 = vadd.f32 0.014752088, %v1524_v29  ;;  %v1563_v53 = vadd.f32 0.001143296, %v1562_v28  ;;  %v1113_v57 = vmul.f32 %v1112_v19, %v3583_v52 }
 0x1cb   : > { %v856_v37 = vadd.f32 %v2316_v31, %v855_v18  ;;  %v1494_v48 = vsub.f32 1.0, %v1493_v33  ;;  %v924_v50 = vmul.f32 %v923_v63, %v3212_v1  ;;  %v1503_v56 = vand.u32 2147483648, %v3585_v12 }
 0x1cc   : > { %v888_v25 = vmul.f32 %v887_v22, %v3171_v30  ;;  %v1526_v11 = vmul.f32 %v1525_v10, %v3182_v60  ;;  %vm1498_vm5 = vweird.f32 %v2318_v9  ;;  %v3644_v18 = vmin.f32 %v1749_v20, 16.0 }
 0x1cd   : > { %v860_v61 = vsel %vm859_vm4, %v2316_v31, %v856_v37  ;;  %v1495_v44 = vmul.f32 %v2318_v9, %v1494_v48  ;;  %v925_v42 = vadd.f32 0.014752088, %v924_v50  ;;  %v1564_v49 = vmul.f32 %v1563_v53, %v3246_v5  ;;  %vm1499_vm6 = vmor %vm1497_vm2, %vm1498_vm5 }
 0x1ce   : > { %v865_v29 = vsel %vm3618_vm0, %v864_v38, %v860_v61  ;;  %v889_v28 = vadd.f32 0.4994258, %v888_v25  ;;  %v1527_v63 = vadd.f32 0.112945676, %v1526_v11  ;;  %v1114_v39 = vadd.f32 0.0036580483, %v1113_v57 }
 0x1cf   : > { %v866_v19 = vmul.f32 %v865_v29, %v3281_v40  ;;  %v1496_v33 = vadd.f32 %v2318_v9, %v1495_v44  ;;  %v926_v22 = vmul.f32 %v925_v42, %v3212_v1  ;;  %vm1502_vm7 = vcmp.eq.f32.partialorder %v1501_v45, 8.507059e+37  ;;  %v4149_v25 = vld [vmem:[#allocation22_spill] sm:$0xff] }
 0x1d0   : > { %v1504_v31 = vor.u32 1.1754944e-38, %v1503_v56  ;;  %v890_v17 = vmul.f32 %v889_v28, %v3171_v30  ;;  %v1528_v20 = vmul.f32 %v1527_v63, %v3182_v60  ;;  %v1751_v40 = vmul.f32 2.1237322e-06, %v3644_v18 }
 0x1d1   : > { %v2147_v61 = vclamps-f32 %v866_v19, 1.0  ;;  %v1500_v38 = vsel %vm1499_vm6, %v2318_v9, %v1496_v33  ;;  %v927_v10 = vadd.f32 0.112945676, %v926_v22  ;;  %v1565_v37 = vadd.f32 0.014752088, %v1564_v49 }
 0x1d2   : > { %v1505_v53 = vsel %vm1502_vm7, %v1504_v31, %v1500_v38  ;;  %v3654_v44 = vadd.f32 1.0, %v890_v17  ;;  %v1529_v12 = vadd.f32 0.4994258, %v1528_v20  ;;  %v3660_v30 = vmul.f32 %v3597_v23, %v3350_v21 }
 0x1d3   : > { %v1797_v48 = vadd.f32 1.0, %v2147_v61  ;;  %v1506_v50 = vmul.f32 %v1505_v53, %v3318_v41  ;;  %v928_v45 = vmul.f32 %v927_v10, %v3212_v1  ;;  %v3663_v9 = vmul.f32 0.5, %v3394_v59 }
 0x1d4   : > { %v1076_v57 = vadd.f32 0.05243302, %v3612_v32  ;;  %2319 = vrcp.f32 %v3654_v44  ;;  %v3669_v56 = vmul.f32 %v3599_v51, %v3389_v36  ;;  %v1716_v41 = vadd.f32 0.05243302, %v3615_v26 }
 0x1d5   : > { %v1829_v11 = vmul.f32 %v1797_v48, %v4149_v25  ;;  %v2163_v42 = vclamps-f32 %v1506_v50, 1.0  ;;  %v1115_v29 = vmul.f32 %v1114_v39, %v3583_v52  ;;  %v1752_v21 = vadd.f32 0.00028619796, %v1751_v40 }
 0x1d6   : > { %v1530_v23 = vmul.f32 %v1529_v12, %v3182_v60  ;;  %v929_v59 = vadd.f32 0.4994258, %v928_v45  ;;  %v3677_v32 = vmul.f32 %v3606_v58, %v3403_v62  ;;  %v3681_v28 = vmul.f32 %v3608_v0, %v3452_v6 }
 0x1d7   : > { %1913 = vmatmul.f32.gmra.mxu1 %v1829_v11  ;;  %v1813_v36 = vadd.f32 1.0, %v2163_v42  ;;  %v1566_v51 = vmul.f32 %v1565_v37, %v3246_v5  ;;  %v3685_v26 = vmul.f32 %v1076_v57, %v3517_v47  ;;  %v962_v49 = vmul.f32 3.8918573e-05, %v3296_v27 }
 0x1d8   : > { %v3687_v39 = vadd.f32 1.0, %v1530_v23  ;;  %v930_v60 = vmul.f32 %v929_v59, %v3212_v1  ;;  %v3692_v62 = vmul.f32 %v1716_v41, %v3537_v55  ;;  %v901_v6 = vand.u32 2147483647, %v3654_v44 }
 0x1d9   : > { %v1845_v58 = vmul.f32 %v1813_v36, %v3264_v35  ;;  %v1567_v0 = vadd.f32 0.112945676, %v1566_v51  ;;  %v3696_v33 = vadd.f32 0.05243302, %v1115_v29  ;;  %v3699_v63 = vmul.f32 %v1752_v21, %v3644_v18 }
 0x1da   : > { %v2320_v19 = vpop.eup %2319  ;;  %v903_v22 = vand.u32 2147483648, %v3654_v44  ;;  %2321 = vrcp.f32 %v3687_v39  ;;  %v3704_v31 = vadd.f32 1.0, %v930_v60  ;;  %v1602_v35 = vmul.f32 3.8918573e-05, %v3354_v8 }
 0x1db   : > { %1961 = vmatmul.f32.gmra.mxu3 %v1845_v58  ;;  %v893_v1 = vmul.f32 %v2320_v19, %v3654_v44  ;;  %v1002_v17 = vmul.f32 3.8918573e-05, %v3381_v15  ;;  %vm897_vm8 = vweird.f32 %v3654_v44  ;;  %v1543_v61 = vand.u32 2147483648, %v3687_v39 }
 0x1dc   : > { %v1568_v38 = vmul.f32 %v1567_v0, %v3246_v5  ;;  %v963_v20 = vadd.f32 0.001143296, %v962_v49  ;;  %vm3711_vm9 = vcmp.eq.f32.partialorder %v901_v6, 8.507059e+37  ;;  %v1541_v40 = vand.u32 2147483647, %v3687_v39 }
 0x1dd   : > { %v894_v10 = vsub.f32 1.0, %v893_v1  ;;  %2323 = vrcp.f32 %v3704_v31  ;;  %vm898_vm10 = vweird.f32 %v2320_v19  ;;  %v904_v37 = vor.u32 1.1754944e-38, %v903_v22 }
 0x1de   : > { %v943_v48 = vand.u32 2147483648, %v3704_v31  ;;  %v1569_v50 = vadd.f32 0.4994258, %v1568_v38  ;;  %v964_v45 = vmul.f32 %v963_v20, %v3296_v27  ;;  %v1603_v57 = vadd.f32 0.001143296, %v1602_v35  ;;  %vm899_vm13 = vmor %vm897_vm8, %vm898_vm10 }
 0x1df   : > { %v895_v12 = vmul.f32 %v2320_v19, %v894_v10  ;;  %v1003_v41 = vadd.f32 0.001143296, %v1002_v17  ;;  %vm1537_vm11 = vweird.f32 %v3687_v39  ;;  %v1544_v11 = vor.u32 1.1754944e-38, %v1543_v61 }
 0x1e0   : > { %v2322_v25 = vpop.eup %2321  ;;  %v941_v42 = vand.u32 2147483647, %v3704_v31  ;;  %v1570_v29 = vmul.f32 %v1569_v50, %v3246_v5  ;;  %vm3723_vm12 = vcmp.eq.f32.partialorder %v1541_v40, 8.507059e+37  ;;  %v965_v36 = vadd.f32 0.014752088, %v964_v45 }
 0x1e1   : > { %v896_v21 = vadd.f32 %v2320_v19, %v895_v12  ;;  %v1533_v23 = vmul.f32 %v2322_v25, %v3687_v39  ;;  %v1642_v51 = vmul.f32 3.8918573e-05, %v3422_v13  ;;  %vm937_vm14 = vweird.f32 %v3704_v31 }
 0x1e2   : > { %v944_v60 = vor.u32 1.1754944e-38, %v943_v48  ;;  %v3732_v49 = vadd.f32 1.0, %v1570_v29  ;;  %v1604_v5 = vmul.f32 %v1603_v57, %v3354_v8  ;;  %v966_v22 = vmul.f32 %v965_v36, %v3296_v27 }
 0x1e3   : > { %v2324_v58 = vpop.eup %2323  ;;  %v900_v6 = vsel %vm899_vm13, %v2320_v19, %v896_v21  ;;  %v1534_v0 = vsub.f32 1.0, %v1533_v23  ;;  %v1004_v1 = vmul.f32 %v1003_v41, %v3381_v15  ;;  %vm1538_vm15 = vweird.f32 %v2322_v25 }
 0x1e4   : > { %v905_v35 = vsel %vm3711_vm9, %v904_v37, %v900_v6  ;;  %v933_v44 = vmul.f32 %v2324_v58, %v3704_v31  ;;  %vm3740_vm0 = vcmp.eq.f32.partialorder %v941_v42, 8.507059e+37  ;;  %2325 = vrcp.f32 %v3732_v49  ;;  %vm1539_vm2 = vmor %vm1537_vm11, %vm1538_vm15 }
 0x1e5   : > { %v906_v61 = vmul.f32 %v905_v35, %v3358_v54  ;;  %v1535_v19 = vmul.f32 %v2322_v25, %v1534_v0  ;;  %v1643_v38 = vadd.f32 0.001143296, %v1642_v51  ;;  %v1042_v20 = vmul.f32 3.8918573e-05, %v3434_v24 }
 0x1e6   : > { %v934_v10 = vsub.f32 1.0, %v933_v44  ;;  %vm938_vm1 = vweird.f32 %v2324_v58  ;;  %v967_v40 = vadd.f32 0.112945676, %v966_v22  ;;  %v1605_v53 = vadd.f32 0.014752088, %v1604_v5 }
 0x1e7   : > { %v2148_v37 = vclamps-f32 %v906_v61, 1.0  ;;  %v1536_v48 = vadd.f32 %v2322_v25, %v1535_v19  ;;  %v1581_v50 = vand.u32 2147483647, %v3732_v49  ;;  %v1005_v12 = vadd.f32 0.014752088, %v1004_v1  ;;  %vm939_vm3 = vmor %vm937_vm14, %vm938_vm1 }
 0x1e8   : > { %v935_v45 = vmul.f32 %v2324_v58, %v934_v10  ;;  %v1583_v54 = vand.u32 2147483648, %v3732_v49  ;;  %v968_v57 = vmul.f32 %v967_v40, %v3296_v27  ;;  %v1606_v41 = vmul.f32 %v1605_v53, %v3354_v8 }
 0x1e9   : > { %v1798_v42 = vadd.f32 1.0, %v2148_v37  ;;  %v1540_v29 = vsel %vm1539_vm2, %v2322_v25, %v1536_v48  ;;  %v1006_v21 = vmul.f32 %v1005_v12, %v3381_v15  ;;  %v1644_v23 = vmul.f32 %v1643_v38, %v3422_v13 }
 0x1ea   : > { %v2326_v36 = vpop.eup %2325  ;;  %v1545_v51 = vsel %vm3723_vm12, %v1544_v11, %v1540_v29  ;;  %v936_v5 = vadd.f32 %v2324_v58, %v935_v45  ;;  %v969_v39 = vadd.f32 0.4994258, %v968_v57  ;;  %v1607_v6 = vadd.f32 0.112945676, %v1606_v41 }
 0x1eb   : > { %v1830_v0 = vmul.f32 %v1798_v42, %v3277_v3  ;;  %v1546_v22 = vmul.f32 %v1545_v51, %v3361_v43  ;;  %v1573_v25 = vmul.f32 %v2326_v36, %v3732_v49  ;;  %vm1578_vm4 = vweird.f32 %v2326_v36 }
 0x1ec   : > { %v940_v1 = vsel %vm939_vm3, %v2324_v58, %v936_v5  ;;  %v970_v35 = vmul.f32 %v969_v39, %v3296_v27  ;;  %v1608_v59 = vmul.f32 %v1607_v6, %v3354_v8  ;;  %v1007_v11 = vadd.f32 0.112945676, %v1006_v21 }
 0x1ed   : > { %1916 = vmatmul.f32.gmra.mxu1 %v1830_v0  ;;  %v2164_v44 = vclamps-f32 %v1546_v22, 1.0  ;;  %v945_v3 = vsel %vm3740_vm0, %v944_v60, %v940_v1  ;;  %v1574_v61 = vsub.f32 1.0, %v1573_v25  ;;  %v1645_v43 = vadd.f32 0.014752088, %v1644_v23  ;;  %v4159_v23 = vld [vmem:[#allocation13_spill] sm:$0xff] }
 0x1ee   : > { %v946_v19 = vmul.f32 %v945_v3, %v3406_v7  ;;  %v3769_v31 = vadd.f32 1.0, %v970_v35  ;;  %v1609_v38 = vadd.f32 0.4994258, %v1608_v59  ;;  %v1008_v10 = vmul.f32 %v1007_v11, %v3381_v15  ;;  %v4158_v7 = vld [vmem:[#allocation12_spill] sm:$0xff] }
 0x1ef   : > { %v1814_v58 = vadd.f32 1.0, %v2164_v44  ;;  %v1575_v40 = vmul.f32 %v2326_v36, %v1574_v61  ;;  %v1646_v27 = vmul.f32 %v1645_v43, %v3422_v13  ;;  %v1043_v53 = vadd.f32 0.001143296, %v1042_v20 }
 0x1f0   : > { %v2149_v37 = vclamps-f32 %v946_v19, 1.0  ;;  %vm1577_vm5 = vweird.f32 %v3732_v49  ;;  %vm3774_vm6 = vcmp.eq.f32.partialorder %v1581_v50, 8.507059e+37  ;;  %2327 = vrcp.f32 %v3769_v31 }
 0x1f1   : > { %v1846_v60 = vmul.f32 %v1814_v58, %v4158_v7  ;;  %v1576_v48 = vadd.f32 %v2326_v36, %v1575_v40  ;;  %v981_v12 = vand.u32 2147483647, %v3769_v31  ;;  %v1610_v45 = vmul.f32 %v1609_v38, %v3354_v8  ;;  %vm1579_vm7 = vmor %vm1577_vm5, %vm1578_vm4 }
 0x1f2   : > { %v1799_v57 = vadd.f32 1.0, %v2149_v37  ;;  %v1584_v20 = vor.u32 1.1754944e-38, %v1583_v54  ;;  %v1009_v41 = vadd.f32 0.4994258, %v1008_v10  ;;  %v1647_v42 = vadd.f32 0.112945676, %v1646_v27 }
 0x1f3   : > { %1964 = vmatmul.f32.gmra.mxu3 %v1846_v60  ;;  %v1580_v49 = vsel %vm1579_vm7, %v2326_v36, %v1576_v48  ;;  %v983_v50 = vand.u32 2147483648, %v3769_v31  ;;  %v3784_v29 = vadd.f32 1.0, %v1610_v45  ;;  %v1044_v21 = vmul.f32 %v1043_v53, %v3434_v24  ;;  %v4162_v10 = vld [vmem:[#allocation14_spill] sm:$0xff] }
 0x1f4   : > { %v1831_v51 = vmul.f32 %v1799_v57, %v4159_v23  ;;  %v1585_v5 = vsel %vm3774_vm6, %v1584_v20, %v1580_v49  ;;  %v1010_v8 = vmul.f32 %v1009_v41, %v3381_v15  ;;  %v1648_v39 = vmul.f32 %v1647_v42, %v3422_v13 }
 0x1f5   : > { %v3793_v54 = vadd.f32 0.18741608, %v3685_v26  ;;  %v3796_v36 = vadd.f32 0.18741608, %v3692_v62  ;;  %v1586_v6 = vmul.f32 %v1585_v5, %v3475_v16  ;;  %2329 = vrcp.f32 %v3784_v29 }
 0x1f6   : > { %v2328_v0 = vpop.eup %2327  ;;  %v3802_v22 = vmul.f32 %v3696_v33, %v3583_v52  ;;  %1919 = vmatmul.f32.gmra.mxu1 %v1831_v51  ;;  %v3804_v25 = vadd.f32 1.0, %v1010_v8  ;;  %v1649_v15 = vadd.f32 0.4994258, %v1648_v39  ;;  %v1045_v1 = vadd.f32 0.014752088, %v1044_v21 }
 0x1f7   : > { %v3807_v26 = vadd.f32 0.0036580483, %v3699_v63  ;;  %v2165_v35 = vclamps-f32 %v1586_v6, 1.0  ;;  %v973_v62 = vmul.f32 %v2328_v0, %v3769_v31  ;;  %vm977_vm8 = vweird.f32 %v3769_v31 }
 0x1f8   : > { %vm3811_vm9 = vcmp.eq.f32.partialorder %v981_v12, 8.507059e+37  ;;  %v984_v59 = vor.u32 1.1754944e-38, %v983_v50  ;;  %v1621_v33 = vand.u32 2147483647, %v3784_v29  ;;  %2331 = vrcp.f32 %v3804_v25 }
 0x1f9   : > { %v1815_v11 = vadd.f32 1.0, %v2165_v35  ;;  %v974_v44 = vsub.f32 1.0, %v973_v62  ;;  %v1623_v3 = vand.u32 2147483648, %v3784_v29  ;;  %v1650_v63 = vmul.f32 %v1649_v15, %v3422_v13 }
 0x1fa   : > { %vm978_vm10 = vweird.f32 %v2328_v0  ;;  %vm1617_vm11 = vweird.f32 %v3784_v29  ;;  %v1021_v61 = vand.u32 2147483647, %v3804_v25  ;;  %v1046_v43 = vmul.f32 %v1045_v1, %v3434_v24 }
 0x1fb   : > { %v1682_v19 = vmul.f32 3.8918573e-05, %v3465_v2  ;;  %v2330_v38 = vpop.eup %2329  ;;  %v1847_v58 = vmul.f32 %v1815_v11, %v4162_v10  ;;  %v975_v40 = vmul.f32 %v2328_v0, %v974_v44  ;;  %v1023_v27 = vand.u32 2147483648, %v3804_v25  ;;  %vm979_vm13 = vmor %vm977_vm8, %vm978_vm10  ;;  %v4167_v10 = vld [vmem:[#allocation15_spill] sm:$0xff] }
 0x1fc   : > { %v3825_v53 = vadd.f32 1.0, %v1650_v63  ;;  %v1613_v37 = vmul.f32 %v2330_v38, %v3784_v29  ;;  %vm3828_vm12 = vcmp.eq.f32.partialorder %v1621_v33, 8.507059e+37  ;;  %v1047_v17 = vadd.f32 0.112945676, %v1046_v43 }
 0x1fd   : > { %v1683_v7 = vadd.f32 0.001143296, %v1682_v19  ;;  %1967 = vmatmul.f32.gmra.mxu3 %v1847_v58  ;;  %v976_v60 = vadd.f32 %v2328_v0, %v975_v40  ;;  %v1624_v48 = vor.u32 1.1754944e-38, %v1623_v3  ;;  %v1082_v12 = vmul.f32 3.8918573e-05, %v3517_v47 }
 0x1fe   : > { %2333 = vrcp.f32 %v3825_v53  ;;  %v2332_v45 = vpop.eup %2331  ;;  %v1614_v57 = vsub.f32 1.0, %v1613_v37  ;;  %vm1017_vm14 = vweird.f32 %v3804_v25  ;;  %v1048_v20 = vmul.f32 %v1047_v17, %v3434_v24 }
 0x1ff   : > { %v1684_v41 = vmul.f32 %v1683_v7, %v3465_v2  ;;  %v980_v42 = vsel %vm979_vm13, %v2328_v0, %v976_v60  ;;  %v1013_v49 = vmul.f32 %v2332_v45, %v3804_v25  ;;  %vm3841_vm15 = vcmp.eq.f32.partialorder %v1021_v61, 8.507059e+37 }
 0x200   : > { %v1024_v21 = vor.u32 1.1754944e-38, %v1023_v27  ;;  %v985_v23 = vsel %vm3811_vm9, %v984_v59, %v980_v42  ;;  %v1615_v31 = vmul.f32 %v2330_v38, %v1614_v57  ;;  %vm1618_vm0 = vweird.f32 %v2330_v38 }
 0x201   : > { %v1049_v51 = vadd.f32 0.4994258, %v1048_v20  ;;  %v986_v5 = vmul.f32 %v985_v23, %v3523_v14  ;;  %v1014_v8 = vsub.f32 1.0, %v1013_v49  ;;  %v1685_v39 = vadd.f32 0.014752088, %v1684_v41  ;;  %vm1619_vm2 = vmor %vm1617_vm11, %vm1618_vm0 }
 0x202   : > { %v1083_v6 = vadd.f32 0.001143296, %v1082_v12  ;;  %v1616_v15 = vadd.f32 %v2330_v38, %v1615_v31  ;;  %vm1657_vm1 = vweird.f32 %v3825_v53  ;;  %v1661_v0 = vand.u32 2147483647, %v3825_v53 }
 0x203   : > { %v1663_v1 = vand.u32 2147483648, %v3825_v53  ;;  %v1050_v35 = vmul.f32 %v1049_v51, %v3434_v24  ;;  %v2150_v16 = vclamps-f32 %v986_v5, 1.0  ;;  %v1015_v59 = vmul.f32 %v2332_v45, %v1014_v8 }
 0x204   : > { %v2334_v62 = vpop.eup %2333  ;;  %vm1018_vm3 = vweird.f32 %v2332_v45  ;;  %v1686_v14 = vmul.f32 %v1685_v39, %v3465_v2  ;;  %v1620_v33 = vsel %vm1619_vm2, %v2330_v38, %v1616_v15  ;;  %v1084_v3 = vmul.f32 %v1083_v6, %v3517_v47 }
 0x205   : > { %v1653_v11 = vmul.f32 %v2334_v62, %v3825_v53  ;;  %v3856_v44 = vadd.f32 1.0, %v1050_v35  ;;  %v1800_v63 = vadd.f32 1.0, %v2150_v16  ;;  %v1625_v24 = vsel %vm3828_vm12, %v1624_v48, %v1620_v33  ;;  %vm1019_vm4 = vmor %vm1017_vm14, %vm1018_vm3 }
 0x206   : > { %v1016_v61 = vadd.f32 %v2332_v45, %v1015_v59  ;;  %v1687_v43 = vadd.f32 0.112945676, %v1686_v14  ;;  %v1626_v29 = vmul.f32 %v1625_v24, %v3604_v46  ;;  %v1722_v38 = vmul.f32 3.8918573e-05, %v3537_v55 }
 0x207   : > { %v1654_v19 = vsub.f32 1.0, %v1653_v11  ;;  %2335 = vrcp.f32 %v3856_v44  ;;  %v1832_v58 = vmul.f32 %v1800_v63, %v4167_v10  ;;  %vm1658_vm5 = vweird.f32 %v2334_v62 }
 0x208   : > { %v1020_v40 = vsel %vm1019_vm4, %v2332_v45, %v1016_v61  ;;  %v1122_v27 = vmul.f32 3.8918573e-05, %v3583_v52  ;;  %v2166_v37 = vclamps-f32 %v1626_v29, 1.0  ;;  %v1688_v46 = vmul.f32 %v1687_v43, %v3465_v2  ;;  %vm1659_vm7 = vmor %vm1657_vm1, %vm1658_vm5 }
 0x209   : > { %v1025_v13 = vsel %vm3841_vm15, %v1024_v21, %v1020_v40  ;;  %v1655_v17 = vmul.f32 %v2334_v62, %v1654_v19  ;;  %1922 = vmatmul.f32.gmra.mxu1 %v1832_v58  ;;  %vm3872_vm6 = vcmp.eq.f32.partialorder %v1661_v0, 8.507059e+37  ;;  %v1664_v60 = vor.u32 1.1754944e-38, %v1663_v1  ;;  %v4170_v21 = vld [vmem:[#allocation23_spill] sm:$0xff] }
 0x20a   : > { %v1026_v25 = vmul.f32 %v1025_v13, %v3660_v30  ;;  %v1085_v48 = vadd.f32 0.014752088, %v1084_v3  ;;  %v1816_v12 = vadd.f32 1.0, %v2166_v37  ;;  %v1689_v57 = vadd.f32 0.4994258, %v1688_v46 }
 0x20b   : > { %v1656_v45 = vadd.f32 %v2334_v62, %v1655_v17  ;;  %v1723_v20 = vadd.f32 0.001143296, %v1722_v38  ;;  %v1123_v49 = vadd.f32 0.001143296, %v1122_v27  ;;  %v1762_v30 = vmul.f32 3.8918573e-05, %v3644_v18 }
 0x20c   : > { %v2151_v41 = vclamps-f32 %v1026_v25, 1.0  ;;  %v1086_v42 = vmul.f32 %v1085_v48, %v3517_v47  ;;  %v1848_v23 = vmul.f32 %v1816_v12, %v4170_v21  ;;  %v1690_v51 = vmul.f32 %v1689_v57, %v3465_v2 }
 0x20d   : > { %v2336_v50 = vpop.eup %2335  ;;  %v1660_v31 = vsel %vm1659_vm7, %v2334_v62, %v1656_v45  ;;  %v1724_v5 = vmul.f32 %v1723_v20, %v3537_v55  ;;  %v1755_v8 = vmul.f32 %v3807_v26, %v3644_v18  ;;  %v1124_v16 = vmul.f32 %v1123_v49, %v3583_v52 }
 0x20e   : > { %v1801_v39 = vadd.f32 1.0, %v2151_v41  ;;  %v1665_v53 = vsel %vm3872_vm6, %v1664_v60, %v1660_v31  ;;  %v1053_v6 = vmul.f32 %v2336_v50, %v3856_v44  ;;  %1970 = vmatmul.f32.gmra.mxu3 %v1848_v23  ;;  %v3890_v0 = vadd.f32 1.0, %v1690_v51  ;;  %v3924_v23 = vld [vmem:[%s4088_s4] ss:$0 sm:$0xff] }
 0x20f   : > { %v1666_v15 = vmul.f32 %v1665_v53, %v3669_v56  ;;  %v1087_v1 = vadd.f32 0.112945676, %v1086_v42  ;;  %v1725_v35 = vadd.f32 0.014752088, %v1724_v5  ;;  %v1763_v59 = vadd.f32 0.001143296, %v1762_v30 }
 0x210   : > { %v1833_v2 = vmul.f32 %v1801_v39, %v3468_v4  ;;  %v1054_v62 = vsub.f32 1.0, %v1053_v6  ;;  %v1061_v14 = vand.u32 2147483647, %v3856_v44  ;;  %v1063_v33 = vand.u32 2147483648, %v3856_v44 }
 0x211   : > { %v2167_v26 = vclamps-f32 %v1666_v15, 1.0  ;;  %2337 = vrcp.f32 %v3890_v0  ;;  %vm1058_vm8 = vweird.f32 %v2336_v50  ;;  %v1088_v56 = vmul.f32 %v1087_v1, %v3517_v47 }
 0x212   : > { %1925 = vmatmul.f32.gmra.mxu1 %v1833_v2  ;;  %v1055_v11 = vmul.f32 %v2336_v50, %v1054_v62  ;;  %v1726_v3 = vmul.f32 %v1725_v35, %v3537_v55  ;;  %v1756_v63 = vadd.f32 0.05243302, %v1755_v8  ;;  %v1125_v24 = vadd.f32 0.014752088, %v1124_v16  ;;  %v4171_v16 = vld [vmem:[#allocation16_spill] sm:$0xff] }
 0x213   : > { %v1817_v4 = vadd.f32 1.0, %v2167_v26  ;;  %v1764_v61 = vmul.f32 %v1763_v59, %v3644_v18  ;;  %vm1057_vm9 = vweird.f32 %v3856_v44  ;;  %v1089_v29 = vadd.f32 0.4994258, %v1088_v56  ;;  %v4172_v26 = vld [vmem:[#allocation21_spill] sm:$0xff] }
 0x214   : > { %v1056_v43 = vadd.f32 %v2336_v50, %v1055_v11  ;;  %v1727_v19 = vadd.f32 0.112945676, %v1726_v3  ;;  %vm1059_vm10 = vmor %vm1057_vm9, %vm1058_vm8  ;;  %v1064_v10 = vor.u32 1.1754944e-38, %v1063_v33  ;;  %v1126_v58 = vmul.f32 %v1125_v24, %v3583_v52 }
 0x215   : > { %v1849_v38 = vmul.f32 %v1817_v4, %v3588_v34  ;;  %v1765_v40 = vadd.f32 0.014752088, %v1764_v61  ;;  %vm1062_vm11 = vcmp.eq.f32.partialorder %v1061_v14, 8.507059e+37  ;;  %v1090_v37 = vmul.f32 %v1089_v29, %v3517_v47  ;;  %v4173_v4 = vld [vmem:[#allocation17_spill] sm:$0xff] }
 0x216   : > { %v1060_v27 = vsel %vm1059_vm10, %v2336_v50, %v1056_v43  ;;  %v1728_v13 = vmul.f32 %v1727_v19, %v3537_v55  ;;  %v1079_v46 = vmul.f32 %v3793_v54, %v3517_v47  ;;  %v1127_v25 = vadd.f32 0.112945676, %v1126_v58  ;;  %v1890_v50 = vpop.f32.mrf.mxu1 }
 0x217   : > { %v2338_v17 = vpop.eup %2337  ;;  %1973 = vmatmul.f32.gmra.mxu3 %v1849_v38  ;;  %v1065_v44 = vsel %vm1062_vm11, %v1064_v10, %v1060_v27  ;;  %v1766_v34 = vmul.f32 %v1765_v40, %v3644_v18  ;;  %v1719_v7 = vmul.f32 %v3796_v36, %v3537_v55  ;;  %v3912_v12 = vadd.f32 1.0, %v1090_v37 }
 0x218   : > { %v1066_v60 = vmul.f32 %v1065_v44, %v3677_v32  ;;  %v1693_v48 = vmul.f32 %v2338_v17, %v3890_v0  ;;  %v1118_v45 = vadd.f32 0.18741608, %v3802_v22  ;;  %v1729_v57 = vadd.f32 0.4994258, %v1728_v13 }
 0x219   : > { %v1128_v20 = vmul.f32 %v1127_v25, %v3583_v52  ;;  %v1767_v47 = vadd.f32 0.112945676, %v1766_v34  ;;  %v1757_v54 = vmul.f32 %v1756_v63, %v3644_v18  ;;  %2339 = vrcp.f32 %v3912_v12 }
 0x21a   : > { %v2152_v41 = vclamps-f32 %v1066_v60, 1.0  ;;  %v1694_v42 = vsub.f32 1.0, %v1693_v48  ;;  %v1701_v36 = vand.u32 2147483647, %v3890_v0  ;;  %v1703_v32 = vand.u32 2147483648, %v3890_v0 }
 0x21b   : > { %v1730_v49 = vmul.f32 %v1729_v57, %v3537_v55  ;;  %v1129_v30 = vadd.f32 0.4994258, %v1128_v20  ;;  %vm1698_vm12 = vweird.f32 %v2338_v17  ;;  %v1768_v31 = vmul.f32 %v1767_v47, %v3644_v18 }
 0x21c   : > { %v1802_v21 = vadd.f32 1.0, %v2152_v41  ;;  %v1695_v22 = vmul.f32 %v2338_v17, %v1694_v42  ;;  %v1119_v51 = vmul.f32 %v1118_v45, %v3583_v52  ;;  %vm1697_vm13 = vweird.f32 %v3890_v0 }
 0x21d   : > { %v3929_v5 = vadd.f32 1.0, %v1730_v49  ;;  %v1130_v55 = vmul.f32 %v1129_v30, %v3583_v52  ;;  %v1891_v53 = vadd.f32 %v3924_v23, %v1890_v50  ;;  %v1769_v6 = vadd.f32 0.4994258, %v1768_v31  ;;  %vm1699_vm14 = vmor %vm1697_vm13, %vm1698_vm12 }
 0x21e   : > { %v1834_v8 = vmul.f32 %v1802_v21, %v3663_v9  ;;  %v1696_v39 = vadd.f32 %v2338_v17, %v1695_v22  ;;  %v1080_v15 = vadd.f32 1.1283791, %v1079_v46  ;;  %v1758_v1 = vadd.f32 0.18741608, %v1757_v54  ;;  %v1938_v9 = vpop.f32.mrf.mxu3  ;;  %v1893_v19 = vpop.f32.mrf.mxu1 }
 0x21f   : > { %v1704_v35 = vor.u32 1.1754944e-38, %v1703_v32  ;;  %2341 = vrcp.f32 %v3929_v5  ;;  %v2340_v2 = vpop.eup %2339  ;;  %vm1702_vm15 = vcmp.eq.f32.partialorder %v1701_v36, 8.507059e+37  ;;  %v3935_v62 = vadd.f32 1.0, %v1130_v55  ;;  %1986 = vst [vmem:[%s3939_s15] sm:$0xff] %v1891_v53 }
 0x220   : > { %1928 = vmatmul.f32.gmra.mxu1 %v1834_v8  ;;  %v1700_v0 = vsel %vm1699_vm14, %v2338_v17, %v1696_v39  ;;  %v1770_v52 = vmul.f32 %v1769_v6, %v3644_v18  ;;  %v474_v59 = vmul.f32 0.5, %v4171_v16  ;;  %v3945_v14 = vmul.f32 0.5, %v4172_v26  ;;  %v4175_v17 = vld [vmem:[#allocation25_spill] sm:$0xff] }
 0x221   : > { %v1705_v33 = vsel %vm1702_vm15, %v1704_v35, %v1700_v0  ;;  %v1093_v11 = vmul.f32 %v2340_v2, %v3912_v12  ;;  %v1720_v56 = vadd.f32 1.1283791, %v1719_v7  ;;  %v1120_v3 = vadd.f32 1.1283791, %v1119_v51 }
 0x222   : > { %v1706_v63 = vmul.f32 %v1705_v33, %v3681_v28  ;;  %2343 = vrcp.f32 %v3935_v62  ;;  %v1081_v24 = vmul.f32 %v1080_v15, %v4173_v4  ;;  %v1759_v61 = vmul.f32 %v1758_v1, %v3644_v18  ;;  %v4174_v18 = vld [vmem:[#allocation24_spill] sm:$0xff] }
 0x223   : > { %v1094_v43 = vsub.f32 1.0, %v1093_v11  ;;  %v3952_v29 = vadd.f32 1.0, %v1770_v52  ;;  %v1103_v10 = vand.u32 2147483648, %v3912_v12  ;;  %v1894_v58 = vadd.f32 %v3924_v23, %v1893_v19 }
 0x224   : > { %v2168_v38 = vclamps-f32 %v1706_v63, 1.0  ;;  %v1939_v40 = vadd.f32 %v3924_v23, %v1938_v9  ;;  %vm1098_vm0 = vweird.f32 %v2340_v2  ;;  %v1101_v37 = vand.u32 2147483647, %v3912_v12 }
 0x225   : > { %v2342_v28 = vpop.eup %2341  ;;  %v1095_v27 = vmul.f32 %v2340_v2, %v1094_v43  ;;  %2345 = vrcp.f32 %v3952_v29  ;;  %v1721_v13 = vmul.f32 %v1720_v56, %v4174_v18  ;;  %v3961_v46 = vmul.f32 %v1120_v3, %v4175_v17  ;;  %1987 = vst [vmem:[%s3939_s15 + $0x8] sm:$0xff] %v1894_v58  ;;  %v4179_v43 = vld [vmem:[#allocation26_spill] sm:$0xff] }
 0x226   : > { %v1818_v44 = vadd.f32 1.0, %v2168_v38  ;;  %v1733_v25 = vmul.f32 %v2342_v28, %v3929_v5  ;;  %v1760_v34 = vadd.f32 1.1283791, %v1759_v61  ;;  %vm1097_vm1 = vweird.f32 %v3912_v12  ;;  %2002 = vst [vmem:[%s3939_s15 + $0x80] sm:$0xff] %v1939_v40  ;;  %v1941_v54 = vpop.f32.mrf.mxu3  ;;  %v1896_v31 = vpop.f32.mrf.mxu1 }
 0x227   : > { %v1096_v7 = vadd.f32 %v2340_v2, %v1095_v27  ;;  %v1741_v60 = vand.u32 2147483647, %v3929_v5  ;;  %vm1099_vm2 = vmor %vm1097_vm1, %vm1098_vm0  ;;  %v1104_v57 = vor.u32 1.1754944e-38, %v1103_v10  ;;  %v1743_v47 = vand.u32 2147483648, %v3929_v5 }
 0x228   : > { %v2344_v48 = vpop.eup %2343  ;;  %v1850_v45 = vmul.f32 %v1818_v44, %v474_v59  ;;  %v1734_v20 = vsub.f32 1.0, %v1733_v25  ;;  %vm1102_vm3 = vcmp.eq.f32.partialorder %v1101_v37, 8.507059e+37  ;;  %v1143_v36 = vand.u32 2147483648, %v3935_v62 }
 0x229   : > { %v1100_v41 = vsel %vm1099_vm2, %v2340_v2, %v1096_v7  ;;  %v1133_v42 = vmul.f32 %v2344_v48, %v3935_v62  ;;  %vm1738_vm4 = vweird.f32 %v2342_v28  ;;  %v1942_v49 = vadd.f32 %v3924_v23, %v1941_v54 }
 0x22a   : > { %1976 = vmatmul.f32.gmra.mxu3 %v1850_v45  ;;  %v1105_v12 = vsel %vm1102_vm3, %v1104_v57, %v1100_v41  ;;  %v1735_v32 = vmul.f32 %v2342_v28, %v1734_v20  ;;  %vm1737_vm5 = vweird.f32 %v3929_v5  ;;  %vm3974_vm6 = vcmp.eq.f32.partialorder %v1741_v60, 8.507059e+37  ;;  %v4181_v60 = vld [vmem:[#allocation20_spill] sm:$0xff] }
 0x22b   : > { %v2346_v30 = vpop.eup %2345  ;;  %v1106_v50 = vmul.f32 %v1105_v12, %v1081_v24  ;;  %v1134_v22 = vsub.f32 1.0, %v1133_v42  ;;  %v1744_v55 = vor.u32 1.1754944e-38, %v1743_v47  ;;  %v1897_v39 = vadd.f32 %v3924_v23, %v1896_v31  ;;  %2003 = vst [vmem:[%s3939_s15 + $0x88] sm:$0xff] %v1942_v49  ;;  %vm1739_vm7 = vmor %vm1737_vm5, %vm1738_vm4  ;;  %v4178_v24 = vld [vmem:[#allocation18_spill] sm:$0xff] }
 0x22c   : > { %v1736_v51 = vadd.f32 %v2342_v28, %v1735_v32  ;;  %v1773_v8 = vmul.f32 %v2346_v30, %v3952_v29  ;;  %vm1138_vm8 = vweird.f32 %v2344_v48  ;;  %v1141_v5 = vand.u32 2147483647, %v3935_v62 }
 0x22d   : > { %v2153_v53 = vclamps-f32 %v1106_v50, 1.0  ;;  %v1135_v6 = vmul.f32 %v2344_v48, %v1134_v22  ;;  %vm1137_vm9 = vweird.f32 %v3935_v62  ;;  %v1144_v1 = vor.u32 1.1754944e-38, %v1143_v36  ;;  %1988 = vst [vmem:[%s3939_s15 + $0x10] sm:$0xff] %v1897_v39 }
 0x22e   : > { %v1740_v15 = vsel %vm1739_vm7, %v2342_v28, %v1736_v51  ;;  %v1774_v35 = vsub.f32 1.0, %v1773_v8  ;;  %v1783_v9 = vand.u32 2147483648, %v3952_v29  ;;  %vm1139_vm10 = vmor %vm1137_vm9, %vm1138_vm8  ;;  %vm1778_vm11 = vweird.f32 %v2346_v30  ;;  %v1944_v33 = vpop.f32.mrf.mxu3  ;;  %v1899_v10 = vpop.f32.mrf.mxu1 }
 0x22f   : > { %v1803_v2 = vadd.f32 1.0, %v2153_v53  ;;  %v1745_v0 = vsel %vm3974_vm6, %v1744_v55, %v1740_v15  ;;  %v1136_v52 = vadd.f32 %v2344_v48, %v1135_v6  ;;  %v1781_v26 = vand.u32 2147483647, %v3952_v29 }
 0x230   : > { %v1746_v16 = vmul.f32 %v1745_v0, %v1721_v13  ;;  %v1775_v59 = vmul.f32 %v2346_v30, %v1774_v35  ;;  %vm1142_vm12 = vcmp.eq.f32.partialorder %v1141_v5, 8.507059e+37  ;;  %v1945_v56 = vadd.f32 %v3924_v23, %v1944_v33  ;;  %v4180_v13 = vld [vmem:[#allocation19_spill] sm:$0xff] }
 0x231   : > { %v1835_v62 = vmul.f32 %v1803_v2, %v3945_v14  ;;  %v1140_v11 = vsel %vm1139_vm10, %v2344_v48, %v1136_v52  ;;  %vm1777_vm13 = vweird.f32 %v3952_v29  ;;  %v475_v61 = vmul.f32 0.5, %v4178_v24 }
 0x232   : > { %v2169_v3 = vclamps-f32 %v1746_v16, 1.0  ;;  %v1145_v63 = vsel %vm1142_vm12, %v1144_v1, %v1140_v11  ;;  %v1776_v4 = vadd.f32 %v2346_v30, %v1775_v59  ;;  %v1761_v19 = vmul.f32 %v1760_v34, %v4179_v43  ;;  %vm1779_vm14 = vmor %vm1777_vm13, %vm1778_vm11  ;;  %2004 = vst [vmem:[%s3939_s15 + $0x90] sm:$0xff] %v1945_v56 }
 0x233   : > { %1931 = vmatmul.f32.gmra.mxu1 %v1835_v62  ;;  %v1146_v38 = vmul.f32 %v1145_v63, %v3961_v46  ;;  %v1784_v14 = vor.u32 1.1754944e-38, %v1783_v9  ;;  %vm1782_vm15 = vcmp.eq.f32.partialorder %v1781_v26, 8.507059e+37  ;;  %v1900_v28 = vadd.f32 %v3924_v23, %v1899_v10 }
 0x234   : > { %v1819_v58 = vadd.f32 1.0, %v2169_v3  ;;  %v1780_v40 = vsel %vm1779_vm14, %v2346_v30, %v1776_v4  ;;  %v460_v17 = vmul.f32 0.5, %v4180_v13  ;;  %v476_v48 = vmul.f32 0.5, %v4181_v60 }
 0x235   : > { %v2154_v27 = vclamps-f32 %v1146_v38, 1.0  ;;  %v1785_v29 = vsel %vm1782_vm15, %v1784_v14, %v1780_v40  ;;  %1989 = vst [vmem:[%s3939_s15 + $0x18] sm:$0xff] %v1900_v28 }
 0x236   : > { %v1851_v37 = vmul.f32 %v1819_v58, %v475_v61  ;;  %v1786_v18 = vmul.f32 %v1785_v29, %v1761_v19  ;;  %v1947_v25 = vpop.f32.mrf.mxu3  ;;  %v1902_v57 = vpop.f32.mrf.mxu1 }
 0x237   : > { %v1804_v46 = vadd.f32 1.0, %v2154_v27  ;;  %v1948_v7 = vadd.f32 %v3924_v23, %v1947_v25  ;;  %v1903_v47 = vadd.f32 %v3924_v23, %v1902_v57 }
 0x238   : > { %1979 = vmatmul.f32.gmra.mxu3 %v1851_v37  ;;  %v2170_v44 = vclamps-f32 %v1786_v18, 1.0 }
 0x239   : > { %v1836_v34 = vmul.f32 %v1804_v46, %v460_v17  ;;  %2005 = vst [vmem:[%s3939_s15 + $0x98] sm:$0xff] %v1948_v7 }
 0x23a   : > { %v1820_v45 = vadd.f32 1.0, %v2170_v44  ;;  %1990 = vst [vmem:[%s3939_s15 + $0x20] sm:$0xff] %v1903_v47 }
 0x23b   : > { %1934 = vmatmul.f32.gmra.mxu1 %v1836_v34 }
 0x23c   : > { %v1852_v20 = vmul.f32 %v1820_v45, %v476_v48 }
 0x23e   : > { %v1950_v54 = vpop.f32.mrf.mxu3  ;;  %v1905_v42 = vpop.f32.mrf.mxu1 }
 0x23f   : > { %v1951_v41 = vadd.f32 %v3924_v23, %v1950_v54  ;;  %v1906_v36 = vadd.f32 %v3924_v23, %v1905_v42 }
 0x240   : > { %1982 = vmatmul.f32.gmra.mxu3 %v1852_v20 }
 0x241   : > { %2006 = vst [vmem:[%s3939_s15 + $0xa0] sm:$0xff] %v1951_v41 }
 0x242   : > { %1991 = vst [vmem:[%s3939_s15 + $0x28] sm:$0xff] %v1906_v36 }
 0x246   : > { %v1953_v12 = vpop.f32.mrf.mxu3  ;;  %v1908_v49 = vpop.f32.mrf.mxu1 }
 0x247   : > { %v1954_v32 = vadd.f32 %v3924_v23, %v1953_v12  ;;  %v1909_v30 = vadd.f32 %v3924_v23, %v1908_v49 }
 0x249   : > { %2007 = vst [vmem:[%s3939_s15 + $0xa8] sm:$0xff] %v1954_v32 }
 0x24a   : > { %1992 = vst [vmem:[%s3939_s15 + $0x30] sm:$0xff] %v1909_v30 }
 0x24e   : > { %v1956_v50 = vpop.f32.mrf.mxu3  ;;  %v1911_v22 = vpop.f32.mrf.mxu1 }
 0x24f   : > { %v1957_v21 = vadd.f32 %v3924_v23, %v1956_v50  ;;  %v1912_v31 = vadd.f32 %v3924_v23, %v1911_v22 }
 0x251   : > { %2008 = vst [vmem:[%s3939_s15 + $0xb0] sm:$0xff] %v1957_v21 }
 0x252   : > { %1993 = vst [vmem:[%s3939_s15 + $0x38] sm:$0xff] %v1912_v31 }
 0x256   : > { %v1959_v51 = vpop.f32.mrf.mxu3  ;;  %v1914_v8 = vpop.f32.mrf.mxu1 }
 0x257   : > { %v1960_v55 = vadd.f32 %v3924_v23, %v1959_v51  ;;  %v1915_v39 = vadd.f32 %v3924_v23, %v1914_v8 }
 0x259   : > { %2009 = vst [vmem:[%s3939_s15 + $0xb8] sm:$0xff] %v1960_v55 }
 0x25a   : > { %1994 = vst [vmem:[%s3939_s15 + $0x40] sm:$0xff] %v1915_v39 }
 0x25e   : > { %v1962_v53 = vpop.f32.mrf.mxu3 }
 0x25f   : > { %v1963_v6 = vadd.f32 %v3924_v23, %v1962_v53 }
 0x261   : > { %2010 = vst [vmem:[%s3939_s15 + $0xc0] sm:$0xff] %v1963_v6 }
 0x26a   : > { %v1917_v5 = vpop.f32.mrf.mxu1 }
 0x26b   : > { %v1918_v15 = vadd.f32 %v3924_v23, %v1917_v5 }
 0x26d   : > { %1995 = vst [vmem:[%s3939_s15 + $0x48] sm:$0xff] %v1918_v15 }
 0x273   : > { %v1920_v1 = vpop.f32.mrf.mxu1 }
 0x274   : > { %v1921_v35 = vadd.f32 %v3924_v23, %v1920_v1 }
 0x276   : > { %1996 = vst [vmem:[%s3939_s15 + $0x50] sm:$0xff] %v1921_v35  ;;  %v1965_v2 = vpop.f32.mrf.mxu3 }
 0x277   : > { %v1966_v0 = vadd.f32 %v3924_v23, %v1965_v2 }
 0x279   : > { %2011 = vst [vmem:[%s3939_s15 + $0xc8] sm:$0xff] %v1966_v0 }
 0x280   : > { %v1968_v52 = vpop.f32.mrf.mxu3 }
 0x281   : > { %v1969_v9 = vadd.f32 %v3924_v23, %v1968_v52 }
 0x283   : > { %2012 = vst [vmem:[%s3939_s15 + $0xd0] sm:$0xff] %v1969_v9 }
 0x286   : > { %v1923_v16 = vpop.f32.mrf.mxu1 }
 0x287   : > { %v1924_v59 = vadd.f32 %v3924_v23, %v1923_v16 }
 0x289   : > { %1997 = vst [vmem:[%s3939_s15 + $0x58] sm:$0xff] %v1924_v59 }
 0x28f   : > { %v1926_v26 = vpop.f32.mrf.mxu1 }
 0x290   : > { %v1927_v33 = vadd.f32 %v3924_v23, %v1926_v26 }
 0x291   : > { %v1971_v62 = vpop.f32.mrf.mxu3 }
 0x292   : > { %1998 = vst [vmem:[%s3939_s15 + $0x60] sm:$0xff] %v1927_v33  ;;  %v1972_v11 = vadd.f32 %v3924_v23, %v1971_v62 }
 0x294   : > { %2013 = vst [vmem:[%s3939_s15 + $0xd8] sm:$0xff] %v1972_v11 }
 0x29a   : > { %v1974_v56 = vpop.f32.mrf.mxu3 }
 0x29b   : > { %v1975_v3 = vadd.f32 %v3924_v23, %v1974_v56 }
 0x29d   : > { %v1929_v63 = vpop.f32.mrf.mxu1  ;;  %2014 = vst [vmem:[%s3939_s15 + $0xe0] sm:$0xff] %v1975_v3 }
 0x29e   : > { %v1930_v4 = vadd.f32 %v3924_v23, %v1929_v63 }
 0x2a0   : > { %1999 = vst [vmem:[%s3939_s15 + $0x68] sm:$0xff] %v1930_v4 }
 0x2ad   : > { %v1977_v24 = vpop.f32.mrf.mxu3 }
 0x2ae   : > { %v1978_v61 = vadd.f32 %v3924_v23, %v1977_v24 }
 0x2b0   : > { %v1932_v43 = vpop.f32.mrf.mxu1  ;;  %2015 = vst [vmem:[%s3939_s15 + $0xe8] sm:$0xff] %v1978_v61 }
 0x2b1   : > { %v1933_v19 = vadd.f32 %v3924_v23, %v1932_v43 }
 0x2b3   : > { %2000 = vst [vmem:[%s3939_s15 + $0x70] sm:$0xff] %v1933_v19 }
 0x2b8   : > { %v1935_v38 = vpop.f32.mrf.mxu1 }
 0x2b9   : > { %v1936_v14 = vadd.f32 %v3924_v23, %v1935_v38 }
 0x2bb   : > { %2001 = vst [vmem:[%s3939_s15 + $0x78] sm:$0xff] %v1936_v14  ;;  %v1980_v10 = vpop.f32.mrf.mxu3 }
 0x2bc   : > { %v1981_v58 = vadd.f32 %v3924_v23, %v1980_v10 }
 0x2be   : > { %2016 = vst [vmem:[%s3939_s15 + $0xf0] sm:$0xff] %v1981_v58 }
 0x2c3   : > { %v1983_v40 = vpop.f32.mrf.mxu3 }
 0x2c4   : > { %v1984_v28 = vadd.f32 %v3924_v23, %v1983_v40 }
 0x2c6   : > { %2017 = vst [vmem:[%s3939_s15 + $0xf8] sm:$0xff] %v1984_v28 }
 0x2c7   : > { %2465 = shalt.err (!%p2462_p10)
}
 0x2c8   : > { %s2514_s8 = smov 128   ;;  %s2515_s13 = smov 8  }
 0x2c9   : > { %2220 = dma.vmem_to_hbm [thread:$0]  (%p2618_p3), %s2032_s26, 4096, %s2034_s10, %s2019_s16, %s2514_s8, %s2514_s8, %s2515_s13  }
 0x2ca PF: > { %s2048_s15 = sand.u32 1, %s2496_s18   ;;  %p4182_p12 = scmp.ge.s32.totalorder %s2508_s21, 2 }
 0x2cb   : > { %s2049_s27 = scalar_lea.sflag [#allocation4], %s2048_s15 }
 0x2cc   : > { %p2234_p13 = pnand %p4182_p12, %p2581_p6 }
 0x2ce   : > { %p2235_p0 = pneg %p2234_p13 }
 0x2d0   : > { %2491 = dma.done.wait (%p2235_p0), %s2049_s27, 4096  }
 0x2d1   : > { %2493 = vsyncadd (%p2235_p0), %s2049_s27, 4294963200  ;;  %p19_p5 = scmp.ge.s32.totalorder %s2608_s14, 4   ;;  %s4183_s18 = smov %s2500_s19 }
 0x2d2   : > { %s4184_s19 = smov %s2504_s20  ;;  %s4185_s20 = smov %s2624_s23 }
 0x2d3   : > { %s4186_s21 = smov %s2608_s14  ;;  %21 = sbr.rel (!%p19_p5) target bundleno = 6 (0x6), region = 93 }
 0x2d8   :  { %2055 = vsyncpa [#allocation3], 1 }
 0x2d9   :  { %2057 = vsyncpa [#allocation3 + $0x1], 1 }
 0x2da   :  { %2058 = vsyncpa [#allocation6], 1 }
 0x2db   :  { %2059 = vsyncpa [#allocation4], 1 }
 0x2dc   :  { %2061 = vsyncpa [#allocation4 + $0x1], 1 }

</bundles_post_ra>
